<compile_context>
chip_gen: v7x
topology: tpu7x:2x2x1
jax: 0.10.0
libtpu: 0.0.40
codegen_flags: <defaults>
</compile_context>

<pallas_src>
import functools

import jax
import jax.numpy as jnp
from jax import lax
from jax.experimental import pallas as pl
from jax.experimental.pallas import tpu as pltpu


_NEG_BIG = -1e30  # logits bias for padded classes -> exp() underflows to exactly 0


def _round_up(n, m):
    return ((n + m - 1) // m) * m


# ----------------------------------------------------------------------------
# Fused Pallas kernel: all LSTM layers + FC + softmax in one call
# ----------------------------------------------------------------------------
def _fused_lstm_classifier_kernel(*refs, num_layers, seq_len, batch_pad):
    """refs layout:
        x_ref                      (T*Bp, Fp)   bf16   time-major, batch/feature padded
        per layer l (0..L-1):
          w_ih_ref                 (Fp|Hp, 4Hp) bf16   transposed, gate-block padded
          w_hh_ref                 (Hp, 4Hp)    bf16
          b_ref                    (1, 4Hp)     f32    b_ih + b_hh, gate-block padded
        w_fc_ref                   (Hp, Cp)     bf16
        b_fc_ref                   (1, Cp)      f32    padded classes biased to -1e30
        out_ref                    (Bp, Cp)     f32    softmax probabilities
        gx_ref (scratch)           (T*Bp, 4Hp)  f32    hoisted input-projection gates
        seq_ref (scratch)          (T*Bp, Hp)   f32    inter-layer hidden sequence
    PyTorch gate order along 4Hp: i, f, g, o.
    """
    x_ref = refs[0]
    layer_refs = refs[1:1 + 3 * num_layers]
    w_fc_ref, b_fc_ref, out_ref, gx_ref, seq_ref = refs[1 + 3 * num_layers:]

    T = seq_len
    Bp = batch_pad
    Hp = seq_ref.shape[-1]

    h = jnp.zeros((Bp, Hp), jnp.float32)
    for layer in range(num_layers):
        w_ih_ref = layer_refs[3 * layer + 0]
        w_hh_ref = layer_refs[3 * layer + 1]
        b_ref = layer_refs[3 * layer + 2]

        # (1) Hoisted input projection: one big MXU matmul over ALL timesteps.
        if layer == 0:
            inp = x_ref[...]                              # (T*Bp, Fp) bf16
        else:
            inp = seq_ref[...].astype(jnp.bfloat16)       # (T*Bp, Hp)
        gx_ref[...] = (
            jnp.dot(inp, w_ih_ref[...], preferred_element_type=jnp.float32)
            + b_ref[...]
        )

        # (2) Recurrence: only h @ W_hh on the serial per-timestep path.
        w_hh = w_hh_ref[...]                              # (Hp, 4Hp) bf16
        h = jnp.zeros((Bp, Hp), jnp.float32)
        c = jnp.zeros((Bp, Hp), jnp.float32)
        write_seq = layer < num_layers - 1
        for t in range(T):                                # static unroll (T small)
            row = t * Bp                                  # static, sublane-aligned
            gates = gx_ref[row:row + Bp, :] + jnp.dot(
                h.astype(jnp.bfloat16), w_hh, preferred_element_type=jnp.float32
            )                                             # (Bp, 4Hp) f32
            # 128-lane-aligned gate slices (whole vregs; no lane shuffles).
            i_g = jax.nn.sigmoid(gates[:, 0 * Hp:1 * Hp])
            f_g = jax.nn.sigmoid(gates[:, 1 * Hp:2 * Hp])
            g_g = jnp.tanh(gates[:, 2 * Hp:3 * Hp])
            o_g = jax.nn.sigmoid(gates[:, 3 * Hp:4 * Hp])
            c = f_g * c + i_g * g_g
            h = o_g * jnp.tanh(c)
            if write_seq:                                 # next layer's input sequence
                seq_ref[row:row + Bp, :] = h              # full (8,128) f32 tile store

    # (3) FC + softmax on the last hidden state of the last layer (out[:, -1, :]).
    logits = jnp.dot(h.astype(jnp.bfloat16), w_fc_ref[...],
                     preferred_element_type=jnp.float32) + b_fc_ref[...]
    m = jnp.max(logits, axis=-1, keepdims=True)
    e = jnp.exp(logits - m)                               # padded classes -> exactly 0
    denom = jnp.sum(e, axis=-1, keepdims=True)
    out_ref[...] = e * pl.reciprocal(denom, approx=True)  # EUP slot, effectively free


# ----------------------------------------------------------------------------
# Wrapper around pallas_call
# ----------------------------------------------------------------------------
@functools.partial(jax.jit, static_argnames=("num_classes",))
def lstm_classifier_forward(x, layers_p, w_fc_p, b_fc_p, *, num_classes):
    """x: (B, T, input_size) float32, batch_first — same convention as nn.LSTM(batch_first=True)."""
    B, T, F = x.shape
    num_layers = len(layers_p)
    Hp = layers_p[0][1].shape[0]          # w_hh_p: (Hp, 4Hp)
    Fp = layers_p[0][0].shape[0]          # layer-0 w_ih_p: (Fp, 4Hp)
    Cp = w_fc_p.shape[1]
    Bp = _round_up(B, 8)

    # batch-first -> time-major, pad batch to 8 sublanes and features to 128 lanes,
    # flatten to (T*Bp, Fp) and cast the MXU operand to bf16.
    xt = jnp.transpose(x, (1, 0, 2)).astype(jnp.float32)          # (T, B, F)
    xt = jnp.pad(xt, ((0, 0), (0, Bp - B), (0, Fp - F)))          # (T, Bp, Fp)
    x_flat = xt.reshape(T * Bp, Fp).astype(jnp.bfloat16)

    flat_inputs = [x_flat]
    for (w_ih_p, w_hh_p, b_p) in layers_p:
        flat_inputs += [w_ih_p, w_hh_p, b_p]
    flat_inputs += [w_fc_p, b_fc_p]

    kernel = functools.partial(
        _fused_lstm_classifier_kernel,
        num_layers=num_layers, seq_len=T, batch_pad=Bp,
    )
    out_p = pl.pallas_call(
        kernel,
        out_shape=jax.ShapeDtypeStruct((Bp, Cp), jnp.float32),
        in_specs=[pl.BlockSpec(memory_space=pltpu.MemorySpace.VMEM)] * len(flat_inputs),
        out_specs=pl.BlockSpec(memory_space=pltpu.MemorySpace.VMEM),
        scratch_shapes=[
            pltpu.VMEM((T * Bp, 4 * Hp), jnp.float32),   # hoisted gate projections
            pltpu.VMEM((T * Bp, Hp), jnp.float32),       # inter-layer hidden sequence
        ],
    )(*flat_inputs)

    return out_p[:B, :num_classes]                       # drop batch / class padding


# ----------------------------------------------------------------------------
# Pure-JAX reference (mirrors the kernel's bf16 MXU operands, f32 accumulation)
# ----------------------------------------------------------------------------
def reference_forward(x, raw_layers, w_fc, b_fc):
    bf16 = jnp.bfloat16
    seq = jnp.transpose(x, (1, 0, 2)).astype(jnp.float32)  # (T, B, F)
    B = seq.shape[1]
    for (w_ih, w_hh, b_ih, b_hh) in raw_layers:
        H = w_hh.shape[1]
        w_ihT = w_ih.T.astype(bf16)
        w_hhT = w_hh.T.astype(bf16)
        b = (b_ih + b_hh).astype(jnp.float32)

        def step(carry, x_t, w_ihT=w_ihT, w_hhT=w_hhT, b=b, H=H):
            h, c = carry
            gates = (
                jnp.dot(x_t.astype(bf16), w_ihT, preferred_element_type=jnp.float32)
                + jnp.dot(h.astype(bf16), w_hhT, preferred_element_type=jnp.float32)
                + b
            )
            i_g = jax.nn.sigmoid(gates[:, 0 * H:1 * H])
            f_g = jax.nn.sigmoid(gates[:, 1 * H:2 * H])
            g_g = jnp.tanh(gates[:, 2 * H:3 * H])
            o_g = jax.nn.sigmoid(gates[:, 3 * H:4 * H])
            c_new = f_g * c + i_g * g_g
            h_new = o_g * jnp.tanh(c_new)
            return (h_new, c_new), h_new

        init = (jnp.zeros((B, H), jnp.float32), jnp.zeros((B, H), jnp.float32))
        _, seq = lax.scan(step, init, seq)
    logits = jnp.dot(seq[-1].astype(bf16), w_fc.T.astype(bf16),
                     preferred_element_type=jnp.float32) + b_fc
    return jax.nn.softmax(logits, axis=1)


# ----------------------------------------------------------------------------
# Parameter construction (PyTorch nn.LSTM / nn.Linear layout) + padding/packing
# ----------------------------------------------------------------------------
def make_params(key, input_size, hidden_size, num_classes, num_layers):
    """Raw parameters in PyTorch layout:
       per layer: weight_ih (4H, in_f), weight_hh (4H, H), bias_ih (4H,), bias_hh (4H,)
       fc: weight (C, H), bias (C,)."""
    layers = []
    scale = 1.0 / (hidden_size ** 0.5)
    for l in range(num_layers):
        in_f = input_size if l == 0 else hidden_size
        key, k1, k2, k3, k4 = jax.random.split(key, 5)
        w_ih = jax.random.uniform(k1, (4 * hidden_size, in_f), jnp.float32, -scale, scale)
        w_hh = jax.random.uniform(k2, (4 * hidden_size, hidden_size), jnp.float32, -scale, scale)
        b_ih = jax.random.uniform(k3, (4 * hidden_size,), jnp.float32, -scale, scale)
        b_hh = jax.random.uniform(k4, (4 * hidden_size,), jnp.float32, -scale, scale)
        layers.append((w_ih, w_hh, b_ih, b_hh))
    key, k5, k6 = jax.random.split(key, 3)
    w_fc = jax.random.uniform(k5, (num_classes, hidden_size), jnp.float32, -scale, scale)
    b_fc = jax.random.uniform(k6, (num_classes,), jnp.float32, -scale, scale)
    return tuple(layers), w_fc, b_fc


def _pad_gate_weight(w, in_pad, hidden_pad):
    """(4H, in_f) PyTorch weight -> (in_pad, 4*Hp) transposed, each gate block padded H->Hp
    with zeros so padded lanes stay exactly zero through the recurrence."""
    H4, in_f = w.shape
    H = H4 // 4
    wt = w.T.reshape(in_f, 4, H)
    out = jnp.zeros((in_pad, 4, hidden_pad), jnp.float32)
    out = out.at[:in_f, :, :H].set(wt)
    return out.reshape(in_pad, 4 * hidden_pad).astype(jnp.bfloat16)


def _pad_gate_bias(b_ih, b_hh, hidden_pad):
    b = b_ih + b_hh
    H = b.shape[0] // 4
    out = jnp.zeros((4, hidden_pad), jnp.float32)
    out = out.at[:, :H].set(b.reshape(4, H))
    return out.reshape(1, 4 * hidden_pad)


def _pad_fc(w_fc, b_fc, hidden_pad, class_pad):
    C, H = w_fc.shape
    w = jnp.zeros((hidden_pad, class_pad), jnp.float32).at[:H, :C].set(w_fc.T)
    b = jnp.full((1, class_pad), _NEG_BIG, jnp.float32).at[0, :C].set(b_fc)
    return w.astype(jnp.bfloat16), b


def prepare_params(raw_layers, w_fc, b_fc, input_pad, hidden_pad, class_pad):
    layers_p = []
    for layer_idx, (w_ih, w_hh, b_ih, b_hh) in enumerate(raw_layers):
        in_pad = input_pad if layer_idx == 0 else hidden_pad
        layers_p.append((
            _pad_gate_weight(w_ih, in_pad, hidden_pad),
            _pad_gate_weight(w_hh, hidden_pad, hidden_pad),
            _pad_gate_bias(b_ih, b_hh, hidden_pad),
        ))
    w_fc_p, b_fc_p = _pad_fc(w_fc, b_fc, hidden_pad, class_pad)
    return tuple(layers_p), w_fc_p, b_fc_p


# ----------------------------------------------------------------------------
# Main
# ----------------------------------------------------------------------------
if __name__ == "__main__":
    B, T = 2, 8
    INPUT_SIZE, HIDDEN_SIZE, NUM_CLASSES, NUM_LAYERS = 16, 32, 8, 2

    key = jax.random.PRNGKey(0)
    key, kx = jax.random.split(key)
    x = jax.random.normal(kx, (B, T, INPUT_SIZE), jnp.float32)

    raw_layers, w_fc, b_fc = make_params(
        key, INPUT_SIZE, HIDDEN_SIZE, NUM_CLASSES, NUM_LAYERS
    )

    Fp = _round_up(INPUT_SIZE, 128)
    Hp = _round_up(HIDDEN_SIZE, 128)
    Cp = _round_up(NUM_CLASSES, 128)
    layers_p, w_fc_p, b_fc_p = prepare_params(raw_layers, w_fc, b_fc, Fp, Hp, Cp)

    out = lstm_classifier_forward(x, layers_p, w_fc_p, b_fc_p,
                                  num_classes=NUM_CLASSES)
    out = jax.block_until_ready(out)

    ref = reference_forward(x, raw_layers, w_fc, b_fc)

    assert out.shape == (B, NUM_CLASSES)
    max_diff = float(jnp.max(jnp.abs(out - ref)))
    # bf16 MXU operands + approx reciprocal -> slightly loosened tolerance.
    assert jnp.allclose(out, ref, atol=5e-3, rtol=5e-3), f"mismatch vs reference (max|diff|={max_diff})"
    assert jnp.allclose(jnp.sum(out, axis=1), jnp.ones((B,), jnp.float32), atol=5e-3)

    print("KERNEL_OK")
</pallas_src>

<mosaic_0001>
module attributes {stable_mosaic.version = 11 : i64} {
  func.func @_fused_lstm_classifier_kernel(%arg0: memref<64x128xbf16, #tpu.memory_space<vmem>>, %arg1: memref<128x512xbf16, #tpu.memory_space<vmem>>, %arg2: memref<128x512xbf16, #tpu.memory_space<vmem>>, %arg3: memref<1x512xf32, #tpu.memory_space<vmem>>, %arg4: memref<128x512xbf16, #tpu.memory_space<vmem>>, %arg5: memref<128x512xbf16, #tpu.memory_space<vmem>>, %arg6: memref<1x512xf32, #tpu.memory_space<vmem>>, %arg7: memref<128x128xbf16, #tpu.memory_space<vmem>>, %arg8: memref<1x128xf32, #tpu.memory_space<vmem>>, %arg9: memref<8x128xf32, #tpu.memory_space<vmem>>, %arg10: memref<64x512xf32, #tpu.memory_space<vmem>>, %arg11: memref<64x128xf32, #tpu.memory_space<vmem>>) attributes {dimension_semantics = [], scalar_prefetch = 0 : i64, scratch_operands = 2 : i64, tpu.core_type = #tpu.core_type<tc>} {
    %c0 = arith.constant 0 : index
    %c0_0 = arith.constant 0 : index
    %0 = vector.load %arg0[%c0, %c0_0] : memref<64x128xbf16, #tpu.memory_space<vmem>>, vector<64x128xbf16>
    %c0_1 = arith.constant 0 : index
    %c0_2 = arith.constant 0 : index
    %1 = vector.load %arg1[%c0_1, %c0_2] : memref<128x512xbf16, #tpu.memory_space<vmem>>, vector<128x512xbf16>
    %cst = arith.constant dense<0.000000e+00> : vector<64x512xf32>
    %2 = tpu.matmul %0, %1, %cst {dimension_numbers = #tpu.dot_dimension_numbers<[1], [0], [0], [1], [0, 0, 1, 1], [], []>} : vector<64x128xbf16>, vector<128x512xbf16>, vector<64x512xf32> -> vector<64x512xf32>
    %c0_3 = arith.constant 0 : index
    %c0_4 = arith.constant 0 : index
    %3 = vector.load %arg3[%c0_3, %c0_4] : memref<1x512xf32, #tpu.memory_space<vmem>>, vector<1x512xf32>
    %4 = vector.broadcast %3 : vector<1x512xf32> to vector<64x512xf32>
    %5 = arith.addf %2, %4 : vector<64x512xf32>
    %c0_5 = arith.constant 0 : index
    %c0_6 = arith.constant 0 : index
    %6 = vector.load %arg10[%c0_5, %c0_6] : memref<64x512xf32, #tpu.memory_space<vmem>>, vector<64x512xf32>
    tpu.vector_store %arg10[%c0_5, %c0_6], %5 {strides = array<i32>} : memref<64x512xf32, #tpu.memory_space<vmem>>, vector<64x512xf32>,
    %c0_7 = arith.constant 0 : index
    %c0_8 = arith.constant 0 : index
    %7 = vector.load %arg2[%c0_7, %c0_8] : memref<128x512xbf16, #tpu.memory_space<vmem>>, vector<128x512xbf16>
    %cst_9 = arith.constant 0.000000e+00 : f32
    %8 = vector.broadcast %cst_9 : f32 to vector<8x128xf32>
    %cst_10 = arith.constant 0.000000e+00 : f32
    %9 = vector.broadcast %cst_10 : f32 to vector<8x128xf32>
    %c0_11 = arith.constant 0 : index
    %c0_12 = arith.constant 0 : index
    %10 = vector.load %arg10[%c0_11, %c0_12] : memref<64x512xf32, #tpu.memory_space<vmem>>, vector<8x512xf32>
    %11 = arith.truncf %8 : vector<8x128xf32> to vector<8x128xbf16>
    %cst_13 = arith.constant dense<0.000000e+00> : vector<8x512xf32>
    %12 = tpu.matmul %11, %7, %cst_13 {dimension_numbers = #tpu.dot_dimension_numbers<[1], [0], [0], [1], [0, 0, 1, 1], [], []>} : vector<8x128xbf16>, vector<128x512xbf16>, vector<8x512xf32> -> vector<8x512xf32>
    %13 = arith.addf %10, %12 : vector<8x512xf32>
    %14 = vector.extract_strided_slice %13 {offsets = [0, 0], sizes = [8, 128], strides = [1, 1]} : vector<8x512xf32> to vector<8x128xf32>
    %15 = arith.negf %14 : vector<8x128xf32>
    %16 = math.exp %15 : vector<8x128xf32>
    %cst_14 = arith.constant 1.000000e+00 : f32
    %17 = vector.broadcast %cst_14 : f32 to vector<8x128xf32>
    %18 = arith.addf %17, %16 : vector<8x128xf32>
    %19 = arith.divf %17, %18 : vector<8x128xf32>
    %20 = vector.extract_strided_slice %13 {offsets = [0, 128], sizes = [8, 128], strides = [1, 1]} : vector<8x512xf32> to vector<8x128xf32>
    %21 = arith.negf %20 : vector<8x128xf32>
    %22 = math.exp %21 : vector<8x128xf32>
    %cst_15 = arith.constant 1.000000e+00 : f32
    %23 = vector.broadcast %cst_15 : f32 to vector<8x128xf32>
    %24 = arith.addf %23, %22 : vector<8x128xf32>
    %25 = arith.divf %23, %24 : vector<8x128xf32>
    %26 = vector.extract_strided_slice %13 {offsets = [0, 256], sizes = [8, 128], strides = [1, 1]} : vector<8x512xf32> to vector<8x128xf32>
    %27 = math.tanh %26 : vector<8x128xf32>
    %28 = vector.extract_strided_slice %13 {offsets = [0, 384], sizes = [8, 128], strides = [1, 1]} : vector<8x512xf32> to vector<8x128xf32>
    %29 = arith.negf %28 : vector<8x128xf32>
    %30 = math.exp %29 : vector<8x128xf32>
    %cst_16 = arith.constant 1.000000e+00 : f32
    %31 = vector.broadcast %cst_16 : f32 to vector<8x128xf32>
    %32 = arith.addf %31, %30 : vector<8x128xf32>
    %33 = arith.divf %31, %32 : vector<8x128xf32>
    %34 = arith.mulf %25, %9 : vector<8x128xf32>
    %35 = arith.mulf %19, %27 : vector<8x128xf32>
    %36 = arith.addf %34, %35 : vector<8x128xf32>
    %37 = math.tanh %36 : vector<8x128xf32>
    %38 = arith.mulf %33, %37 : vector<8x128xf32>
    %c0_17 = arith.constant 0 : index
    %c0_18 = arith.constant 0 : index
    %39 = vector.load %arg11[%c0_17, %c0_18] : memref<64x128xf32, #tpu.memory_space<vmem>>, vector<8x128xf32>
    tpu.vector_store %arg11[%c0_17, %c0_18], %38 {strides = array<i32>} : memref<64x128xf32, #tpu.memory_space<vmem>>, vector<8x128xf32>,
    %c8 = arith.constant 8 : index
    %c0_19 = arith.constant 0 : index
    %40 = vector.load %arg10[%c8, %c0_19] : memref<64x512xf32, #tpu.memory_space<vmem>>, vector<8x512xf32>
    %41 = arith.truncf %38 : vector<8x128xf32> to vector<8x128xbf16>
    %cst_20 = arith.constant dense<0.000000e+00> : vector<8x512xf32>
    %42 = tpu.matmul %41, %7, %cst_20 {dimension_numbers = #tpu.dot_dimension_numbers<[1], [0], [0], [1], [0, 0, 1, 1], [], []>} : vector<8x128xbf16>, vector<128x512xbf16>, vector<8x512xf32> -> vector<8x512xf32>
    %43 = arith.addf %40, %42 : vector<8x512xf32>
    %44 = vector.extract_strided_slice %43 {offsets = [0, 0], sizes = [8, 128], strides = [1, 1]} : vector<8x512xf32> to vector<8x128xf32>
    %45 = arith.negf %44 : vector<8x128xf32>
    %46 = math.exp %45 : vector<8x128xf32>
    %cst_21 = arith.constant 1.000000e+00 : f32
    %47 = vector.broadcast %cst_21 : f32 to vector<8x128xf32>
    %48 = arith.addf %47, %46 : vector<8x128xf32>
    %49 = arith.divf %47, %48 : vector<8x128xf32>
    %50 = vector.extract_strided_slice %43 {offsets = [0, 128], sizes = [8, 128], strides = [1, 1]} : vector<8x512xf32> to vector<8x128xf32>
    %51 = arith.negf %50 : vector<8x128xf32>
    %52 = math.exp %51 : vector<8x128xf32>
    %cst_22 = arith.constant 1.000000e+00 : f32
    %53 = vector.broadcast %cst_22 : f32 to vector<8x128xf32>
    %54 = arith.addf %53, %52 : vector<8x128xf32>
    %55 = arith.divf %53, %54 : vector<8x128xf32>
    %56 = vector.extract_strided_slice %43 {offsets = [0, 256], sizes = [8, 128], strides = [1, 1]} : vector<8x512xf32> to vector<8x128xf32>
    %57 = math.tanh %56 : vector<8x128xf32>
    %58 = vector.extract_strided_slice %43 {offsets = [0, 384], sizes = [8, 128], strides = [1, 1]} : vector<8x512xf32> to vector<8x128xf32>
    %59 = arith.negf %58 : vector<8x128xf32>
    %60 = math.exp %59 : vector<8x128xf32>
    %cst_23 = arith.constant 1.000000e+00 : f32
    %61 = vector.broadcast %cst_23 : f32 to vector<8x128xf32>
    %62 = arith.addf %61, %60 : vector<8x128xf32>
    %63 = arith.divf %61, %62 : vector<8x128xf32>
    %64 = arith.mulf %55, %36 : vector<8x128xf32>
    %65 = arith.mulf %49, %57 : vector<8x128xf32>
    %66 = arith.addf %64, %65 : vector<8x128xf32>
    %67 = math.tanh %66 : vector<8x128xf32>
    %68 = arith.mulf %63, %67 : vector<8x128xf32>
    %c8_24 = arith.constant 8 : index
    %c0_25 = arith.constant 0 : index
    %69 = vector.load %arg11[%c8_24, %c0_25] : memref<64x128xf32, #tpu.memory_space<vmem>>, vector<8x128xf32>
    tpu.vector_store %arg11[%c8_24, %c0_25], %68 {strides = array<i32>} : memref<64x128xf32, #tpu.memory_space<vmem>>, vector<8x128xf32>,
    %c16 = arith.constant 16 : index
    %c0_26 = arith.constant 0 : index
    %70 = vector.load %arg10[%c16, %c0_26] : memref<64x512xf32, #tpu.memory_space<vmem>>, vector<8x512xf32>
    %71 = arith.truncf %68 : vector<8x128xf32> to vector<8x128xbf16>
    %cst_27 = arith.constant dense<0.000000e+00> : vector<8x512xf32>
    %72 = tpu.matmul %71, %7, %cst_27 {dimension_numbers = #tpu.dot_dimension_numbers<[1], [0], [0], [1], [0, 0, 1, 1], [], []>} : vector<8x128xbf16>, vector<128x512xbf16>, vector<8x512xf32> -> vector<8x512xf32>
    %73 = arith.addf %70, %72 : vector<8x512xf32>
    %74 = vector.extract_strided_slice %73 {offsets = [0, 0], sizes = [8, 128], strides = [1, 1]} : vector<8x512xf32> to vector<8x128xf32>
    %75 = arith.negf %74 : vector<8x128xf32>
    %76 = math.exp %75 : vector<8x128xf32>
    %cst_28 = arith.constant 1.000000e+00 : f32
    %77 = vector.broadcast %cst_28 : f32 to vector<8x128xf32>
    %78 = arith.addf %77, %76 : vector<8x128xf32>
    %79 = arith.divf %77, %78 : vector<8x128xf32>
    %80 = vector.extract_strided_slice %73 {offsets = [0, 128], sizes = [8, 128], strides = [1, 1]} : vector<8x512xf32> to vector<8x128xf32>
    %81 = arith.negf %80 : vector<8x128xf32>
    %82 = math.exp %81 : vector<8x128xf32>
    %cst_29 = arith.constant 1.000000e+00 : f32
    %83 = vector.broadcast %cst_29 : f32 to vector<8x128xf32>
    %84 = arith.addf %83, %82 : vector<8x128xf32>
    %85 = arith.divf %83, %84 : vector<8x128xf32>
    %86 = vector.extract_strided_slice %73 {offsets = [0, 256], sizes = [8, 128], strides = [1, 1]} : vector<8x512xf32> to vector<8x128xf32>
    %87 = math.tanh %86 : vector<8x128xf32>
    %88 = vector.extract_strided_slice %73 {offsets = [0, 384], sizes = [8, 128], strides = [1, 1]} : vector<8x512xf32> to vector<8x128xf32>
    %89 = arith.negf %88 : vector<8x128xf32>
    %90 = math.exp %89 : vector<8x128xf32>
    %cst_30 = arith.constant 1.000000e+00 : f32
    %91 = vector.broadcast %cst_30 : f32 to vector<8x128xf32>
    %92 = arith.addf %91, %90 : vector<8x128xf32>
    %93 = arith.divf %91, %92 : vector<8x128xf32>
    %94 = arith.mulf %85, %66 : vector<8x128xf32>
    %95 = arith.mulf %79, %87 : vector<8x128xf32>
    %96 = arith.addf %94, %95 : vector<8x128xf32>
    %97 = math.tanh %96 : vector<8x128xf32>
    %98 = arith.mulf %93, %97 : vector<8x128xf32>
    %c16_31 = arith.constant 16 : index
    %c0_32 = arith.constant 0 : index
    %99 = vector.load %arg11[%c16_31, %c0_32] : memref<64x128xf32, #tpu.memory_space<vmem>>, vector<8x128xf32>
    tpu.vector_store %arg11[%c16_31, %c0_32], %98 {strides = array<i32>} : memref<64x128xf32, #tpu.memory_space<vmem>>, vector<8x128xf32>,
    %c24 = arith.constant 24 : index
    %c0_33 = arith.constant 0 : index
    %100 = vector.load %arg10[%c24, %c0_33] : memref<64x512xf32, #tpu.memory_space<vmem>>, vector<8x512xf32>
    %101 = arith.truncf %98 : vector<8x128xf32> to vector<8x128xbf16>
    %cst_34 = arith.constant dense<0.000000e+00> : vector<8x512xf32>
    %102 = tpu.matmul %101, %7, %cst_34 {dimension_numbers = #tpu.dot_dimension_numbers<[1], [0], [0], [1], [0, 0, 1, 1], [], []>} : vector<8x128xbf16>, vector<128x512xbf16>, vector<8x512xf32> -> vector<8x512xf32>
    %103 = arith.addf %100, %102 : vector<8x512xf32>
    %104 = vector.extract_strided_slice %103 {offsets = [0, 0], sizes = [8, 128], strides = [1, 1]} : vector<8x512xf32> to vector<8x128xf32>
    %105 = arith.negf %104 : vector<8x128xf32>
    %106 = math.exp %105 : vector<8x128xf32>
    %cst_35 = arith.constant 1.000000e+00 : f32
    %107 = vector.broadcast %cst_35 : f32 to vector<8x128xf32>
    %108 = arith.addf %107, %106 : vector<8x128xf32>
    %109 = arith.divf %107, %108 : vector<8x128xf32>
    %110 = vector.extract_strided_slice %103 {offsets = [0, 128], sizes = [8, 128], strides = [1, 1]} : vector<8x512xf32> to vector<8x128xf32>
    %111 = arith.negf %110 : vector<8x128xf32>
    %112 = math.exp %111 : vector<8x128xf32>
    %cst_36 = arith.constant 1.000000e+00 : f32
    %113 = vector.broadcast %cst_36 : f32 to vector<8x128xf32>
    %114 = arith.addf %113, %112 : vector<8x128xf32>
    %115 = arith.divf %113, %114 : vector<8x128xf32>
    %116 = vector.extract_strided_slice %103 {offsets = [0, 256], sizes = [8, 128], strides = [1, 1]} : vector<8x512xf32> to vector<8x128xf32>
    %117 = math.tanh %116 : vector<8x128xf32>
    %118 = vector.extract_strided_slice %103 {offsets = [0, 384], sizes = [8, 128], strides = [1, 1]} : vector<8x512xf32> to vector<8x128xf32>
    %119 = arith.negf %118 : vector<8x128xf32>
    %120 = math.exp %119 : vector<8x128xf32>
    %cst_37 = arith.constant 1.000000e+00 : f32
    %121 = vector.broadcast %cst_37 : f32 to vector<8x128xf32>
    %122 = arith.addf %121, %120 : vector<8x128xf32>
    %123 = arith.divf %121, %122 : vector<8x128xf32>
    %124 = arith.mulf %115, %96 : vector<8x128xf32>
    %125 = arith.mulf %109, %117 : vector<8x128xf32>
    %126 = arith.addf %124, %125 : vector<8x128xf32>
    %127 = math.tanh %126 : vector<8x128xf32>
    %128 = arith.mulf %123, %127 : vector<8x128xf32>
    %c24_38 = arith.constant 24 : index
    %c0_39 = arith.constant 0 : index
    %129 = vector.load %arg11[%c24_38, %c0_39] : memref<64x128xf32, #tpu.memory_space<vmem>>, vector<8x128xf32>
    tpu.vector_store %arg11[%c24_38, %c0_39], %128 {strides = array<i32>} : memref<64x128xf32, #tpu.memory_space<vmem>>, vector<8x128xf32>,
    %c32 = arith.constant 32 : index
    %c0_40 = arith.constant 0 : index
    %130 = vector.load %arg10[%c32, %c0_40] : memref<64x512xf32, #tpu.memory_space<vmem>>, vector<8x512xf32>
    %131 = arith.truncf %128 : vector<8x128xf32> to vector<8x128xbf16>
    %cst_41 = arith.constant dense<0.000000e+00> : vector<8x512xf32>
    %132 = tpu.matmul %131, %7, %cst_41 {dimension_numbers = #tpu.dot_dimension_numbers<[1], [0], [0], [1], [0, 0, 1, 1], [], []>} : vector<8x128xbf16>, vector<128x512xbf16>, vector<8x512xf32> -> vector<8x512xf32>
    %133 = arith.addf %130, %132 : vector<8x512xf32>
    %134 = vector.extract_strided_slice %133 {offsets = [0, 0], sizes = [8, 128], strides = [1, 1]} : vector<8x512xf32> to vector<8x128xf32>
    %135 = arith.negf %134 : vector<8x128xf32>
    %136 = math.exp %135 : vector<8x128xf32>
    %cst_42 = arith.constant 1.000000e+00 : f32
    %137 = vector.broadcast %cst_42 : f32 to vector<8x128xf32>
    %138 = arith.addf %137, %136 : vector<8x128xf32>
    %139 = arith.divf %137, %138 : vector<8x128xf32>
    %140 = vector.extract_strided_slice %133 {offsets = [0, 128], sizes = [8, 128], strides = [1, 1]} : vector<8x512xf32> to vector<8x128xf32>
    %141 = arith.negf %140 : vector<8x128xf32>
    %142 = math.exp %141 : vector<8x128xf32>
    %cst_43 = arith.constant 1.000000e+00 : f32
    %143 = vector.broadcast %cst_43 : f32 to vector<8x128xf32>
    %144 = arith.addf %143, %142 : vector<8x128xf32>
    %145 = arith.divf %143, %144 : vector<8x128xf32>
    %146 = vector.extract_strided_slice %133 {offsets = [0, 256], sizes = [8, 128], strides = [1, 1]} : vector<8x512xf32> to vector<8x128xf32>
    %147 = math.tanh %146 : vector<8x128xf32>
    %148 = vector.extract_strided_slice %133 {offsets = [0, 384], sizes = [8, 128], strides = [1, 1]} : vector<8x512xf32> to vector<8x128xf32>
    %149 = arith.negf %148 : vector<8x128xf32>
    %150 = math.exp %149 : vector<8x128xf32>
    %cst_44 = arith.constant 1.000000e+00 : f32
    %151 = vector.broadcast %cst_44 : f32 to vector<8x128xf32>
    %152 = arith.addf %151, %150 : vector<8x128xf32>
    %153 = arith.divf %151, %152 : vector<8x128xf32>
    %154 = arith.mulf %145, %126 : vector<8x128xf32>
    %155 = arith.mulf %139, %147 : vector<8x128xf32>
    %156 = arith.addf %154, %155 : vector<8x128xf32>
    %157 = math.tanh %156 : vector<8x128xf32>
    %158 = arith.mulf %153, %157 : vector<8x128xf32>
    %c32_45 = arith.constant 32 : index
    %c0_46 = arith.constant 0 : index
    %159 = vector.load %arg11[%c32_45, %c0_46] : memref<64x128xf32, #tpu.memory_space<vmem>>, vector<8x128xf32>
    tpu.vector_store %arg11[%c32_45, %c0_46], %158 {strides = array<i32>} : memref<64x128xf32, #tpu.memory_space<vmem>>, vector<8x128xf32>,
    %c40 = arith.constant 40 : index
    %c0_47 = arith.constant 0 : index
    %160 = vector.load %arg10[%c40, %c0_47] : memref<64x512xf32, #tpu.memory_space<vmem>>, vector<8x512xf32>
    %161 = arith.truncf %158 : vector<8x128xf32> to vector<8x128xbf16>
    %cst_48 = arith.constant dense<0.000000e+00> : vector<8x512xf32>
    %162 = tpu.matmul %161, %7, %cst_48 {dimension_numbers = #tpu.dot_dimension_numbers<[1], [0], [0], [1], [0, 0, 1, 1], [], []>} : vector<8x128xbf16>, vector<128x512xbf16>, vector<8x512xf32> -> vector<8x512xf32>
    %163 = arith.addf %160, %162 : vector<8x512xf32>
    %164 = vector.extract_strided_slice %163 {offsets = [0, 0], sizes = [8, 128], strides = [1, 1]} : vector<8x512xf32> to vector<8x128xf32>
    %165 = arith.negf %164 : vector<8x128xf32>
    %166 = math.exp %165 : vector<8x128xf32>
    %cst_49 = arith.constant 1.000000e+00 : f32
    %167 = vector.broadcast %cst_49 : f32 to vector<8x128xf32>
    %168 = arith.addf %167, %166 : vector<8x128xf32>
    %169 = arith.divf %167, %168 : vector<8x128xf32>
    %170 = vector.extract_strided_slice %163 {offsets = [0, 128], sizes = [8, 128], strides = [1, 1]} : vector<8x512xf32> to vector<8x128xf32>
    %171 = arith.negf %170 : vector<8x128xf32>
    %172 = math.exp %171 : vector<8x128xf32>
    %cst_50 = arith.constant 1.000000e+00 : f32
    %173 = vector.broadcast %cst_50 : f32 to vector<8x128xf32>
    %174 = arith.addf %173, %172 : vector<8x128xf32>
    %175 = arith.divf %173, %174 : vector<8x128xf32>
    %176 = vector.extract_strided_slice %163 {offsets = [0, 256], sizes = [8, 128], strides = [1, 1]} : vector<8x512xf32> to vector<8x128xf32>
    %177 = math.tanh %176 : vector<8x128xf32>
    %178 = vector.extract_strided_slice %163 {offsets = [0, 384], sizes = [8, 128], strides = [1, 1]} : vector<8x512xf32> to vector<8x128xf32>
    %179 = arith.negf %178 : vector<8x128xf32>
    %180 = math.exp %179 : vector<8x128xf32>
    %cst_51 = arith.constant 1.000000e+00 : f32
    %181 = vector.broadcast %cst_51 : f32 to vector<8x128xf32>
    %182 = arith.addf %181, %180 : vector<8x128xf32>
    %183 = arith.divf %181, %182 : vector<8x128xf32>
    %184 = arith.mulf %175, %156 : vector<8x128xf32>
    %185 = arith.mulf %169, %177 : vector<8x128xf32>
    %186 = arith.addf %184, %185 : vector<8x128xf32>
    %187 = math.tanh %186 : vector<8x128xf32>
    %188 = arith.mulf %183, %187 : vector<8x128xf32>
    %c40_52 = arith.constant 40 : index
    %c0_53 = arith.constant 0 : index
    %189 = vector.load %arg11[%c40_52, %c0_53] : memref<64x128xf32, #tpu.memory_space<vmem>>, vector<8x128xf32>
    tpu.vector_store %arg11[%c40_52, %c0_53], %188 {strides = array<i32>} : memref<64x128xf32, #tpu.memory_space<vmem>>, vector<8x128xf32>,
    %c48 = arith.constant 48 : index
    %c0_54 = arith.constant 0 : index
    %190 = vector.load %arg10[%c48, %c0_54] : memref<64x512xf32, #tpu.memory_space<vmem>>, vector<8x512xf32>
    %191 = arith.truncf %188 : vector<8x128xf32> to vector<8x128xbf16>
    %cst_55 = arith.constant dense<0.000000e+00> : vector<8x512xf32>
    %192 = tpu.matmul %191, %7, %cst_55 {dimension_numbers = #tpu.dot_dimension_numbers<[1], [0], [0], [1], [0, 0, 1, 1], [], []>} : vector<8x128xbf16>, vector<128x512xbf16>, vector<8x512xf32> -> vector<8x512xf32>
    %193 = arith.addf %190, %192 : vector<8x512xf32>
    %194 = vector.extract_strided_slice %193 {offsets = [0, 0], sizes = [8, 128], strides = [1, 1]} : vector<8x512xf32> to vector<8x128xf32>
    %195 = arith.negf %194 : vector<8x128xf32>
    %196 = math.exp %195 : vector<8x128xf32>
    %cst_56 = arith.constant 1.000000e+00 : f32
    %197 = vector.broadcast %cst_56 : f32 to vector<8x128xf32>
    %198 = arith.addf %197, %196 : vector<8x128xf32>
    %199 = arith.divf %197, %198 : vector<8x128xf32>
    %200 = vector.extract_strided_slice %193 {offsets = [0, 128], sizes = [8, 128], strides = [1, 1]} : vector<8x512xf32> to vector<8x128xf32>
    %201 = arith.negf %200 : vector<8x128xf32>
    %202 = math.exp %201 : vector<8x128xf32>
    %cst_57 = arith.constant 1.000000e+00 : f32
    %203 = vector.broadcast %cst_57 : f32 to vector<8x128xf32>
    %204 = arith.addf %203, %202 : vector<8x128xf32>
    %205 = arith.divf %203, %204 : vector<8x128xf32>
    %206 = vector.extract_strided_slice %193 {offsets = [0, 256], sizes = [8, 128], strides = [1, 1]} : vector<8x512xf32> to vector<8x128xf32>
    %207 = math.tanh %206 : vector<8x128xf32>
    %208 = vector.extract_strided_slice %193 {offsets = [0, 384], sizes = [8, 128], strides = [1, 1]} : vector<8x512xf32> to vector<8x128xf32>
    %209 = arith.negf %208 : vector<8x128xf32>
    %210 = math.exp %209 : vector<8x128xf32>
    %cst_58 = arith.constant 1.000000e+00 : f32
    %211 = vector.broadcast %cst_58 : f32 to vector<8x128xf32>
    %212 = arith.addf %211, %210 : vector<8x128xf32>
    %213 = arith.divf %211, %212 : vector<8x128xf32>
    %214 = arith.mulf %205, %186 : vector<8x128xf32>
    %215 = arith.mulf %199, %207 : vector<8x128xf32>
    %216 = arith.addf %214, %215 : vector<8x128xf32>
    %217 = math.tanh %216 : vector<8x128xf32>
    %218 = arith.mulf %213, %217 : vector<8x128xf32>
    %c48_59 = arith.constant 48 : index
    %c0_60 = arith.constant 0 : index
    %219 = vector.load %arg11[%c48_59, %c0_60] : memref<64x128xf32, #tpu.memory_space<vmem>>, vector<8x128xf32>
    tpu.vector_store %arg11[%c48_59, %c0_60], %218 {strides = array<i32>} : memref<64x128xf32, #tpu.memory_space<vmem>>, vector<8x128xf32>,
    %c56 = arith.constant 56 : index
    %c0_61 = arith.constant 0 : index
    %220 = vector.load %arg10[%c56, %c0_61] : memref<64x512xf32, #tpu.memory_space<vmem>>, vector<8x512xf32>
    %221 = arith.truncf %218 : vector<8x128xf32> to vector<8x128xbf16>
    %cst_62 = arith.constant dense<0.000000e+00> : vector<8x512xf32>
    %222 = tpu.matmul %221, %7, %cst_62 {dimension_numbers = #tpu.dot_dimension_numbers<[1], [0], [0], [1], [0, 0, 1, 1], [], []>} : vector<8x128xbf16>, vector<128x512xbf16>, vector<8x512xf32> -> vector<8x512xf32>
    %223 = arith.addf %220, %222 : vector<8x512xf32>
    %224 = vector.extract_strided_slice %223 {offsets = [0, 0], sizes = [8, 128], strides = [1, 1]} : vector<8x512xf32> to vector<8x128xf32>
    %225 = arith.negf %224 : vector<8x128xf32>
    %226 = math.exp %225 : vector<8x128xf32>
    %cst_63 = arith.constant 1.000000e+00 : f32
    %227 = vector.broadcast %cst_63 : f32 to vector<8x128xf32>
    %228 = arith.addf %227, %226 : vector<8x128xf32>
    %229 = arith.divf %227, %228 : vector<8x128xf32>
    %230 = vector.extract_strided_slice %223 {offsets = [0, 128], sizes = [8, 128], strides = [1, 1]} : vector<8x512xf32> to vector<8x128xf32>
    %231 = arith.negf %230 : vector<8x128xf32>
    %232 = math.exp %231 : vector<8x128xf32>
    %cst_64 = arith.constant 1.000000e+00 : f32
    %233 = vector.broadcast %cst_64 : f32 to vector<8x128xf32>
    %234 = arith.addf %233, %232 : vector<8x128xf32>
    %235 = arith.divf %233, %234 : vector<8x128xf32>
    %236 = vector.extract_strided_slice %223 {offsets = [0, 256], sizes = [8, 128], strides = [1, 1]} : vector<8x512xf32> to vector<8x128xf32>
    %237 = math.tanh %236 : vector<8x128xf32>
    %238 = vector.extract_strided_slice %223 {offsets = [0, 384], sizes = [8, 128], strides = [1, 1]} : vector<8x512xf32> to vector<8x128xf32>
    %239 = arith.negf %238 : vector<8x128xf32>
    %240 = math.exp %239 : vector<8x128xf32>
    %cst_65 = arith.constant 1.000000e+00 : f32
    %241 = vector.broadcast %cst_65 : f32 to vector<8x128xf32>
    %242 = arith.addf %241, %240 : vector<8x128xf32>
    %243 = arith.divf %241, %242 : vector<8x128xf32>
    %244 = arith.mulf %235, %216 : vector<8x128xf32>
    %245 = arith.mulf %229, %237 : vector<8x128xf32>
    %246 = arith.addf %244, %245 : vector<8x128xf32>
    %247 = math.tanh %246 : vector<8x128xf32>
    %248 = arith.mulf %243, %247 : vector<8x128xf32>
    %c56_66 = arith.constant 56 : index
    %c0_67 = arith.constant 0 : index
    %249 = vector.load %arg11[%c56_66, %c0_67] : memref<64x128xf32, #tpu.memory_space<vmem>>, vector<8x128xf32>
    tpu.vector_store %arg11[%c56_66, %c0_67], %248 {strides = array<i32>} : memref<64x128xf32, #tpu.memory_space<vmem>>, vector<8x128xf32>,
    %c0_68 = arith.constant 0 : index
    %c0_69 = arith.constant 0 : index
    %250 = vector.load %arg11[%c0_68, %c0_69] : memref<64x128xf32, #tpu.memory_space<vmem>>, vector<64x128xf32>
    %251 = arith.truncf %250 : vector<64x128xf32> to vector<64x128xbf16>
    %c0_70 = arith.constant 0 : index
    %c0_71 = arith.constant 0 : index
    %252 = vector.load %arg4[%c0_70, %c0_71] : memref<128x512xbf16, #tpu.memory_space<vmem>>, vector<128x512xbf16>
    %cst_72 = arith.constant dense<0.000000e+00> : vector<64x512xf32>
    %253 = tpu.matmul %251, %252, %cst_72 {dimension_numbers = #tpu.dot_dimension_numbers<[1], [0], [0], [1], [0, 0, 1, 1], [], []>} : vector<64x128xbf16>, vector<128x512xbf16>, vector<64x512xf32> -> vector<64x512xf32>
    %c0_73 = arith.constant 0 : index
    %c0_74 = arith.constant 0 : index
    %254 = vector.load %arg6[%c0_73, %c0_74] : memref<1x512xf32, #tpu.memory_space<vmem>>, vector<1x512xf32>
    %255 = vector.broadcast %254 : vector<1x512xf32> to vector<64x512xf32>
    %256 = arith.addf %253, %255 : vector<64x512xf32>
    %c0_75 = arith.constant 0 : index
    %c0_76 = arith.constant 0 : index
    %257 = vector.load %arg10[%c0_75, %c0_76] : memref<64x512xf32, #tpu.memory_space<vmem>>, vector<64x512xf32>
    tpu.vector_store %arg10[%c0_75, %c0_76], %256 {strides = array<i32>} : memref<64x512xf32, #tpu.memory_space<vmem>>, vector<64x512xf32>,
    %c0_77 = arith.constant 0 : index
    %c0_78 = arith.constant 0 : index
    %258 = vector.load %arg5[%c0_77, %c0_78] : memref<128x512xbf16, #tpu.memory_space<vmem>>, vector<128x512xbf16>
    %cst_79 = arith.constant 0.000000e+00 : f32
    %259 = vector.broadcast %cst_79 : f32 to vector<8x128xf32>
    %cst_80 = arith.constant 0.000000e+00 : f32
    %260 = vector.broadcast %cst_80 : f32 to vector<8x128xf32>
    %c0_81 = arith.constant 0 : index
    %c0_82 = arith.constant 0 : index
    %261 = vector.load %arg10[%c0_81, %c0_82] : memref<64x512xf32, #tpu.memory_space<vmem>>, vector<8x512xf32>
    %262 = arith.truncf %259 : vector<8x128xf32> to vector<8x128xbf16>
    %cst_83 = arith.constant dense<0.000000e+00> : vector<8x512xf32>
    %263 = tpu.matmul %262, %258, %cst_83 {dimension_numbers = #tpu.dot_dimension_numbers<[1], [0], [0], [1], [0, 0, 1, 1], [], []>} : vector<8x128xbf16>, vector<128x512xbf16>, vector<8x512xf32> -> vector<8x512xf32>
    %264 = arith.addf %261, %263 : vector<8x512xf32>
    %265 = vector.extract_strided_slice %264 {offsets = [0, 0], sizes = [8, 128], strides = [1, 1]} : vector<8x512xf32> to vector<8x128xf32>
    %266 = arith.negf %265 : vector<8x128xf32>
    %267 = math.exp %266 : vector<8x128xf32>
    %cst_84 = arith.constant 1.000000e+00 : f32
    %268 = vector.broadcast %cst_84 : f32 to vector<8x128xf32>
    %269 = arith.addf %268, %267 : vector<8x128xf32>
    %270 = arith.divf %268, %269 : vector<8x128xf32>
    %271 = vector.extract_strided_slice %264 {offsets = [0, 128], sizes = [8, 128], strides = [1, 1]} : vector<8x512xf32> to vector<8x128xf32>
    %272 = arith.negf %271 : vector<8x128xf32>
    %273 = math.exp %272 : vector<8x128xf32>
    %cst_85 = arith.constant 1.000000e+00 : f32
    %274 = vector.broadcast %cst_85 : f32 to vector<8x128xf32>
    %275 = arith.addf %274, %273 : vector<8x128xf32>
    %276 = arith.divf %274, %275 : vector<8x128xf32>
    %277 = vector.extract_strided_slice %264 {offsets = [0, 256], sizes = [8, 128], strides = [1, 1]} : vector<8x512xf32> to vector<8x128xf32>
    %278 = math.tanh %277 : vector<8x128xf32>
    %279 = vector.extract_strided_slice %264 {offsets = [0, 384], sizes = [8, 128], strides = [1, 1]} : vector<8x512xf32> to vector<8x128xf32>
    %280 = arith.negf %279 : vector<8x128xf32>
    %281 = math.exp %280 : vector<8x128xf32>
    %cst_86 = arith.constant 1.000000e+00 : f32
    %282 = vector.broadcast %cst_86 : f32 to vector<8x128xf32>
    %283 = arith.addf %282, %281 : vector<8x128xf32>
    %284 = arith.divf %282, %283 : vector<8x128xf32>
    %285 = arith.mulf %276, %260 : vector<8x128xf32>
    %286 = arith.mulf %270, %278 : vector<8x128xf32>
    %287 = arith.addf %285, %286 : vector<8x128xf32>
    %288 = math.tanh %287 : vector<8x128xf32>
    %289 = arith.mulf %284, %288 : vector<8x128xf32>
    %c8_87 = arith.constant 8 : index
    %c0_88 = arith.constant 0 : index
    %290 = vector.load %arg10[%c8_87, %c0_88] : memref<64x512xf32, #tpu.memory_space<vmem>>, vector<8x512xf32>
    %291 = arith.truncf %289 : vector<8x128xf32> to vector<8x128xbf16>
    %cst_89 = arith.constant dense<0.000000e+00> : vector<8x512xf32>
    %292 = tpu.matmul %291, %258, %cst_89 {dimension_numbers = #tpu.dot_dimension_numbers<[1], [0], [0], [1], [0, 0, 1, 1], [], []>} : vector<8x128xbf16>, vector<128x512xbf16>, vector<8x512xf32> -> vector<8x512xf32>
    %293 = arith.addf %290, %292 : vector<8x512xf32>
    %294 = vector.extract_strided_slice %293 {offsets = [0, 0], sizes = [8, 128], strides = [1, 1]} : vector<8x512xf32> to vector<8x128xf32>
    %295 = arith.negf %294 : vector<8x128xf32>
    %296 = math.exp %295 : vector<8x128xf32>
    %cst_90 = arith.constant 1.000000e+00 : f32
    %297 = vector.broadcast %cst_90 : f32 to vector<8x128xf32>
    %298 = arith.addf %297, %296 : vector<8x128xf32>
    %299 = arith.divf %297, %298 : vector<8x128xf32>
    %300 = vector.extract_strided_slice %293 {offsets = [0, 128], sizes = [8, 128], strides = [1, 1]} : vector<8x512xf32> to vector<8x128xf32>
    %301 = arith.negf %300 : vector<8x128xf32>
    %302 = math.exp %301 : vector<8x128xf32>
    %cst_91 = arith.constant 1.000000e+00 : f32
    %303 = vector.broadcast %cst_91 : f32 to vector<8x128xf32>
    %304 = arith.addf %303, %302 : vector<8x128xf32>
    %305 = arith.divf %303, %304 : vector<8x128xf32>
    %306 = vector.extract_strided_slice %293 {offsets = [0, 256], sizes = [8, 128], strides = [1, 1]} : vector<8x512xf32> to vector<8x128xf32>
    %307 = math.tanh %306 : vector<8x128xf32>
    %308 = vector.extract_strided_slice %293 {offsets = [0, 384], sizes = [8, 128], strides = [1, 1]} : vector<8x512xf32> to vector<8x128xf32>
    %309 = arith.negf %308 : vector<8x128xf32>
    %310 = math.exp %309 : vector<8x128xf32>
    %cst_92 = arith.constant 1.000000e+00 : f32
    %311 = vector.broadcast %cst_92 : f32 to vector<8x128xf32>
    %312 = arith.addf %311, %310 : vector<8x128xf32>
    %313 = arith.divf %311, %312 : vector<8x128xf32>
    %314 = arith.mulf %305, %287 : vector<8x128xf32>
    %315 = arith.mulf %299, %307 : vector<8x128xf32>
    %316 = arith.addf %314, %315 : vector<8x128xf32>
    %317 = math.tanh %316 : vector<8x128xf32>
    %318 = arith.mulf %313, %317 : vector<8x128xf32>
    %c16_93 = arith.constant 16 : index
    %c0_94 = arith.constant 0 : index
    %319 = vector.load %arg10[%c16_93, %c0_94] : memref<64x512xf32, #tpu.memory_space<vmem>>, vector<8x512xf32>
    %320 = arith.truncf %318 : vector<8x128xf32> to vector<8x128xbf16>
    %cst_95 = arith.constant dense<0.000000e+00> : vector<8x512xf32>
    %321 = tpu.matmul %320, %258, %cst_95 {dimension_numbers = #tpu.dot_dimension_numbers<[1], [0], [0], [1], [0, 0, 1, 1], [], []>} : vector<8x128xbf16>, vector<128x512xbf16>, vector<8x512xf32> -> vector<8x512xf32>
    %322 = arith.addf %319, %321 : vector<8x512xf32>
    %323 = vector.extract_strided_slice %322 {offsets = [0, 0], sizes = [8, 128], strides = [1, 1]} : vector<8x512xf32> to vector<8x128xf32>
    %324 = arith.negf %323 : vector<8x128xf32>
    %325 = math.exp %324 : vector<8x128xf32>
    %cst_96 = arith.constant 1.000000e+00 : f32
    %326 = vector.broadcast %cst_96 : f32 to vector<8x128xf32>
    %327 = arith.addf %326, %325 : vector<8x128xf32>
    %328 = arith.divf %326, %327 : vector<8x128xf32>
    %329 = vector.extract_strided_slice %322 {offsets = [0, 128], sizes = [8, 128], strides = [1, 1]} : vector<8x512xf32> to vector<8x128xf32>
    %330 = arith.negf %329 : vector<8x128xf32>
    %331 = math.exp %330 : vector<8x128xf32>
    %cst_97 = arith.constant 1.000000e+00 : f32
    %332 = vector.broadcast %cst_97 : f32 to vector<8x128xf32>
    %333 = arith.addf %332, %331 : vector<8x128xf32>
    %334 = arith.divf %332, %333 : vector<8x128xf32>
    %335 = vector.extract_strided_slice %322 {offsets = [0, 256], sizes = [8, 128], strides = [1, 1]} : vector<8x512xf32> to vector<8x128xf32>
    %336 = math.tanh %335 : vector<8x128xf32>
    %337 = vector.extract_strided_slice %322 {offsets = [0, 384], sizes = [8, 128], strides = [1, 1]} : vector<8x512xf32> to vector<8x128xf32>
    %338 = arith.negf %337 : vector<8x128xf32>
    %339 = math.exp %338 : vector<8x128xf32>
    %cst_98 = arith.constant 1.000000e+00 : f32
    %340 = vector.broadcast %cst_98 : f32 to vector<8x128xf32>
    %341 = arith.addf %340, %339 : vector<8x128xf32>
    %342 = arith.divf %340, %341 : vector<8x128xf32>
    %343 = arith.mulf %334, %316 : vector<8x128xf32>
    %344 = arith.mulf %328, %336 : vector<8x128xf32>
    %345 = arith.addf %343, %344 : vector<8x128xf32>
    %346 = math.tanh %345 : vector<8x128xf32>
    %347 = arith.mulf %342, %346 : vector<8x128xf32>
    %c24_99 = arith.constant 24 : index
    %c0_100 = arith.constant 0 : index
    %348 = vector.load %arg10[%c24_99, %c0_100] : memref<64x512xf32, #tpu.memory_space<vmem>>, vector<8x512xf32>
    %349 = arith.truncf %347 : vector<8x128xf32> to vector<8x128xbf16>
    %cst_101 = arith.constant dense<0.000000e+00> : vector<8x512xf32>
    %350 = tpu.matmul %349, %258, %cst_101 {dimension_numbers = #tpu.dot_dimension_numbers<[1], [0], [0], [1], [0, 0, 1, 1], [], []>} : vector<8x128xbf16>, vector<128x512xbf16>, vector<8x512xf32> -> vector<8x512xf32>
    %351 = arith.addf %348, %350 : vector<8x512xf32>
    %352 = vector.extract_strided_slice %351 {offsets = [0, 0], sizes = [8, 128], strides = [1, 1]} : vector<8x512xf32> to vector<8x128xf32>
    %353 = arith.negf %352 : vector<8x128xf32>
    %354 = math.exp %353 : vector<8x128xf32>
    %cst_102 = arith.constant 1.000000e+00 : f32
    %355 = vector.broadcast %cst_102 : f32 to vector<8x128xf32>
    %356 = arith.addf %355, %354 : vector<8x128xf32>
    %357 = arith.divf %355, %356 : vector<8x128xf32>
    %358 = vector.extract_strided_slice %351 {offsets = [0, 128], sizes = [8, 128], strides = [1, 1]} : vector<8x512xf32> to vector<8x128xf32>
    %359 = arith.negf %358 : vector<8x128xf32>
    %360 = math.exp %359 : vector<8x128xf32>
    %cst_103 = arith.constant 1.000000e+00 : f32
    %361 = vector.broadcast %cst_103 : f32 to vector<8x128xf32>
    %362 = arith.addf %361, %360 : vector<8x128xf32>
    %363 = arith.divf %361, %362 : vector<8x128xf32>
    %364 = vector.extract_strided_slice %351 {offsets = [0, 256], sizes = [8, 128], strides = [1, 1]} : vector<8x512xf32> to vector<8x128xf32>
    %365 = math.tanh %364 : vector<8x128xf32>
    %366 = vector.extract_strided_slice %351 {offsets = [0, 384], sizes = [8, 128], strides = [1, 1]} : vector<8x512xf32> to vector<8x128xf32>
    %367 = arith.negf %366 : vector<8x128xf32>
    %368 = math.exp %367 : vector<8x128xf32>
    %cst_104 = arith.constant 1.000000e+00 : f32
    %369 = vector.broadcast %cst_104 : f32 to vector<8x128xf32>
    %370 = arith.addf %369, %368 : vector<8x128xf32>
    %371 = arith.divf %369, %370 : vector<8x128xf32>
    %372 = arith.mulf %363, %345 : vector<8x128xf32>
    %373 = arith.mulf %357, %365 : vector<8x128xf32>
    %374 = arith.addf %372, %373 : vector<8x128xf32>
    %375 = math.tanh %374 : vector<8x128xf32>
    %376 = arith.mulf %371, %375 : vector<8x128xf32>
    %c32_105 = arith.constant 32 : index
    %c0_106 = arith.constant 0 : index
    %377 = vector.load %arg10[%c32_105, %c0_106] : memref<64x512xf32, #tpu.memory_space<vmem>>, vector<8x512xf32>
    %378 = arith.truncf %376 : vector<8x128xf32> to vector<8x128xbf16>
    %cst_107 = arith.constant dense<0.000000e+00> : vector<8x512xf32>
    %379 = tpu.matmul %378, %258, %cst_107 {dimension_numbers = #tpu.dot_dimension_numbers<[1], [0], [0], [1], [0, 0, 1, 1], [], []>} : vector<8x128xbf16>, vector<128x512xbf16>, vector<8x512xf32> -> vector<8x512xf32>
    %380 = arith.addf %377, %379 : vector<8x512xf32>
    %381 = vector.extract_strided_slice %380 {offsets = [0, 0], sizes = [8, 128], strides = [1, 1]} : vector<8x512xf32> to vector<8x128xf32>
    %382 = arith.negf %381 : vector<8x128xf32>
    %383 = math.exp %382 : vector<8x128xf32>
    %cst_108 = arith.constant 1.000000e+00 : f32
    %384 = vector.broadcast %cst_108 : f32 to vector<8x128xf32>
    %385 = arith.addf %384, %383 : vector<8x128xf32>
    %386 = arith.divf %384, %385 : vector<8x128xf32>
    %387 = vector.extract_strided_slice %380 {offsets = [0, 128], sizes = [8, 128], strides = [1, 1]} : vector<8x512xf32> to vector<8x128xf32>
    %388 = arith.negf %387 : vector<8x128xf32>
    %389 = math.exp %388 : vector<8x128xf32>
    %cst_109 = arith.constant 1.000000e+00 : f32
    %390 = vector.broadcast %cst_109 : f32 to vector<8x128xf32>
    %391 = arith.addf %390, %389 : vector<8x128xf32>
    %392 = arith.divf %390, %391 : vector<8x128xf32>
    %393 = vector.extract_strided_slice %380 {offsets = [0, 256], sizes = [8, 128], strides = [1, 1]} : vector<8x512xf32> to vector<8x128xf32>
    %394 = math.tanh %393 : vector<8x128xf32>
    %395 = vector.extract_strided_slice %380 {offsets = [0, 384], sizes = [8, 128], strides = [1, 1]} : vector<8x512xf32> to vector<8x128xf32>
    %396 = arith.negf %395 : vector<8x128xf32>
    %397 = math.exp %396 : vector<8x128xf32>
    %cst_110 = arith.constant 1.000000e+00 : f32
    %398 = vector.broadcast %cst_110 : f32 to vector<8x128xf32>
    %399 = arith.addf %398, %397 : vector<8x128xf32>
    %400 = arith.divf %398, %399 : vector<8x128xf32>
    %401 = arith.mulf %392, %374 : vector<8x128xf32>
    %402 = arith.mulf %386, %394 : vector<8x128xf32>
    %403 = arith.addf %401, %402 : vector<8x128xf32>
    %404 = math.tanh %403 : vector<8x128xf32>
    %405 = arith.mulf %400, %404 : vector<8x128xf32>
    %c40_111 = arith.constant 40 : index
    %c0_112 = arith.constant 0 : index
    %406 = vector.load %arg10[%c40_111, %c0_112] : memref<64x512xf32, #tpu.memory_space<vmem>>, vector<8x512xf32>
    %407 = arith.truncf %405 : vector<8x128xf32> to vector<8x128xbf16>
    %cst_113 = arith.constant dense<0.000000e+00> : vector<8x512xf32>
    %408 = tpu.matmul %407, %258, %cst_113 {dimension_numbers = #tpu.dot_dimension_numbers<[1], [0], [0], [1], [0, 0, 1, 1], [], []>} : vector<8x128xbf16>, vector<128x512xbf16>, vector<8x512xf32> -> vector<8x512xf32>
    %409 = arith.addf %406, %408 : vector<8x512xf32>
    %410 = vector.extract_strided_slice %409 {offsets = [0, 0], sizes = [8, 128], strides = [1, 1]} : vector<8x512xf32> to vector<8x128xf32>
    %411 = arith.negf %410 : vector<8x128xf32>
    %412 = math.exp %411 : vector<8x128xf32>
    %cst_114 = arith.constant 1.000000e+00 : f32
    %413 = vector.broadcast %cst_114 : f32 to vector<8x128xf32>
    %414 = arith.addf %413, %412 : vector<8x128xf32>
    %415 = arith.divf %413, %414 : vector<8x128xf32>
    %416 = vector.extract_strided_slice %409 {offsets = [0, 128], sizes = [8, 128], strides = [1, 1]} : vector<8x512xf32> to vector<8x128xf32>
    %417 = arith.negf %416 : vector<8x128xf32>
    %418 = math.exp %417 : vector<8x128xf32>
    %cst_115 = arith.constant 1.000000e+00 : f32
    %419 = vector.broadcast %cst_115 : f32 to vector<8x128xf32>
    %420 = arith.addf %419, %418 : vector<8x128xf32>
    %421 = arith.divf %419, %420 : vector<8x128xf32>
    %422 = vector.extract_strided_slice %409 {offsets = [0, 256], sizes = [8, 128], strides = [1, 1]} : vector<8x512xf32> to vector<8x128xf32>
    %423 = math.tanh %422 : vector<8x128xf32>
    %424 = vector.extract_strided_slice %409 {offsets = [0, 384], sizes = [8, 128], strides = [1, 1]} : vector<8x512xf32> to vector<8x128xf32>
    %425 = arith.negf %424 : vector<8x128xf32>
    %426 = math.exp %425 : vector<8x128xf32>
    %cst_116 = arith.constant 1.000000e+00 : f32
    %427 = vector.broadcast %cst_116 : f32 to vector<8x128xf32>
    %428 = arith.addf %427, %426 : vector<8x128xf32>
    %429 = arith.divf %427, %428 : vector<8x128xf32>
    %430 = arith.mulf %421, %403 : vector<8x128xf32>
    %431 = arith.mulf %415, %423 : vector<8x128xf32>
    %432 = arith.addf %430, %431 : vector<8x128xf32>
    %433 = math.tanh %432 : vector<8x128xf32>
    %434 = arith.mulf %429, %433 : vector<8x128xf32>
    %c48_117 = arith.constant 48 : index
    %c0_118 = arith.constant 0 : index
    %435 = vector.load %arg10[%c48_117, %c0_118] : memref<64x512xf32, #tpu.memory_space<vmem>>, vector<8x512xf32>
    %436 = arith.truncf %434 : vector<8x128xf32> to vector<8x128xbf16>
    %cst_119 = arith.constant dense<0.000000e+00> : vector<8x512xf32>
    %437 = tpu.matmul %436, %258, %cst_119 {dimension_numbers = #tpu.dot_dimension_numbers<[1], [0], [0], [1], [0, 0, 1, 1], [], []>} : vector<8x128xbf16>, vector<128x512xbf16>, vector<8x512xf32> -> vector<8x512xf32>
    %438 = arith.addf %435, %437 : vector<8x512xf32>
    %439 = vector.extract_strided_slice %438 {offsets = [0, 0], sizes = [8, 128], strides = [1, 1]} : vector<8x512xf32> to vector<8x128xf32>
    %440 = arith.negf %439 : vector<8x128xf32>
    %441 = math.exp %440 : vector<8x128xf32>
    %cst_120 = arith.constant 1.000000e+00 : f32
    %442 = vector.broadcast %cst_120 : f32 to vector<8x128xf32>
    %443 = arith.addf %442, %441 : vector<8x128xf32>
    %444 = arith.divf %442, %443 : vector<8x128xf32>
    %445 = vector.extract_strided_slice %438 {offsets = [0, 128], sizes = [8, 128], strides = [1, 1]} : vector<8x512xf32> to vector<8x128xf32>
    %446 = arith.negf %445 : vector<8x128xf32>
    %447 = math.exp %446 : vector<8x128xf32>
    %cst_121 = arith.constant 1.000000e+00 : f32
    %448 = vector.broadcast %cst_121 : f32 to vector<8x128xf32>
    %449 = arith.addf %448, %447 : vector<8x128xf32>
    %450 = arith.divf %448, %449 : vector<8x128xf32>
    %451 = vector.extract_strided_slice %438 {offsets = [0, 256], sizes = [8, 128], strides = [1, 1]} : vector<8x512xf32> to vector<8x128xf32>
    %452 = math.tanh %451 : vector<8x128xf32>
    %453 = vector.extract_strided_slice %438 {offsets = [0, 384], sizes = [8, 128], strides = [1, 1]} : vector<8x512xf32> to vector<8x128xf32>
    %454 = arith.negf %453 : vector<8x128xf32>
    %455 = math.exp %454 : vector<8x128xf32>
    %cst_122 = arith.constant 1.000000e+00 : f32
    %456 = vector.broadcast %cst_122 : f32 to vector<8x128xf32>
    %457 = arith.addf %456, %455 : vector<8x128xf32>
    %458 = arith.divf %456, %457 : vector<8x128xf32>
    %459 = arith.mulf %450, %432 : vector<8x128xf32>
    %460 = arith.mulf %444, %452 : vector<8x128xf32>
    %461 = arith.addf %459, %460 : vector<8x128xf32>
    %462 = math.tanh %461 : vector<8x128xf32>
    %463 = arith.mulf %458, %462 : vector<8x128xf32>
    %c56_123 = arith.constant 56 : index
    %c0_124 = arith.constant 0 : index
    %464 = vector.load %arg10[%c56_123, %c0_124] : memref<64x512xf32, #tpu.memory_space<vmem>>, vector<8x512xf32>
    %465 = arith.truncf %463 : vector<8x128xf32> to vector<8x128xbf16>
    %cst_125 = arith.constant dense<0.000000e+00> : vector<8x512xf32>
    %466 = tpu.matmul %465, %258, %cst_125 {dimension_numbers = #tpu.dot_dimension_numbers<[1], [0], [0], [1], [0, 0, 1, 1], [], []>} : vector<8x128xbf16>, vector<128x512xbf16>, vector<8x512xf32> -> vector<8x512xf32>
    %467 = arith.addf %464, %466 : vector<8x512xf32>
    %468 = vector.extract_strided_slice %467 {offsets = [0, 0], sizes = [8, 128], strides = [1, 1]} : vector<8x512xf32> to vector<8x128xf32>
    %469 = arith.negf %468 : vector<8x128xf32>
    %470 = math.exp %469 : vector<8x128xf32>
    %cst_126 = arith.constant 1.000000e+00 : f32
    %471 = vector.broadcast %cst_126 : f32 to vector<8x128xf32>
    %472 = arith.addf %471, %470 : vector<8x128xf32>
    %473 = arith.divf %471, %472 : vector<8x128xf32>
    %474 = vector.extract_strided_slice %467 {offsets = [0, 128], sizes = [8, 128], strides = [1, 1]} : vector<8x512xf32> to vector<8x128xf32>
    %475 = arith.negf %474 : vector<8x128xf32>
    %476 = math.exp %475 : vector<8x128xf32>
    %cst_127 = arith.constant 1.000000e+00 : f32
    %477 = vector.broadcast %cst_127 : f32 to vector<8x128xf32>
    %478 = arith.addf %477, %476 : vector<8x128xf32>
    %479 = arith.divf %477, %478 : vector<8x128xf32>
    %480 = vector.extract_strided_slice %467 {offsets = [0, 256], sizes = [8, 128], strides = [1, 1]} : vector<8x512xf32> to vector<8x128xf32>
    %481 = math.tanh %480 : vector<8x128xf32>
    %482 = vector.extract_strided_slice %467 {offsets = [0, 384], sizes = [8, 128], strides = [1, 1]} : vector<8x512xf32> to vector<8x128xf32>
    %483 = arith.negf %482 : vector<8x128xf32>
    %484 = math.exp %483 : vector<8x128xf32>
    %cst_128 = arith.constant 1.000000e+00 : f32
    %485 = vector.broadcast %cst_128 : f32 to vector<8x128xf32>
    %486 = arith.addf %485, %484 : vector<8x128xf32>
    %487 = arith.divf %485, %486 : vector<8x128xf32>
    %488 = arith.mulf %479, %461 : vector<8x128xf32>
    %489 = arith.mulf %473, %481 : vector<8x128xf32>
    %490 = arith.addf %488, %489 : vector<8x128xf32>
    %491 = math.tanh %490 : vector<8x128xf32>
    %492 = arith.mulf %487, %491 : vector<8x128xf32>
    %493 = arith.truncf %492 : vector<8x128xf32> to vector<8x128xbf16>
    %c0_129 = arith.constant 0 : index
    %c0_130 = arith.constant 0 : index
    %494 = vector.load %arg7[%c0_129, %c0_130] : memref<128x128xbf16, #tpu.memory_space<vmem>>, vector<128x128xbf16>
    %cst_131 = arith.constant dense<0.000000e+00> : vector<8x128xf32>
    %495 = tpu.matmul %493, %494, %cst_131 {dimension_numbers = #tpu.dot_dimension_numbers<[1], [0], [0], [1], [0, 0, 1, 1], [], []>} : vector<8x128xbf16>, vector<128x128xbf16>, vector<8x128xf32> -> vector<8x128xf32>
    %c0_132 = arith.constant 0 : index
    %c0_133 = arith.constant 0 : index
    %496 = vector.load %arg8[%c0_132, %c0_133] : memref<1x128xf32, #tpu.memory_space<vmem>>, vector<1x128xf32>
    %497 = vector.broadcast %496 : vector<1x128xf32> to vector<8x128xf32>
    %498 = arith.addf %495, %497 : vector<8x128xf32>
    %cst_134 = arith.constant dense<0xFF800000> : vector<8xf32>
    %499 = vector.multi_reduction <maximumf>, %498, %cst_134 [1] : vector<8x128xf32> to vector<8xf32>
    %500 = vector.shape_cast %499 : vector<8xf32> to vector<8x1xf32>
    %501 = vector.broadcast %500 : vector<8x1xf32> to vector<8x128xf32>
    %502 = arith.subf %498, %501 : vector<8x128xf32>
    %503 = math.exp %502 : vector<8x128xf32>
    %cst_135 = arith.constant dense<0.000000e+00> : vector<8xf32>
    %504 = vector.multi_reduction <add>, %503, %cst_135 [1] : vector<8x128xf32> to vector<8xf32>
    %505 = vector.shape_cast %504 : vector<8xf32> to vector<8x1xf32>
    %506 = tpu.reciprocal %505 {approx = true} : vector<8x1xf32> -> vector<8x1xf32>
    %507 = vector.broadcast %506 : vector<8x1xf32> to vector<8x128xf32>
    %508 = arith.mulf %503, %507 : vector<8x128xf32>
    %c0_136 = arith.constant 0 : index
    %c0_137 = arith.constant 0 : index
    %509 = vector.load %arg9[%c0_136, %c0_137] : memref<8x128xf32, #tpu.memory_space<vmem>>, vector<8x128xf32>
    tpu.vector_store %arg9[%c0_136, %c0_137], %508 {strides = array<i32>} : memref<8x128xf32, #tpu.memory_space<vmem>>, vector<8x128xf32>,
    return
  }
}

</mosaic_0001>

<bundles_post_ra>
// kernel: lstm_classifier_forward.1
= control target key start
LH: loop header
LB: loop body
LE: loop exit
PB: predicated region body
PF: predicated region fallthrough
CT: control target
= control target key end

     0   :  { %14 = vsyncpa [#allocation5], 0  ;;  %s5478_s0 = inlined_call_operand.vmem [shape: bf16[64,128], index: 0, kind: input, shape index: {}]   ;;  %s5479_s1 = inlined_call_operand.hbm [shape: bf16[128,512], index: 1, kind: input, shape index: {}]   ;;  %s5480_s2 = inlined_call_operand.hbm [shape: bf16[128,512], index: 2, kind: input, shape index: {}]   ;;  %s5481_s3 = inlined_call_operand.vmem [shape: f32[1,512], index: 3, kind: input, shape index: {}]   ;;  %s5482_s4 = inlined_call_operand.hbm [shape: bf16[128,512], index: 4, kind: input, shape index: {}]   ;;  %s5483_s5 = inlined_call_operand.hbm [shape: bf16[128,512], index: 5, kind: input, shape index: {}]   ;;  %s5484_s6 = inlined_call_operand.vmem [shape: f32[1,512], index: 6, kind: input, shape index: {}]   ;;  %s5485_s7 = inlined_call_operand.vmem [shape: bf16[128,128], index: 7, kind: input, shape index: {}]   ;;  %s5486_s8 = inlined_call_operand.vmem [shape: f32[1,128], index: 8, kind: input, shape index: {}]   ;;  %s5487_s9 = inlined_call_operand.vmem [shape: f32[8,128], index: 9, kind: output, shape index: {}]  }
   0x1   :  { %15 = vsyncpa [#allocation7], 0 }
   0x2   :  { %16 = vsyncpa [#allocation10], 0  ;;  %s4124_s30 = smov [#allocation6]   ;;  %s4125_s11 = smov [#allocation4]  }
   0x3   :  { %s36_s10 = sshll.u32 %s4124_s30, 4  ;;  %s24_s12 = sshll.u32 %s4125_s11, 4  ;;  %s37_s10 = int_to_ptr.vmem [resolvable:$true] %s36_s10  ;;  %s4183_s12 = int_to_ptr.vmem [resolvable:$true] %s24_s12 }
   0x4   :  { %s4030_s15 = scalar_lea.hbm %s5480_s2, 4096 }
   0x5   :  { %p4031_p0 = scmp.ne.s32.totalorder %s5480_s2, %s4030_s15  ;;  %p4034_p1 = scmp.lt.u32.totalorder %s4030_s15, %s5480_s2 }
   0x7   :  { %p4036_p2 = pnand %p4034_p1, %p4031_p0 }
   0x9   :  { %4039 = shalt.err (!%p4036_p2)
}
   0xa   :  { %s4040_s20 = scalar_lea.vmem %s37_s10, 4096  ;;  %p4045_p4 = scmp.lt.s32.totalorder %s37_s10, %s37_s10 }
   0xb   :  { %p4041_p3 = scmp.ne.s32.totalorder %s37_s10, %s4040_s20  ;;  %p4046_p5 = scmp.lt.s32.totalorder %s4040_s20, %s4040_s20 }
   0xd   :  { %p4047_p6 = por %p4046_p5, %p4045_p4 }
   0xf   :  { %p4048_p7 = pnand %p4047_p6, %p4041_p3 }
  0x11   :  { %4051 = shalt.err (!%p4048_p7)
}
  0x12   :  { %s4126_s21 = smov 256   ;;  %s4127_s22 = smov 16  }
  0x13   :  { %42 = dma.hbm_to_vmem [thread:$0]  %s5480_s2, 4096, %s37_s10, [#allocation7], %s4126_s21, %s4126_s21, %s4127_s22  }
  0x14   :  { %s4052_s27 = scalar_lea.hbm %s5479_s1, 4096 }
  0x15   :  { %p4053_p8 = scmp.ne.s32.totalorder %s5479_s1, %s4052_s27  ;;  %p4056_p9 = scmp.lt.u32.totalorder %s4052_s27, %s5479_s1 }
  0x17   :  { %p4058_p10 = pnand %p4056_p9, %p4053_p8 }
  0x19   :  { %4061 = shalt.err (!%p4058_p10)
}
  0x1a   :  { %s4062_s13 = scalar_lea.vmem %s4183_s12, 4096  ;;  %p4067_p12 = scmp.lt.s32.totalorder %s4183_s12, %s4183_s12 }
  0x1b   :  { %p4063_p11 = scmp.ne.s32.totalorder %s4183_s12, %s4062_s13  ;;  %p4068_p13 = scmp.lt.s32.totalorder %s4062_s13, %s4062_s13 }
  0x1d   :  { %p4069_p0 = por %p4068_p13, %p4067_p12 }
  0x1f   :  { %p4070_p1 = pnand %p4069_p0, %p4063_p11 }
  0x21   :  { %4073 = shalt.err (!%p4070_p1)
}
  0x22   :  { %30 = dma.hbm_to_vmem [thread:$0]  %s5479_s1, 4096, %s4183_s12, [#allocation5], %s4126_s21, %s4126_s21, %s4127_s22  }
  0x23   :  { %s4128_s14 = smov [#allocation8]   ;;  %s4129_s16 = smov [#allocation9]  }
  0x24   :  { %s50_s15 = sshll.u32 %s4128_s14, 4  ;;  %s62_s17 = sshll.u32 %s4129_s16, 4  ;;  %s51_s15 = int_to_ptr.vmem [resolvable:$true] %s50_s15  ;;  %s4220_s17 = int_to_ptr.vmem [resolvable:$true] %s62_s17 }
  0x25   :  { %s4074_s20 = scalar_lea.hbm %s5482_s4, 4096 }
  0x26   :  { %p4075_p2 = scmp.ne.s32.totalorder %s5482_s4, %s4074_s20  ;;  %p4078_p3 = scmp.lt.u32.totalorder %s4074_s20, %s5482_s4 }
  0x28   :  { %p4080_p4 = pnand %p4078_p3, %p4075_p2 }
  0x2a   :  { %4083 = shalt.err (!%p4080_p4)
}
  0x2b   :  { %s4084_s1 = scalar_lea.vmem %s51_s15, 4096  ;;  %p4089_p6 = scmp.lt.s32.totalorder %s51_s15, %s51_s15 }
  0x2c   :  { %p4085_p5 = scmp.ne.s32.totalorder %s51_s15, %s4084_s1  ;;  %p4090_p7 = scmp.lt.s32.totalorder %s4084_s1, %s4084_s1 }
  0x2e   :  { %p4091_p8 = por %p4090_p7, %p4089_p6 }
  0x30   :  { %p4092_p9 = pnand %p4091_p8, %p4085_p5 }
  0x32   :  { %4095 = shalt.err (!%p4092_p9)
}
  0x33   :  { %56 = dma.hbm_to_vmem [thread:$0]  %s5482_s4, 4096, %s51_s15, [#allocation7], %s4126_s21, %s4126_s21, %s4127_s22  }
  0x34   :  { %s4096_s30 = scalar_lea.hbm %s5483_s5, 4096 }
  0x35   :  { %p4097_p10 = scmp.ne.s32.totalorder %s5483_s5, %s4096_s30  ;;  %p4100_p11 = scmp.lt.u32.totalorder %s4096_s30, %s5483_s5 }
  0x37   :  { %p4102_p12 = pnand %p4100_p11, %p4097_p10 }
  0x39   :  { %4105 = shalt.err (!%p4102_p12)
}
  0x3a   :  { %s4106_s14 = scalar_lea.vmem %s4220_s17, 4096  ;;  %p4111_p0 = scmp.lt.s32.totalorder %s4220_s17, %s4220_s17 }
  0x3b   :  { %p4107_p13 = scmp.ne.s32.totalorder %s4220_s17, %s4106_s14  ;;  %p4112_p1 = scmp.lt.s32.totalorder %s4106_s14, %s4106_s14 }
  0x3d   :  { %p4113_p2 = por %p4112_p1, %p4111_p0 }
  0x3f   :  { %p4114_p3 = pnand %p4113_p2, %p4107_p13 }
  0x41   :  { %4117 = shalt.err (!%p4114_p3)
}
  0x42   :  { %68 = dma.hbm_to_vmem [thread:$0]  %s5483_s5, 4096, %s4220_s17, [#allocation10], %s4126_s21, %s4126_s21, %s4127_s22  }
  0x43   :  { %4118 = dma.done.wait [#allocation5], 4096  }
  0x44   :  { %4119 = vsyncadd [#allocation5], 4294963200 }
  0x45   :  { %4120 = dma.done.wait [#allocation7], 8192  }
  0x46   :  { %4121 = vsyncadd [#allocation7], 4294959104 }
  0x47   :  { %4122 = dma.done.wait [#allocation10], 4096  }
  0x48   :  { %4123 = vsyncadd [#allocation10], 4294963200  ;;  %v5492_v0 = vmov 0   ;;  %v3502_v1 = vld [vmem:[#allocation4 + $0x4] ss:$16 sps:$4 sm:$0xff]   ;;  %v3563_v44 = vld [vmem:[%s5478_s0 + $0x8] sm:$0xff]  }
  0x49   :  { %366 = vmatprep.mubr.bf16.mxu0 %v5492_v0  ;;  %439 = vmatprep.mubr.bf16.mxu1 %v5492_v0  ;;  %v3504_v2 = vld [vmem:[#allocation4 + $0xc] ss:$16 sps:$4 sm:$0xff]   ;;  %v3506_v3 = vld [vmem:[#allocation4] ss:$16 sps:$4 sm:$0xff]   ;;  %v3507_v4 = vld [vmem:[#allocation4 + $0x8] ss:$16 sps:$4 sm:$0xff]  }
  0x4a   :  { %334 = vmatprep.subr.bf16.mxu0 %v3502_v1  ;;  %407 = vmatprep.subr.bf16.mxu1 %v3504_v2  ;;  %v3508_v5 = vld [vmem:[#allocation4 + $0x24] ss:$16 sps:$4 sm:$0xff]   ;;  %v3510_v6 = vld [vmem:[#allocation4 + $0x2c] ss:$16 sps:$4 sm:$0xff]   ;;  %v3512_v7 = vld [vmem:[#allocation4 + $0x20] ss:$16 sps:$4 sm:$0xff]  }
  0x4b   :  { %335 = vmatpush1.bf16.msra.mxu0 %v3506_v3  ;;  %408 = vmatpush1.bf16.msra.mxu1 %v3507_v4  ;;  %v3513_v8 = vld [vmem:[#allocation4 + $0x28] ss:$16 sps:$4 sm:$0xff]   ;;  %v3514_v9 = vld [vmem:[#allocation4 + $0x44] ss:$16 sps:$4 sm:$0xff]   ;;  %v3516_v10 = vld [vmem:[#allocation4 + $0x4c] ss:$16 sps:$4 sm:$0xff]  }
  0x4c   :  { %336 = vmatprep.subr.bf16.mxu0 %v3508_v5  ;;  %409 = vmatprep.subr.bf16.mxu1 %v3510_v6  ;;  %v3518_v11 = vld [vmem:[#allocation4 + $0x40] ss:$16 sps:$4 sm:$0xff]   ;;  %v3519_v12 = vld [vmem:[#allocation4 + $0x48] ss:$16 sps:$4 sm:$0xff]   ;;  %v3520_v13 = vld [vmem:[#allocation4 + $0x64] ss:$16 sps:$4 sm:$0xff]   ;;  %v130_v6 = vlaneseq }
  0x4d   :  { %v3522_v14 = vld [vmem:[#allocation4 + $0x6c] ss:$16 sps:$4 sm:$0xff]   ;;  %v3524_v15 = vld [vmem:[#allocation4 + $0x60] ss:$16 sps:$4 sm:$0xff]   ;;  %v3525_v16 = vld [vmem:[#allocation4 + $0x68] ss:$16 sps:$4 sm:$0xff]  }
  0x4e   :  { %v3526_v17 = vld [vmem:[#allocation4 + $0x84] ss:$16 sps:$4 sm:$0xff]   ;;  %v3528_v18 = vld [vmem:[#allocation4 + $0x8c] ss:$16 sps:$4 sm:$0xff]   ;;  %v3530_v19 = vld [vmem:[#allocation4 + $0x80] ss:$16 sps:$4 sm:$0xff]  }
  0x4f   :  { %337 = vmatpush1.bf16.msra.mxu0 %v3512_v7  ;;  %410 = vmatpush1.bf16.msra.mxu1 %v3513_v8  ;;  %v3531_v20 = vld [vmem:[#allocation4 + $0x88] ss:$16 sps:$4 sm:$0xff]   ;;  %v3532_v21 = vld [vmem:[#allocation4 + $0xa4] ss:$16 sps:$4 sm:$0xff]   ;;  %v3534_v22 = vld [vmem:[#allocation4 + $0xac] ss:$16 sps:$4 sm:$0xff]  }
  0x50   :  { %338 = vmatprep.subr.bf16.mxu0 %v3514_v9  ;;  %411 = vmatprep.subr.bf16.mxu1 %v3516_v10  ;;  %v3536_v23 = vld [vmem:[#allocation4 + $0xa0] ss:$16 sps:$4 sm:$0xff]   ;;  %v3537_v24 = vld [vmem:[#allocation4 + $0xa8] ss:$16 sps:$4 sm:$0xff]   ;;  %v3538_v25 = vld [vmem:[#allocation4 + $0xc4] ss:$16 sps:$4 sm:$0xff]  }
  0x51   :  { %v3540_v26 = vld [vmem:[#allocation4 + $0xcc] ss:$16 sps:$4 sm:$0xff]   ;;  %v3542_v27 = vld [vmem:[#allocation4 + $0xc0] ss:$16 sps:$4 sm:$0xff]   ;;  %v3543_v28 = vld [vmem:[#allocation4 + $0xc8] ss:$16 sps:$4 sm:$0xff]  }
  0x52   :  { %v3544_v29 = vld [vmem:[#allocation4 + $0xe4] ss:$16 sps:$4 sm:$0xff]   ;;  %v3546_v30 = vld [vmem:[#allocation4 + $0xec] ss:$16 sps:$4 sm:$0xff]   ;;  %v3548_v31 = vld [vmem:[#allocation4 + $0xe0] ss:$16 sps:$4 sm:$0xff]  }
  0x53   :  { %339 = vmatpush1.bf16.msra.mxu0 %v3518_v11  ;;  %412 = vmatpush1.bf16.msra.mxu1 %v3519_v12  ;;  %v3549_v32 = vld [vmem:[#allocation4 + $0xe8] ss:$16 sps:$4 sm:$0xff]   ;;  %v4259_v33 = vld [vmem:[#allocation6 + $0x4] ss:$16 sps:$4 sm:$0xff]   ;;  %v4261_v34 = vld [vmem:[#allocation6 + $0xc] ss:$16 sps:$4 sm:$0xff]  }
  0x54   :  { %340 = vmatprep.subr.bf16.mxu0 %v3520_v13  ;;  %413 = vmatprep.subr.bf16.mxu1 %v3522_v14  ;;  %v3550_v35 = vld [vmem:[%s5478_s0] sm:$0xff]   ;;  %v4268_v37 = vld [vmem:[#allocation6 + $0x8] ss:$16 sps:$4 sm:$0xff]   ;;  %v4274_v39 = vld [vmem:[#allocation6 + $0x2c] ss:$16 sps:$4 sm:$0xff]   ;;  %v4413_v7 = vshrl.u32 %v130_v6, 7 }
  0x55   :  { %v4266_v36 = vld [vmem:[#allocation6] ss:$16 sps:$4 sm:$0xff]   ;;  %v4272_v38 = vld [vmem:[#allocation6 + $0x24] ss:$16 sps:$4 sm:$0xff]   ;;  %v4280_v41 = vld [vmem:[#allocation6 + $0x28] ss:$16 sps:$4 sm:$0xff]  }
  0x56   :  { %v4276_v40 = vld [vmem:[#allocation6 + $0x20] ss:$16 sps:$4 sm:$0xff]   ;;  %v4284_v42 = vld [vmem:[#allocation6 + $0x44] ss:$16 sps:$4 sm:$0xff]   ;;  %v4286_v43 = vld [vmem:[#allocation6 + $0x4c] ss:$16 sps:$4 sm:$0xff]  }
  0x57   :  { %341 = vmatpush1.bf16.msra.mxu0 %v3524_v15  ;;  %414 = vmatpush1.bf16.msra.mxu1 %v3525_v16  ;;  %v4293_v45 = vld [vmem:[#allocation6 + $0x40] ss:$16 sps:$4 sm:$0xff]   ;;  %v4295_v46 = vld [vmem:[#allocation6 + $0x48] ss:$16 sps:$4 sm:$0xff]   ;;  %v4299_v47 = vld [vmem:[#allocation6 + $0x64] ss:$16 sps:$4 sm:$0xff]  }
  0x58   :  { %342 = vmatprep.subr.bf16.mxu0 %v3526_v17  ;;  %415 = vmatprep.subr.bf16.mxu1 %v3528_v18  ;;  %v4303_v48 = vld [vmem:[#allocation6 + $0x6c] ss:$16 sps:$4 sm:$0xff]   ;;  %v4305_v49 = vld [vmem:[#allocation6 + $0x60] ss:$16 sps:$4 sm:$0xff]   ;;  %v4307_v50 = vld [vmem:[#allocation6 + $0x68] ss:$16 sps:$4 sm:$0xff]  }
  0x59   :  { %v4311_v51 = vld [vmem:[#allocation6 + $0x84] ss:$16 sps:$4 sm:$0xff]   ;;  %v4315_v52 = vld [vmem:[#allocation6 + $0x8c] ss:$16 sps:$4 sm:$0xff]   ;;  %v4322_v54 = vld [vmem:[#allocation6 + $0x80] ss:$16 sps:$4 sm:$0xff]  }
  0x5a   :  { %v3576_v53 = vld [vmem:[%s5478_s0 + $0x10] sm:$0xff]   ;;  %v4324_v55 = vld [vmem:[#allocation6 + $0x88] ss:$16 sps:$4 sm:$0xff]   ;;  %v4328_v57 = vld [vmem:[#allocation6 + $0xac] ss:$16 sps:$4 sm:$0xff]   ;;  %5496 = vst [vmem:[#allocation14_spill] sm:$0xff] %v4413_v7 }
  0x5b   :  { %343 = vmatpush1.bf16.msra.mxu0 %v3530_v19  ;;  %416 = vmatpush1.bf16.msra.mxu1 %v3531_v20  ;;  %v4326_v56 = vld [vmem:[#allocation6 + $0xa4] ss:$16 sps:$4 sm:$0xff]   ;;  %v4334_v58 = vld [vmem:[#allocation6 + $0xa0] ss:$16 sps:$4 sm:$0xff]   ;;  %v4336_v59 = vld [vmem:[#allocation6 + $0xa8] ss:$16 sps:$4 sm:$0xff]  }
  0x5c   :  { %344 = vmatprep.subr.bf16.mxu0 %v3532_v21  ;;  %417 = vmatprep.subr.bf16.mxu1 %v3534_v22  ;;  %v4338_v60 = vld [vmem:[#allocation6 + $0xc4] ss:$16 sps:$4 sm:$0xff]   ;;  %v4340_v61 = vld [vmem:[#allocation6 + $0xcc] ss:$16 sps:$4 sm:$0xff]   ;;  %v4351_v63 = vld [vmem:[#allocation6 + $0xc0] ss:$16 sps:$4 sm:$0xff]  }
  0x5d   :  { %v3589_v62 = vld [vmem:[%s5478_s0 + $0x18] sm:$0xff]   ;;  %v4355_v2 = vld [vmem:[#allocation6 + $0xe4] ss:$16 sps:$4 sm:$0xff]   ;;  %v4363_v4 = vld [vmem:[#allocation6 + $0xe0] ss:$16 sps:$4 sm:$0xff]   ;;  %v5490_v8 = vsub.s32 2, %v4413_v7 }
  0x5e   :  { %v4353_v1 = vld [vmem:[#allocation6 + $0xc8] ss:$16 sps:$4 sm:$0xff]   ;;  %v4357_v3 = vld [vmem:[#allocation6 + $0xec] ss:$16 sps:$4 sm:$0xff]   ;;  %v5488_v9 = vsub.s32 3, %v4413_v7  ;;  %v5491_v10 = vsub.s32 0, %v4413_v7 }
  0x5f   :  { %345 = vmatpush1.bf16.msra.mxu0 %v3536_v23  ;;  %418 = vmatpush1.bf16.msra.mxu1 %v3537_v24  ;;  %v4365_v5 = vld [vmem:[#allocation6 + $0xe8] ss:$16 sps:$4 sm:$0xff]   ;;  %v128_v11 = vld [vmem:[%s5481_s3] sm:$0xf]  ;;  %v5489_v12 = vsub.s32 1, %v4413_v7  ;;  %vm4132_vm0 = vmmov 0  }
  0x60   :  { %346 = vmatprep.subr.bf16.mxu0 %v3538_v25  ;;  %419 = vmatprep.subr.bf16.mxu1 %v3540_v26  ;;  %v4424_v13 = vrot.slane %v128_v11, %v5490_v8  ;;  %v4432_v16 = vrot.slane %v128_v11, %v5488_v9  ;;  %v133_v17 = vrot.slane %v128_v11, %v5491_v10 }
  0x61   :  { %v137_v20 = vrot.slane %v128_v11, %v5489_v12 }
  0x63   :  { %347 = vmatpush1.bf16.msra.mxu0 %v3542_v27  ;;  %420 = vmatpush1.bf16.msra.mxu1 %v3543_v28 }
  0x64   :  { %348 = vmatprep.subr.bf16.mxu0 %v3544_v29  ;;  %421 = vmatprep.subr.bf16.mxu1 %v3546_v30 }
  0x67   :  { %349 = vmatpush1.bf16.msra.mxu0 %v3548_v31  ;;  %422 = vmatpush1.bf16.msra.mxu1 %v3549_v32 }
  0x68   :  { %708 = vmatprep.subr.bf16.mxu0 %v4259_v33  ;;  %749 = vmatprep.subr.bf16.mxu1 %v4261_v34 }
  0x6a   :  { %367 = vmatmul.mubr.bf16.vlgmr.msra.gmra.mrb[0].mxu0 %v3550_v35  ;;  %440 = vmatmul.mubr.bf16.vlgmr.msra.gmra.mrb[0].mxu1 %v3550_v35 }
  0x6b   :  { %709 = vmatpush1.bf16.msra.mxu0 %v4266_v36  ;;  %750 = vmatpush1.bf16.msra.mxu1 %v4268_v37 }
  0x6c   :  { %710 = vmatprep.subr.bf16.mxu0 %v4272_v38  ;;  %751 = vmatprep.subr.bf16.mxu1 %v4274_v39 }
  0x6d   :  { %376 = vmatprep.mubr.bf16.mxu0 %v5492_v0  ;;  %449 = vmatprep.mubr.bf16.mxu1 %v5492_v0 }
  0x6f   :  { %711 = vmatpush1.bf16.msra.mxu0 %v4276_v40  ;;  %752 = vmatpush1.bf16.msra.mxu1 %v4280_v41 }
  0x70   :  { %712 = vmatprep.subr.bf16.mxu0 %v4284_v42  ;;  %753 = vmatprep.subr.bf16.mxu1 %v4286_v43 }
  0x72   :  { %377 = vmatmul.mubr.bf16.gmra.mrb[4].mxu0 %v3563_v44  ;;  %450 = vmatmul.mubr.bf16.gmra.mrb[4].mxu1 %v3563_v44 }
  0x73   :  { %713 = vmatpush1.bf16.msra.mxu0 %v4293_v45  ;;  %754 = vmatpush1.bf16.msra.mxu1 %v4295_v46 }
  0x74   :  { %714 = vmatprep.subr.bf16.mxu0 %v4299_v47  ;;  %755 = vmatprep.subr.bf16.mxu1 %v4303_v48 }
  0x75   :  { %386 = vmatprep.mubr.bf16.mxu0 %v5492_v0  ;;  %459 = vmatprep.mubr.bf16.mxu1 %v5492_v0 }
  0x77   :  { %715 = vmatpush1.bf16.msra.mxu0 %v4305_v49  ;;  %756 = vmatpush1.bf16.msra.mxu1 %v4307_v50 }
  0x78   :  { %716 = vmatprep.subr.bf16.mxu0 %v4311_v51  ;;  %757 = vmatprep.subr.bf16.mxu1 %v4315_v52 }
  0x7a   :  { %387 = vmatmul.mubr.bf16.gmra.mrb[8].mxu0 %v3576_v53  ;;  %460 = vmatmul.mubr.bf16.gmra.mrb[8].mxu1 %v3576_v53 }
  0x7b   :  { %717 = vmatpush1.bf16.msra.mxu0 %v4322_v54  ;;  %758 = vmatpush1.bf16.msra.mxu1 %v4324_v55 }
  0x7c   :  { %718 = vmatprep.subr.bf16.mxu0 %v4326_v56  ;;  %759 = vmatprep.subr.bf16.mxu1 %v4328_v57 }
  0x7d   :  { %396 = vmatprep.mubr.bf16.mxu0 %v5492_v0  ;;  %469 = vmatprep.mubr.bf16.mxu1 %v5492_v0 }
  0x7f   :  { %719 = vmatpush1.bf16.msra.mxu0 %v4334_v58  ;;  %760 = vmatpush1.bf16.msra.mxu1 %v4336_v59 }
  0x80   :  { %720 = vmatprep.subr.bf16.mxu0 %v4338_v60  ;;  %761 = vmatprep.subr.bf16.mxu1 %v4340_v61 }
  0x82   :  { %397 = vmatmul.mubr.bf16.gmra.mrb[12].mxu0 %v3589_v62  ;;  %470 = vmatmul.mubr.bf16.gmra.mrb[12].mxu1 %v3589_v62 }
  0x83   :  { %721 = vmatpush1.bf16.msra.mxu0 %v4351_v63  ;;  %762 = vmatpush1.bf16.msra.mxu1 %v4353_v1 }
  0x84   :  { %722 = vmatprep.subr.bf16.mxu0 %v4355_v2  ;;  %763 = vmatprep.subr.bf16.mxu1 %v4357_v3 }
  0x85   :  { %740 = vmatprep.mubr.bf16.mxu0 %v5492_v0  ;;  %781 = vmatprep.mubr.bf16.mxu1 %v5492_v0 }
  0x87   :  { %723 = vmatpush1.bf16.msra.mxu0 %v4363_v4  ;;  %764 = vmatpush1.bf16.msra.mxu1 %v4365_v5 }
  0x88   :  { %824 = vmatprep.subr.bf16.mxu0 %v4259_v33  ;;  %865 = vmatprep.subr.bf16.mxu1 %v4261_v34 }
  0x8a   :  { %741 = vmatmul.mubr.bf16.vlgmr.msra.gmra.mrb[16].mxu0 %v5492_v0  ;;  %782 = vmatmul.mubr.bf16.vlgmr.msra.gmra.mrb[16].mxu1 %v5492_v0 }
  0x8b   :  { %825 = vmatpush1.bf16.msra.mxu0 %v4266_v36  ;;  %866 = vmatpush1.bf16.msra.mxu1 %v4268_v37 }
  0x8c   :  { %826 = vmatprep.subr.bf16.mxu0 %v4272_v38  ;;  %867 = vmatprep.subr.bf16.mxu1 %v4274_v39 }
  0x8d   :  { %856 = vmatprep.mubr.bf16.mxu0 %v5492_v0  ;;  %897 = vmatprep.mubr.bf16.mxu1 %v5492_v0 }
  0x8f   :  { %827 = vmatpush1.bf16.msra.mxu0 %v4276_v40  ;;  %868 = vmatpush1.bf16.msra.mxu1 %v4280_v41 }
  0x90   :  { %828 = vmatprep.subr.bf16.mxu0 %v4284_v42  ;;  %869 = vmatprep.subr.bf16.mxu1 %v4286_v43 }
  0x93   :  { %829 = vmatpush1.bf16.msra.mxu0 %v4293_v45  ;;  %870 = vmatpush1.bf16.msra.mxu1 %v4295_v46 }
  0x94   :  { %830 = vmatprep.subr.bf16.mxu0 %v4299_v47  ;;  %871 = vmatprep.subr.bf16.mxu1 %v4303_v48 }
  0x97   :  { %831 = vmatpush1.bf16.msra.mxu0 %v4305_v49  ;;  %872 = vmatpush1.bf16.msra.mxu1 %v4307_v50 }
  0x98   :  { %832 = vmatprep.subr.bf16.mxu0 %v4311_v51  ;;  %873 = vmatprep.subr.bf16.mxu1 %v4315_v52 }
  0x9b   :  { %833 = vmatpush1.bf16.msra.mxu0 %v4322_v54  ;;  %874 = vmatpush1.bf16.msra.mxu1 %v4324_v55 }
  0x9c   :  { %834 = vmatprep.subr.bf16.mxu0 %v4326_v56  ;;  %875 = vmatprep.subr.bf16.mxu1 %v4328_v57 }
  0x9f   :  { %835 = vmatpush1.bf16.msra.mxu0 %v4334_v58  ;;  %876 = vmatpush1.bf16.msra.mxu1 %v4336_v59 }
  0xa0   :  { %836 = vmatprep.subr.bf16.mxu0 %v4338_v60  ;;  %877 = vmatprep.subr.bf16.mxu1 %v4340_v61 }
  0xa3   :  { %837 = vmatpush1.bf16.msra.mxu0 %v4351_v63  ;;  %878 = vmatpush1.bf16.msra.mxu1 %v4353_v1 }
  0xa4   :  { %838 = vmatprep.subr.bf16.mxu0 %v4355_v2  ;;  %879 = vmatprep.subr.bf16.mxu1 %v4357_v3 }
  0xa7   :  { %839 = vmatpush1.bf16.msra.mxu0 %v4363_v4  ;;  %880 = vmatpush1.bf16.msra.mxu1 %v4365_v5 }
  0xa8   :  { %940 = vmatprep.subr.bf16.mxu0 %v4259_v33  ;;  %981 = vmatprep.subr.bf16.mxu1 %v4261_v34 }
 0x13d   :  { %v4426_v14 = vpop.f32.mrb[0].mxu0  ;;  %v4428_v15 = vpop.f32.mrb[0].mxu1 }
 0x13e   :  { %v370_v18 = vpop.f32.mrb[1].mxu0  ;;  %v443_v19 = vpop.f32.mrb[1].mxu1 }
 0x13f   :  { %v372_v21 = vpop.f32.mrb[2].mxu0  ;;  %v445_v22 = vpop.f32.mrb[2].mxu1 }
 0x140   :  { %v4438_v23 = vadd.f32 %v372_v21, %v133_v17  ;;  %v374_v24 = vpop.f32.mrb[3].mxu0  ;;  %v4441_v25 = vadd.f32 %v445_v22, %v4424_v13  ;;  %v447_v26 = vpop.f32.mrb[3].mxu1 }
 0x141   :  { %v4443_v27 = vadd.f32 %v374_v24, %v137_v20  ;;  %v4446_v28 = vadd.f32 %v447_v26, %v4432_v16 }
 0x145   :  { %v378_v29 = vpop.f32.mrb[4].mxu0  ;;  %v451_v30 = vpop.f32.mrb[4].mxu1 }
 0x146   :  { %v4448_v31 = vadd.f32 %v378_v29, %v133_v17  ;;  %v380_v32 = vpop.f32.mrb[5].mxu0  ;;  %v4451_v35 = vadd.f32 %v451_v30, %v4424_v13  ;;  %v453_v44 = vpop.f32.mrb[5].mxu1 }
 0x147   :  { %v4453_v53 = vadd.f32 %v380_v32, %v137_v20  ;;  %v382_v62 = vpop.f32.mrb[6].mxu0  ;;  %v4456_v6 = vadd.f32 %v453_v44, %v4432_v16  ;;  %v455_v11 = vpop.f32.mrb[6].mxu1 }
 0x148   :  { %v4458_v21 = vadd.f32 %v382_v62, %v133_v17  ;;  %v384_v22 = vpop.f32.mrb[7].mxu0  ;;  %v4461_v24 = vadd.f32 %v455_v11, %v4424_v13  ;;  %v457_v26 = vpop.f32.mrb[7].mxu1 }
 0x149   :  { %5497 = vst [vmem:[#allocation15_spill] sm:$0xff] %v4456_v6  ;;  %v4463_v29 = vadd.f32 %v384_v22, %v137_v20  ;;  %v4466_v30 = vadd.f32 %v457_v26, %v4432_v16 }
 0x14a   :  { %5498 = vst [vmem:[#allocation16_spill] sm:$0xff] %v4458_v21  ;;  %5499 = vst [vmem:[#allocation17_spill] sm:$0xff] %v4461_v24 }
 0x14b   :  { %5500 = vst [vmem:[#allocation18_spill] sm:$0xff] %v4463_v29  ;;  %5501 = vst [vmem:[#allocation19_spill] sm:$0xff] %v4466_v30 }
 0x14d   :  { %v388_v9 = vpop.f32.mrb[8].mxu0  ;;  %v461_v32 = vpop.f32.mrb[8].mxu1 }
 0x14e   :  { %v4468_v12 = vadd.f32 %v388_v9, %v133_v17  ;;  %v390_v8 = vpop.f32.mrb[9].mxu0  ;;  %v4471_v44 = vadd.f32 %v461_v32, %v4424_v13  ;;  %v463_v62 = vpop.f32.mrb[9].mxu1 }
 0x14f   :  { %v4473_v10 = vadd.f32 %v390_v8, %v137_v20  ;;  %v392_v0 = vpop.f32.mrb[10].mxu0  ;;  %v4476_v11 = vadd.f32 %v463_v62, %v4432_v16  ;;  %v465_v22 = vpop.f32.mrb[10].mxu1 }
 0x150   :  { %5502 = vst [vmem:[#allocation20_spill] sm:$0xff] %v4468_v12  ;;  %5503 = vst [vmem:[#allocation21_spill] sm:$0xff] %v4471_v44  ;;  %v4478_v7 = vadd.f32 %v392_v0, %v133_v17  ;;  %v394_v26 = vpop.f32.mrb[11].mxu0  ;;  %v4481_v30 = vadd.f32 %v465_v22, %v4424_v13  ;;  %v467_v9 = vpop.f32.mrb[11].mxu1 }
 0x151   :  { %5504 = vst [vmem:[#allocation22_spill] sm:$0xff] %v4473_v10  ;;  %5505 = vst [vmem:[#allocation23_spill] sm:$0xff] %v4476_v11  ;;  %v4483_v12 = vadd.f32 %v394_v26, %v137_v20  ;;  %v4486_v32 = vadd.f32 %v467_v9, %v4432_v16 }
 0x152   :  { %5506 = vst [vmem:[#allocation24_spill] sm:$0xff] %v4478_v7  ;;  %5507 = vst [vmem:[#allocation25_spill] sm:$0xff] %v4481_v30 }
 0x153   :  { %5508 = vst [vmem:[#allocation26_spill] sm:$0xff] %v4483_v12  ;;  %5509 = vst [vmem:[#allocation27_spill] sm:$0xff] %v4486_v32 }
 0x155   :  { %v398_v44 = vpop.f32.mrb[12].mxu0  ;;  %v471_v8 = vpop.f32.mrb[12].mxu1 }
 0x156   :  { %v4488_v10 = vadd.f32 %v398_v44, %v133_v17  ;;  %v400_v29 = vpop.f32.mrb[13].mxu0  ;;  %v4491_v62 = vadd.f32 %v471_v8, %v4424_v13  ;;  %v473_v0 = vpop.f32.mrb[13].mxu1 }
 0x157   :  { %v4493_v7 = vadd.f32 %v400_v29, %v137_v20  ;;  %v402_v11 = vpop.f32.mrb[14].mxu0  ;;  %v4496_v22 = vadd.f32 %v473_v0, %v4432_v16  ;;  %v475_v26 = vpop.f32.mrb[14].mxu1  ;;  %v369_v29 = vadd.f32 %v4426_v14, %v133_v17  ;;  %v371_v0 = vadd.f32 %v370_v18, %v137_v20 }
 0x158   :  { %5510 = vst [vmem:[#allocation28_spill] sm:$0xff] %v4488_v10  ;;  %5511 = vst [vmem:[#allocation29_spill] sm:$0xff] %v4491_v62  ;;  %v4498_v12 = vadd.f32 %v402_v11, %v133_v17  ;;  %v404_v9 = vpop.f32.mrb[15].mxu0  ;;  %v4501_v32 = vadd.f32 %v475_v26, %v4424_v13  ;;  %v477_v44 = vpop.f32.mrb[15].mxu1 }
 0x159   :  { %5512 = vst [vmem:[#allocation30_spill] sm:$0xff] %v4493_v7  ;;  %5513 = vst [vmem:[#allocation31_spill] sm:$0xff] %v4496_v22  ;;  %v4503_v10 = vadd.f32 %v404_v9, %v137_v20  ;;  %v4506_v8 = vadd.f32 %v477_v44, %v4432_v16  ;;  %v442_v7 = vadd.f32 %v4428_v15, %v4424_v13 }
 0x15a   :  { %5514 = vst [vmem:[#allocation32_spill] sm:$0xff] %v4498_v12  ;;  %5515 = vst [vmem:[#allocation33_spill] sm:$0xff] %v4501_v32  ;;  %v444_v22 = vadd.f32 %v443_v19, %v4432_v16 }
 0x15b   :  { %5516 = vst [vmem:[#allocation34_spill] sm:$0xff] %v4503_v10  ;;  %5517 = vst [vmem:[#allocation35_spill] sm:$0xff] %v4506_v8 }
 0x15d   :  { %v742_v11 = vpop.f32.mrb[16].mxu0  ;;  %v783_v12 = vpop.f32.mrb[16].mxu1 }
 0x15e   :  { %v790_v62 = vadd.f32 %v742_v11, %v369_v29  ;;  %v792_v30 = vadd.f32 %v783_v12, %v442_v7  ;;  %v744_v26 = vpop.f32.mrb[17].mxu0  ;;  %v785_v32 = vpop.f32.mrb[17].mxu1 }
 0x15f   :  { %v791_v24 = vadd.f32 %v744_v26, %v371_v0  ;;  %v793_v9 = vadd.f32 %v785_v32, %v444_v22  ;;  %v746_v10 = vpop.f32.mrb[18].mxu0  ;;  %v787_v21 = vpop.f32.mrb[18].mxu1 }
 0x160   :  { %v3343_v44 = vmul.f32 -1.442695, %v790_v62  ;;  %v747_v8 = vpop.f32.mrb[19].mxu0  ;;  %v788_v6 = vpop.f32.mrb[19].mxu1 }
 0x161   :  { %v3344_v14 = vmul.f32 -1.442695, %v791_v24  ;;  %v3345_v13 = vmul.f32 -1.442695, %v793_v9  ;;  %v5518_v8 = vmov 0  }
 0x162   :  { %3706 = vpow2.f32 %v3343_v44 }
 0x163   :  { %3708 = vpow2.f32 %v3344_v14 }
 0x164   :  { %3710 = vpow2.f32 %v3345_v13 }
 0x165   :  { %3712 = vtanh.f32 %v792_v30 }
 0x16c   :  { %v3707_v15 = vpop.eup %3706 }
 0x16d   :  { %v3709_v17 = vpop.eup %3708  ;;  %v797_v16 = vadd.f32 1.0, %v3707_v15 }
 0x16e   :  { %v803_v18 = vadd.f32 1.0, %v3709_v17  ;;  %v3711_v7 = vpop.eup %3710 }
 0x16f   :  { %3714 = vrcp.f32 %v797_v16  ;;  %v3713_v12 = vpop.eup %3712  ;;  %v810_v21 = vadd.f32 1.0, %v3711_v7 }
 0x170   :  { %3716 = vrcp.f32 %v803_v18 }
 0x171   :  { %3718 = vrcp.f32 %v810_v21 }
 0x179   :  { %v3715_v19 = vpop.eup %3714 }
 0x17a   :  { %v3717_v10 = vpop.eup %3716  ;;  %v814_v20 = vmul.f32 %v3715_v19, %v3713_v12 }
 0x17b   :  { %v813_v32 = vmul.f32 0.0, %v3717_v10  ;;  %v3719_v24 = vpop.eup %3718 }
 0x17d   :  { %v4512_v6 = vadd.f32 %v814_v20, %v813_v32 }
 0x17f   :  { %3720 = vtanh.f32 %v4512_v6 }
 0x189   :  { %v3721_v62 = vpop.eup %3720 }
 0x18a   :  { %v4515_v22 = vmul.f32 %v3721_v62, %v3719_v24 }
 0x18c   :  { %v823_v30 = vpack.c.bf16 %v4515_v22, %v4515_v22 }
 0x18e   :  { %857 = vmatmul.mubr.bf16.vlgmr.msra.gmra.mrb[20].mxu0 %v823_v30  ;;  %898 = vmatmul.mubr.bf16.vlgmr.msra.gmra.mrb[20].mxu1 %v823_v30 }
 0x18f   :  { %941 = vmatpush1.bf16.msra.mxu0 %v4266_v36  ;;  %982 = vmatpush1.bf16.msra.mxu1 %v4268_v37 }
 0x190   :  { %942 = vmatprep.subr.bf16.mxu0 %v4272_v38  ;;  %983 = vmatprep.subr.bf16.mxu1 %v4274_v39 }
 0x191   :  { %972 = vmatprep.mubr.bf16.mxu0 %v5518_v8  ;;  %1013 = vmatprep.mubr.bf16.mxu1 %v5518_v8 }
 0x193   :  { %943 = vmatpush1.bf16.msra.mxu0 %v4276_v40  ;;  %984 = vmatpush1.bf16.msra.mxu1 %v4280_v41 }
 0x194   :  { %944 = vmatprep.subr.bf16.mxu0 %v4284_v42  ;;  %985 = vmatprep.subr.bf16.mxu1 %v4286_v43 }
 0x197   :  { %945 = vmatpush1.bf16.msra.mxu0 %v4293_v45  ;;  %986 = vmatpush1.bf16.msra.mxu1 %v4295_v46 }
 0x198   :  { %946 = vmatprep.subr.bf16.mxu0 %v4299_v47  ;;  %987 = vmatprep.subr.bf16.mxu1 %v4303_v48 }
 0x19b   :  { %947 = vmatpush1.bf16.msra.mxu0 %v4305_v49  ;;  %988 = vmatpush1.bf16.msra.mxu1 %v4307_v50 }
 0x19c   :  { %948 = vmatprep.subr.bf16.mxu0 %v4311_v51  ;;  %989 = vmatprep.subr.bf16.mxu1 %v4315_v52 }
 0x19f   :  { %949 = vmatpush1.bf16.msra.mxu0 %v4322_v54  ;;  %990 = vmatpush1.bf16.msra.mxu1 %v4324_v55 }
 0x1a0   :  { %950 = vmatprep.subr.bf16.mxu0 %v4326_v56  ;;  %991 = vmatprep.subr.bf16.mxu1 %v4328_v57 }
 0x1a3   :  { %951 = vmatpush1.bf16.msra.mxu0 %v4334_v58  ;;  %992 = vmatpush1.bf16.msra.mxu1 %v4336_v59 }
 0x1a4   :  { %952 = vmatprep.subr.bf16.mxu0 %v4338_v60  ;;  %993 = vmatprep.subr.bf16.mxu1 %v4340_v61 }
 0x1a7   :  { %953 = vmatpush1.bf16.msra.mxu0 %v4351_v63  ;;  %994 = vmatpush1.bf16.msra.mxu1 %v4353_v1 }
 0x1a8   :  { %954 = vmatprep.subr.bf16.mxu0 %v4355_v2  ;;  %995 = vmatprep.subr.bf16.mxu1 %v4357_v3 }
 0x1ab   :  { %955 = vmatpush1.bf16.msra.mxu0 %v4363_v4  ;;  %996 = vmatpush1.bf16.msra.mxu1 %v4365_v5 }
 0x1ac   :  { %1056 = vmatprep.subr.bf16.mxu0 %v4259_v33  ;;  %1097 = vmatprep.subr.bf16.mxu1 %v4261_v34 }
 0x261   :  { %v858_v29 = vpop.f32.mrb[20].mxu0  ;;  %v899_v0 = vpop.f32.mrb[20].mxu1 }
 0x262   :  { %v906_v11 = vadd.f32 %v858_v29, %v4438_v23  ;;  %v908_v26 = vadd.f32 %v899_v0, %v4441_v25  ;;  %v860_v9 = vpop.f32.mrb[21].mxu0  ;;  %v901_v44 = vpop.f32.mrb[21].mxu1 }
 0x263   :  { %v907_v14 = vadd.f32 %v860_v9, %v4443_v27  ;;  %v909_v13 = vadd.f32 %v901_v44, %v4446_v28  ;;  %v862_v15 = vpop.f32.mrb[22].mxu0  ;;  %v903_v17 = vpop.f32.mrb[22].mxu1 }
 0x264   :  { %v3346_v16 = vmul.f32 -1.442695, %v906_v11  ;;  %v863_v18 = vpop.f32.mrb[23].mxu0  ;;  %v904_v7 = vpop.f32.mrb[23].mxu1 }
 0x265   :  { %v3347_v12 = vmul.f32 -1.442695, %v907_v14  ;;  %v3348_v19 = vmul.f32 -1.442695, %v909_v13  ;;  %v5519_v18 = vld [vmem:[#allocation15_spill] sm:$0xff] }
 0x266   :  { %3722 = vpow2.f32 %v3346_v16 }
 0x267   :  { %3724 = vpow2.f32 %v3347_v12 }
 0x268   :  { %3726 = vpow2.f32 %v3348_v19 }
 0x269   :  { %3728 = vtanh.f32 %v908_v26 }
 0x270   :  { %v3723_v10 = vpop.eup %3722 }
 0x271   :  { %v3725_v20 = vpop.eup %3724  ;;  %v913_v23 = vadd.f32 1.0, %v3723_v10 }
 0x272   :  { %v919_v25 = vadd.f32 1.0, %v3725_v20  ;;  %v3727_v27 = vpop.eup %3726 }
 0x273   :  { %3730 = vrcp.f32 %v913_v23  ;;  %v3729_v21 = vpop.eup %3728  ;;  %v926_v62 = vadd.f32 1.0, %v3727_v27 }
 0x274   :  { %3732 = vrcp.f32 %v919_v25 }
 0x275   :  { %3734 = vrcp.f32 %v926_v62 }
 0x27d   :  { %v3731_v28 = vpop.eup %3730 }
 0x27e   :  { %v3733_v32 = vpop.eup %3732  ;;  %v930_v24 = vmul.f32 %v3731_v28, %v3729_v21 }
 0x27f   :  { %v929_v30 = vmul.f32 %v3733_v32, %v4512_v6  ;;  %v3735_v0 = vpop.eup %3734 }
 0x281   :  { %v4558_v29 = vadd.f32 %v930_v24, %v929_v30 }
 0x283   :  { %3736 = vtanh.f32 %v4558_v29 }
 0x28d   :  { %v3737_v11 = vpop.eup %3736 }
 0x28e   :  { %v4561_v9 = vmul.f32 %v3737_v11, %v3735_v0 }
 0x290   :  { %v939_v26 = vpack.c.bf16 %v4561_v9, %v4561_v9 }
 0x292   :  { %973 = vmatmul.mubr.bf16.vlgmr.msra.gmra.mrb[24].mxu0 %v939_v26  ;;  %1014 = vmatmul.mubr.bf16.vlgmr.msra.gmra.mrb[24].mxu1 %v939_v26 }
 0x293   :  { %1057 = vmatpush1.bf16.msra.mxu0 %v4266_v36  ;;  %1098 = vmatpush1.bf16.msra.mxu1 %v4268_v37 }
 0x294   :  { %1058 = vmatprep.subr.bf16.mxu0 %v4272_v38  ;;  %1099 = vmatprep.subr.bf16.mxu1 %v4274_v39 }
 0x295   :  { %1088 = vmatprep.mubr.bf16.mxu0 %v5518_v8  ;;  %1129 = vmatprep.mubr.bf16.mxu1 %v5518_v8 }
 0x297   :  { %1059 = vmatpush1.bf16.msra.mxu0 %v4276_v40  ;;  %1100 = vmatpush1.bf16.msra.mxu1 %v4280_v41 }
 0x298   :  { %1060 = vmatprep.subr.bf16.mxu0 %v4284_v42  ;;  %1101 = vmatprep.subr.bf16.mxu1 %v4286_v43 }
 0x29b   :  { %1061 = vmatpush1.bf16.msra.mxu0 %v4293_v45  ;;  %1102 = vmatpush1.bf16.msra.mxu1 %v4295_v46 }
 0x29c   :  { %1062 = vmatprep.subr.bf16.mxu0 %v4299_v47  ;;  %1103 = vmatprep.subr.bf16.mxu1 %v4303_v48 }
 0x29f   :  { %1063 = vmatpush1.bf16.msra.mxu0 %v4305_v49  ;;  %1104 = vmatpush1.bf16.msra.mxu1 %v4307_v50 }
 0x2a0   :  { %1064 = vmatprep.subr.bf16.mxu0 %v4311_v51  ;;  %1105 = vmatprep.subr.bf16.mxu1 %v4315_v52 }
 0x2a3   :  { %1065 = vmatpush1.bf16.msra.mxu0 %v4322_v54  ;;  %1106 = vmatpush1.bf16.msra.mxu1 %v4324_v55 }
 0x2a4   :  { %1066 = vmatprep.subr.bf16.mxu0 %v4326_v56  ;;  %1107 = vmatprep.subr.bf16.mxu1 %v4328_v57 }
 0x2a7   :  { %1067 = vmatpush1.bf16.msra.mxu0 %v4334_v58  ;;  %1108 = vmatpush1.bf16.msra.mxu1 %v4336_v59 }
 0x2a8   :  { %1068 = vmatprep.subr.bf16.mxu0 %v4338_v60  ;;  %1109 = vmatprep.subr.bf16.mxu1 %v4340_v61 }
 0x2ab   :  { %1069 = vmatpush1.bf16.msra.mxu0 %v4351_v63  ;;  %1110 = vmatpush1.bf16.msra.mxu1 %v4353_v1 }
 0x2ac   :  { %1070 = vmatprep.subr.bf16.mxu0 %v4355_v2  ;;  %1111 = vmatprep.subr.bf16.mxu1 %v4357_v3 }
 0x2af   :  { %1071 = vmatpush1.bf16.msra.mxu0 %v4363_v4  ;;  %1112 = vmatpush1.bf16.msra.mxu1 %v4365_v5 }
 0x2b0   :  { %1172 = vmatprep.subr.bf16.mxu0 %v4259_v33  ;;  %1213 = vmatprep.subr.bf16.mxu1 %v4261_v34 }
 0x365   :  { %v974_v6 = vpop.f32.mrb[24].mxu0  ;;  %v1015_v44 = vpop.f32.mrb[24].mxu1 }
 0x366   :  { %v1022_v14 = vadd.f32 %v974_v6, %v4448_v31  ;;  %v1024_v13 = vadd.f32 %v1015_v44, %v4451_v35  ;;  %v976_v15 = vpop.f32.mrb[25].mxu0  ;;  %v1017_v17 = vpop.f32.mrb[25].mxu1 }
 0x367   :  { %v1023_v16 = vadd.f32 %v976_v15, %v4453_v53  ;;  %v1025_v7 = vadd.f32 %v1017_v17, %v5519_v18  ;;  %v978_v12 = vpop.f32.mrb[26].mxu0  ;;  %v1019_v19 = vpop.f32.mrb[26].mxu1 }
 0x368   :  { %v3349_v10 = vmul.f32 -1.442695, %v1022_v14  ;;  %v979_v20 = vpop.f32.mrb[27].mxu0  ;;  %v1020_v23 = vpop.f32.mrb[27].mxu1 }
 0x369   :  { %v3350_v33 = vmul.f32 -1.442695, %v1023_v16  ;;  %v3351_v34 = vmul.f32 -1.442695, %v1025_v7 }
 0x36a   :  { %3738 = vpow2.f32 %v3349_v10 }
 0x36b   :  { %3740 = vpow2.f32 %v3350_v33 }
 0x36c   :  { %3742 = vpow2.f32 %v3351_v34 }
 0x36d   :  { %3744 = vtanh.f32 %v1024_v13 }
 0x374   :  { %v3739_v25 = vpop.eup %3738 }
 0x375   :  { %v3741_v27 = vpop.eup %3740  ;;  %v1029_v31 = vadd.f32 1.0, %v3739_v25 }
 0x376   :  { %v1035_v35 = vadd.f32 1.0, %v3741_v27  ;;  %v3743_v53 = vpop.eup %3742 }
 0x377   :  { %3746 = vrcp.f32 %v1029_v31  ;;  %v3745_v21 = vpop.eup %3744  ;;  %v1042_v62 = vadd.f32 1.0, %v3743_v53  ;;  %v4661_v31 = vld [vmem:[#allocation6] ss:$16 sps:$4 sm:$0xff]   ;;  %v4667_v53 = vld [vmem:[#allocation6 + $0x24] ss:$16 sps:$4 sm:$0xff]  }
 0x378   :  { %3748 = vrcp.f32 %v1035_v35  ;;  %v4664_v35 = vld [vmem:[#allocation6 + $0x8] ss:$16 sps:$4 sm:$0xff]  }
 0x379   :  { %3750 = vrcp.f32 %v1042_v62  ;;  %v4684_v62 = vld [vmem:[#allocation6 + $0x4c] ss:$16 sps:$4 sm:$0xff]  }
 0x381   :  { %v3747_v28 = vpop.eup %3746 }
 0x382   :  { %v3749_v32 = vpop.eup %3748  ;;  %v1046_v24 = vmul.f32 %v3747_v28, %v3745_v21  ;;  %v4670_v21 = vld [vmem:[#allocation6 + $0x2c] ss:$16 sps:$4 sm:$0xff]   ;;  %v4675_v28 = vld [vmem:[#allocation6 + $0x20] ss:$16 sps:$4 sm:$0xff]  }
 0x383   :  { %v1045_v30 = vmul.f32 %v3749_v32, %v4558_v29  ;;  %v3751_v11 = vpop.eup %3750  ;;  %v4678_v32 = vld [vmem:[#allocation6 + $0x28] ss:$16 sps:$4 sm:$0xff]  }
 0x385   :  { %v4604_v0 = vadd.f32 %v1046_v24, %v1045_v30  ;;  %v4681_v24 = vld [vmem:[#allocation6 + $0x44] ss:$16 sps:$4 sm:$0xff]   ;;  %v4687_v30 = vld [vmem:[#allocation6 + $0x40] ss:$16 sps:$4 sm:$0xff]  }
 0x387   :  { %3752 = vtanh.f32 %v4604_v0 }
 0x391   :  { %v3753_v26 = vpop.eup %3752 }
 0x392   :  { %v4607_v6 = vmul.f32 %v3753_v26, %v3751_v11  ;;  %v4693_v11 = vld [vmem:[#allocation6 + $0x64] ss:$16 sps:$4 sm:$0xff]   ;;  %v4696_v26 = vld [vmem:[#allocation6 + $0x6c] ss:$16 sps:$4 sm:$0xff]  }
 0x394   :  { %v1055_v44 = vpack.c.bf16 %v4607_v6, %v4607_v6 }
 0x396   :  { %1089 = vmatmul.mubr.bf16.vlgmr.msra.gmra.mrb[28].mxu0 %v1055_v44  ;;  %1130 = vmatmul.mubr.bf16.vlgmr.msra.gmra.mrb[28].mxu1 %v1055_v44  ;;  %v4699_v44 = vld [vmem:[#allocation6 + $0x60] ss:$16 sps:$4 sm:$0xff]  }
 0x397   :  { %1173 = vmatpush1.bf16.msra.mxu0 %v4266_v36  ;;  %1214 = vmatpush1.bf16.msra.mxu1 %v4268_v37  ;;  %v4643_v36 = vld [vmem:[#allocation6 + $0x4] ss:$16 sps:$4 sm:$0xff]   ;;  %v4646_v37 = vld [vmem:[#allocation6 + $0xc] ss:$16 sps:$4 sm:$0xff]  }
 0x398   :  { %1174 = vmatprep.subr.bf16.mxu0 %v4272_v38  ;;  %1215 = vmatprep.subr.bf16.mxu1 %v4274_v39 }
 0x399   :  { %1204 = vmatprep.mubr.bf16.mxu0 %v5518_v8  ;;  %1245 = vmatprep.mubr.bf16.mxu1 %v5518_v8 }
 0x39b   :  { %1175 = vmatpush1.bf16.msra.mxu0 %v4276_v40  ;;  %1216 = vmatpush1.bf16.msra.mxu1 %v4280_v41  ;;  %v5520_v40 = vld [vmem:[#allocation16_spill] sm:$0xff] }
 0x39c   :  { %1176 = vmatprep.subr.bf16.mxu0 %v4284_v42  ;;  %1217 = vmatprep.subr.bf16.mxu1 %v4286_v43  ;;  %v5521_v42 = vld [vmem:[#allocation17_spill] sm:$0xff] }
 0x39f   :  { %1177 = vmatpush1.bf16.msra.mxu0 %v4293_v45  ;;  %1218 = vmatpush1.bf16.msra.mxu1 %v4295_v46 }
 0x3a0   :  { %1178 = vmatprep.subr.bf16.mxu0 %v4299_v47  ;;  %1219 = vmatprep.subr.bf16.mxu1 %v4303_v48  ;;  %v5522_v47 = vld [vmem:[#allocation18_spill] sm:$0xff] }
 0x3a3   :  { %1179 = vmatpush1.bf16.msra.mxu0 %v4305_v49  ;;  %1220 = vmatpush1.bf16.msra.mxu1 %v4307_v50  ;;  %v5523_v49 = vld [vmem:[#allocation19_spill] sm:$0xff] }
 0x3a4   :  { %1180 = vmatprep.subr.bf16.mxu0 %v4311_v51  ;;  %1221 = vmatprep.subr.bf16.mxu1 %v4315_v52 }
 0x3a7   :  { %1181 = vmatpush1.bf16.msra.mxu0 %v4322_v54  ;;  %1222 = vmatpush1.bf16.msra.mxu1 %v4324_v55 }
 0x3a8   :  { %1182 = vmatprep.subr.bf16.mxu0 %v4326_v56  ;;  %1223 = vmatprep.subr.bf16.mxu1 %v4328_v57 }
 0x3ab   :  { %1183 = vmatpush1.bf16.msra.mxu0 %v4334_v58  ;;  %1224 = vmatpush1.bf16.msra.mxu1 %v4336_v59 }
 0x3ac   :  { %1184 = vmatprep.subr.bf16.mxu0 %v4338_v60  ;;  %1225 = vmatprep.subr.bf16.mxu1 %v4340_v61 }
 0x3af   :  { %1185 = vmatpush1.bf16.msra.mxu0 %v4351_v63  ;;  %1226 = vmatpush1.bf16.msra.mxu1 %v4353_v1 }
 0x3b0   :  { %1186 = vmatprep.subr.bf16.mxu0 %v4355_v2  ;;  %1227 = vmatprep.subr.bf16.mxu1 %v4357_v3 }
 0x3b3   :  { %1187 = vmatpush1.bf16.msra.mxu0 %v4363_v4  ;;  %1228 = vmatpush1.bf16.msra.mxu1 %v4365_v5 }
 0x3b4   :  { %1288 = vmatprep.subr.bf16.mxu0 %v4643_v36  ;;  %1329 = vmatprep.subr.bf16.mxu1 %v4646_v37 }
 0x469   :  { %v1090_v38 = vpop.f32.mrb[28].mxu0  ;;  %v1131_v39 = vpop.f32.mrb[28].mxu1 }
 0x46a   :  { %v1138_v41 = vadd.f32 %v1090_v38, %v5520_v40  ;;  %v1140_v43 = vadd.f32 %v1131_v39, %v5521_v42  ;;  %v1092_v45 = vpop.f32.mrb[29].mxu0  ;;  %v1133_v46 = vpop.f32.mrb[29].mxu1  ;;  %v4702_v38 = vld [vmem:[#allocation6 + $0x68] ss:$16 sps:$4 sm:$0xff]   ;;  %v4705_v39 = vld [vmem:[#allocation6 + $0x84] ss:$16 sps:$4 sm:$0xff]  }
 0x46b   :  { %v1139_v48 = vadd.f32 %v1092_v45, %v5522_v47  ;;  %v1141_v50 = vadd.f32 %v1133_v46, %v5523_v49  ;;  %v1094_v51 = vpop.f32.mrb[30].mxu0  ;;  %v1135_v52 = vpop.f32.mrb[30].mxu1  ;;  %v4708_v40 = vld [vmem:[#allocation6 + $0x8c] ss:$16 sps:$4 sm:$0xff]   ;;  %v4714_v42 = vld [vmem:[#allocation6 + $0x88] ss:$16 sps:$4 sm:$0xff]  }
 0x46c   :  { %v3352_v54 = vmul.f32 -1.442695, %v1138_v41  ;;  %v1095_v55 = vpop.f32.mrb[31].mxu0  ;;  %v1136_v56 = vpop.f32.mrb[31].mxu1  ;;  %v4711_v41 = vld [vmem:[#allocation6 + $0x80] ss:$16 sps:$4 sm:$0xff]  }
 0x46d   :  { %v3353_v57 = vmul.f32 -1.442695, %v1139_v48  ;;  %v3354_v29 = vmul.f32 -1.442695, %v1141_v50  ;;  %v4720_v45 = vld [vmem:[#allocation6 + $0xac] ss:$16 sps:$4 sm:$0xff]  }
 0x46e   :  { %3754 = vpow2.f32 %v3352_v54  ;;  %v5525_v46 = vld [vmem:[#allocation21_spill] sm:$0xff]  ;;  %v5526_v48 = vld [vmem:[#allocation22_spill] sm:$0xff]  ;;  %v5527_v49 = vld [vmem:[#allocation23_spill] sm:$0xff] }
 0x46f   :  { %3756 = vpow2.f32 %v3353_v57 }
 0x470   :  { %3758 = vpow2.f32 %v3354_v29 }
 0x471   :  { %3760 = vtanh.f32 %v1140_v43  ;;  %v4717_v43 = vld [vmem:[#allocation6 + $0xa4] ss:$16 sps:$4 sm:$0xff]  }
 0x478   :  { %v3755_v14 = vpop.eup %3754 }
 0x479   :  { %v3757_v13 = vpop.eup %3756  ;;  %v1145_v15 = vadd.f32 1.0, %v3755_v14 }
 0x47a   :  { %v1151_v17 = vadd.f32 1.0, %v3757_v13  ;;  %v3759_v16 = vpop.eup %3758 }
 0x47b   :  { %3762 = vrcp.f32 %v1145_v15  ;;  %v3761_v18 = vpop.eup %3760  ;;  %v1158_v10 = vadd.f32 1.0, %v3759_v16 }
 0x47c   :  { %3764 = vrcp.f32 %v1151_v17 }
 0x47d   :  { %3766 = vrcp.f32 %v1158_v10 }
 0x485   :  { %v3763_v7 = vpop.eup %3762 }
 0x486   :  { %v3765_v12 = vpop.eup %3764  ;;  %v1162_v19 = vmul.f32 %v3763_v7, %v3761_v18 }
 0x487   :  { %v1161_v20 = vmul.f32 %v3765_v12, %v4604_v0  ;;  %v3767_v33 = vpop.eup %3766  ;;  %v4690_v0 = vld [vmem:[#allocation6 + $0x48] ss:$16 sps:$4 sm:$0xff]  }
 0x489   :  { %v4654_v23 = vadd.f32 %v1162_v19, %v1161_v20 }
 0x48b   :  { %3768 = vtanh.f32 %v4654_v23 }
 0x495   :  { %v3769_v34 = vpop.eup %3768 }
 0x496   :  { %v4657_v25 = vmul.f32 %v3769_v34, %v3767_v33 }
 0x498   :  { %v1171_v27 = vpack.c.bf16 %v4657_v25, %v4657_v25 }
 0x49a   :  { %1205 = vmatmul.mubr.bf16.vlgmr.msra.gmra.mrb[32].mxu0 %v1171_v27  ;;  %1246 = vmatmul.mubr.bf16.vlgmr.msra.gmra.mrb[32].mxu1 %v1171_v27  ;;  %v4772_v27 = vld [vmem:[#allocation6 + $0xa8] ss:$16 sps:$4 sm:$0xff]  }
 0x49b   :  { %1289 = vmatpush1.bf16.msra.mxu0 %v4661_v31  ;;  %1330 = vmatpush1.bf16.msra.mxu1 %v4664_v35 }
 0x49c   :  { %1290 = vmatprep.subr.bf16.mxu0 %v4667_v53  ;;  %1331 = vmatprep.subr.bf16.mxu1 %v4670_v21 }
 0x49d   :  { %1320 = vmatprep.mubr.bf16.mxu0 %v5518_v8  ;;  %1361 = vmatprep.mubr.bf16.mxu1 %v5518_v8 }
 0x49f   :  { %1291 = vmatpush1.bf16.msra.mxu0 %v4675_v28  ;;  %1332 = vmatpush1.bf16.msra.mxu1 %v4678_v32 }
 0x4a0   :  { %1292 = vmatprep.subr.bf16.mxu0 %v4681_v24  ;;  %1333 = vmatprep.subr.bf16.mxu1 %v4684_v62 }
 0x4a3   :  { %1293 = vmatpush1.bf16.msra.mxu0 %v4687_v30  ;;  %1334 = vmatpush1.bf16.msra.mxu1 %v4690_v0 }
 0x4a4   :  { %1294 = vmatprep.subr.bf16.mxu0 %v4693_v11  ;;  %1335 = vmatprep.subr.bf16.mxu1 %v4696_v26 }
 0x4a7   :  { %1295 = vmatpush1.bf16.msra.mxu0 %v4699_v44  ;;  %1336 = vmatpush1.bf16.msra.mxu1 %v4702_v38 }
 0x4a8   :  { %1296 = vmatprep.subr.bf16.mxu0 %v4705_v39  ;;  %1337 = vmatprep.subr.bf16.mxu1 %v4708_v40 }
 0x4ab   :  { %1297 = vmatpush1.bf16.msra.mxu0 %v4711_v41  ;;  %1338 = vmatpush1.bf16.msra.mxu1 %v4714_v42 }
 0x4ac   :  { %1298 = vmatprep.subr.bf16.mxu0 %v4717_v43  ;;  %1339 = vmatprep.subr.bf16.mxu1 %v4720_v45 }
 0x4af   :  { %1299 = vmatpush1.bf16.msra.mxu0 %v4334_v58  ;;  %1340 = vmatpush1.bf16.msra.mxu1 %v4336_v59 }
 0x4b0   :  { %1300 = vmatprep.subr.bf16.mxu0 %v4338_v60  ;;  %1341 = vmatprep.subr.bf16.mxu1 %v4340_v61  ;;  %v5524_v60 = vld [vmem:[#allocation20_spill] sm:$0xff] }
 0x4b3   :  { %1301 = vmatpush1.bf16.msra.mxu0 %v4351_v63  ;;  %1342 = vmatpush1.bf16.msra.mxu1 %v4353_v1 }
 0x4b4   :  { %1302 = vmatprep.subr.bf16.mxu0 %v4355_v2  ;;  %1343 = vmatprep.subr.bf16.mxu1 %v4357_v3 }
 0x4b7   :  { %1303 = vmatpush1.bf16.msra.mxu0 %v4363_v4  ;;  %1344 = vmatpush1.bf16.msra.mxu1 %v4365_v5 }
 0x4b8   :  { %1404 = vmatprep.subr.bf16.mxu0 %v4643_v36  ;;  %1445 = vmatprep.subr.bf16.mxu1 %v4646_v37 }
 0x56d   :  { %v1206_v58 = vpop.f32.mrb[32].mxu0  ;;  %v1247_v59 = vpop.f32.mrb[32].mxu1 }
 0x56e   :  { %v1254_v61 = vadd.f32 %v1206_v58, %v5524_v60  ;;  %v1256_v63 = vadd.f32 %v1247_v59, %v5525_v46  ;;  %v1208_v47 = vpop.f32.mrb[33].mxu0  ;;  %v1249_v1 = vpop.f32.mrb[33].mxu1  ;;  %v4775_v58 = vld [vmem:[#allocation6 + $0xc4] ss:$16 sps:$4 sm:$0xff]   ;;  %v4778_v59 = vld [vmem:[#allocation6 + $0xcc] ss:$16 sps:$4 sm:$0xff]  }
 0x56f   :  { %v1255_v2 = vadd.f32 %v1208_v47, %v5526_v48  ;;  %v1257_v3 = vadd.f32 %v1249_v1, %v5527_v49  ;;  %v1210_v50 = vpop.f32.mrb[34].mxu0  ;;  %v1251_v4 = vpop.f32.mrb[34].mxu1  ;;  %v4781_v60 = vld [vmem:[#allocation6 + $0xc0] ss:$16 sps:$4 sm:$0xff]   ;;  %v4787_v46 = vld [vmem:[#allocation6 + $0xe4] ss:$16 sps:$4 sm:$0xff]  }
 0x570   :  { %v3355_v51 = vmul.f32 -1.442695, %v1254_v61  ;;  %v1211_v5 = vpop.f32.mrb[35].mxu0  ;;  %v1252_v52 = vpop.f32.mrb[35].mxu1  ;;  %v4784_v61 = vld [vmem:[#allocation6 + $0xc8] ss:$16 sps:$4 sm:$0xff]  }
 0x571   :  { %v3356_v54 = vmul.f32 -1.442695, %v1255_v2  ;;  %v3357_v55 = vmul.f32 -1.442695, %v1257_v3  ;;  %v4793_v47 = vld [vmem:[#allocation6 + $0xe0] ss:$16 sps:$4 sm:$0xff]  }
 0x572   :  { %3770 = vpow2.f32 %v3355_v51  ;;  %v4796_v1 = vld [vmem:[#allocation6 + $0xe8] ss:$16 sps:$4 sm:$0xff]   ;;  %v5528_v49 = vld [vmem:[#allocation24_spill] sm:$0xff]  ;;  %v5530_v52 = vld [vmem:[#allocation26_spill] sm:$0xff] }
 0x573   :  { %3772 = vpow2.f32 %v3356_v54  ;;  %v5529_v50 = vld [vmem:[#allocation25_spill] sm:$0xff] }
 0x574   :  { %3774 = vpow2.f32 %v3357_v55  ;;  %v5531_v55 = vld [vmem:[#allocation27_spill] sm:$0xff] }
 0x575   :  { %3776 = vtanh.f32 %v1256_v63  ;;  %v4790_v63 = vld [vmem:[#allocation6 + $0xec] ss:$16 sps:$4 sm:$0xff]  }
 0x57c   :  { %v3771_v56 = vpop.eup %3770 }
 0x57d   :  { %v3773_v57 = vpop.eup %3772  ;;  %v1261_v29 = vadd.f32 1.0, %v3771_v56 }
 0x57e   :  { %v1267_v14 = vadd.f32 1.0, %v3773_v57  ;;  %v3775_v13 = vpop.eup %3774 }
 0x57f   :  { %3778 = vrcp.f32 %v1261_v29  ;;  %v3777_v15 = vpop.eup %3776  ;;  %v1274_v7 = vadd.f32 1.0, %v3775_v13 }
 0x580   :  { %3780 = vrcp.f32 %v1267_v14 }
 0x581   :  { %3782 = vrcp.f32 %v1274_v7 }
 0x589   :  { %v3779_v17 = vpop.eup %3778 }
 0x58a   :  { %v3781_v16 = vpop.eup %3780  ;;  %v1278_v18 = vmul.f32 %v3779_v17, %v3777_v15 }
 0x58b   :  { %v1277_v12 = vmul.f32 %v3781_v16, %v4654_v23  ;;  %v3783_v10 = vpop.eup %3782  ;;  %v4769_v23 = vld [vmem:[#allocation6 + $0xa0] ss:$16 sps:$4 sm:$0xff]  }
 0x58d   :  { %v4740_v19 = vadd.f32 %v1278_v18, %v1277_v12 }
 0x58f   :  { %3784 = vtanh.f32 %v4740_v19 }
 0x599   :  { %v3785_v20 = vpop.eup %3784 }
 0x59a   :  { %v4743_v33 = vmul.f32 %v3785_v20, %v3783_v10 }
 0x59c   :  { %v1287_v34 = vpack.c.bf16 %v4743_v33, %v4743_v33 }
 0x59e   :  { %1321 = vmatmul.mubr.bf16.vlgmr.msra.gmra.mrb[36].mxu0 %v1287_v34  ;;  %1362 = vmatmul.mubr.bf16.vlgmr.msra.gmra.mrb[36].mxu1 %v1287_v34 }
 0x59f   :  { %1405 = vmatpush1.bf16.msra.mxu0 %v4661_v31  ;;  %1446 = vmatpush1.bf16.msra.mxu1 %v4664_v35 }
 0x5a0   :  { %1406 = vmatprep.subr.bf16.mxu0 %v4667_v53  ;;  %1447 = vmatprep.subr.bf16.mxu1 %v4670_v21 }
 0x5a1   :  { %1436 = vmatprep.mubr.bf16.mxu0 %v5518_v8  ;;  %1477 = vmatprep.mubr.bf16.mxu1 %v5518_v8 }
 0x5a3   :  { %1407 = vmatpush1.bf16.msra.mxu0 %v4675_v28  ;;  %1448 = vmatpush1.bf16.msra.mxu1 %v4678_v32 }
 0x5a4   :  { %1408 = vmatprep.subr.bf16.mxu0 %v4681_v24  ;;  %1449 = vmatprep.subr.bf16.mxu1 %v4684_v62 }
 0x5a7   :  { %1409 = vmatpush1.bf16.msra.mxu0 %v4687_v30  ;;  %1450 = vmatpush1.bf16.msra.mxu1 %v4690_v0 }
 0x5a8   :  { %1410 = vmatprep.subr.bf16.mxu0 %v4693_v11  ;;  %1451 = vmatprep.subr.bf16.mxu1 %v4696_v26 }
 0x5ab   :  { %1411 = vmatpush1.bf16.msra.mxu0 %v4699_v44  ;;  %1452 = vmatpush1.bf16.msra.mxu1 %v4702_v38 }
 0x5ac   :  { %1412 = vmatprep.subr.bf16.mxu0 %v4705_v39  ;;  %1453 = vmatprep.subr.bf16.mxu1 %v4708_v40 }
 0x5af   :  { %1413 = vmatpush1.bf16.msra.mxu0 %v4711_v41  ;;  %1454 = vmatpush1.bf16.msra.mxu1 %v4714_v42 }
 0x5b0   :  { %1414 = vmatprep.subr.bf16.mxu0 %v4717_v43  ;;  %1455 = vmatprep.subr.bf16.mxu1 %v4720_v45 }
 0x5b3   :  { %1415 = vmatpush1.bf16.msra.mxu0 %v4769_v23  ;;  %1456 = vmatpush1.bf16.msra.mxu1 %v4772_v27 }
 0x5b4   :  { %1416 = vmatprep.subr.bf16.mxu0 %v4775_v58  ;;  %1457 = vmatprep.subr.bf16.mxu1 %v4778_v59 }
 0x5b7   :  { %1417 = vmatpush1.bf16.msra.mxu0 %v4781_v60  ;;  %1458 = vmatpush1.bf16.msra.mxu1 %v4784_v61 }
 0x5b8   :  { %1418 = vmatprep.subr.bf16.mxu0 %v4787_v46  ;;  %1459 = vmatprep.subr.bf16.mxu1 %v4790_v63 }
 0x5bb   :  { %1419 = vmatpush1.bf16.msra.mxu0 %v4793_v47  ;;  %1460 = vmatpush1.bf16.msra.mxu1 %v4796_v1 }
 0x5bc   :  { %1520 = vmatprep.subr.bf16.mxu0 %v4643_v36  ;;  %1561 = vmatprep.subr.bf16.mxu1 %v4646_v37 }
 0x671   :  { %v1322_v48 = vpop.f32.mrb[36].mxu0  ;;  %v1363_v2 = vpop.f32.mrb[36].mxu1 }
 0x672   :  { %v1370_v3 = vadd.f32 %v1322_v48, %v5528_v49  ;;  %v1372_v4 = vadd.f32 %v1363_v2, %v5529_v50  ;;  %v1324_v51 = vpop.f32.mrb[37].mxu0  ;;  %v1365_v5 = vpop.f32.mrb[37].mxu1 }
 0x673   :  { %v1371_v54 = vadd.f32 %v1324_v51, %v5530_v52  ;;  %v1373_v56 = vadd.f32 %v1365_v5, %v5531_v55  ;;  %v1326_v57 = vpop.f32.mrb[38].mxu0  ;;  %v1367_v29 = vpop.f32.mrb[38].mxu1 }
 0x674   :  { %v3358_v14 = vmul.f32 -1.442695, %v1370_v3  ;;  %v1327_v13 = vpop.f32.mrb[39].mxu0  ;;  %v1368_v15 = vpop.f32.mrb[39].mxu1  ;;  %v3602_v29 = vld [vmem:[#allocation8] ss:$16 sps:$4 sm:$0xff]  }
 0x675   :  { %v3359_v36 = vmul.f32 -1.442695, %v1371_v54  ;;  %v3360_v37 = vmul.f32 -1.442695, %v1373_v56  ;;  %v3610_v15 = vld [vmem:[#allocation8 + $0x24] ss:$16 sps:$4 sm:$0xff]  }
 0x676   :  { %3786 = vpow2.f32 %v3358_v14  ;;  %v3605_v14 = vld [vmem:[#allocation8 + $0x8] ss:$16 sps:$4 sm:$0xff]  }
 0x677   :  { %3788 = vpow2.f32 %v3359_v36  ;;  %v3613_v36 = vld [vmem:[#allocation8 + $0x2c] ss:$16 sps:$4 sm:$0xff]  }
 0x678   :  { %3790 = vpow2.f32 %v3360_v37  ;;  %v3608_v37 = vld [vmem:[#allocation8 + $0x20] ss:$16 sps:$4 sm:$0xff]  }
 0x679   :  { %3792 = vtanh.f32 %v1372_v4 }
 0x680   :  { %v3787_v17 = vpop.eup %3786 }
 0x681   :  { %v3789_v16 = vpop.eup %3788  ;;  %v1377_v18 = vadd.f32 1.0, %v3787_v17  ;;  %v3611_v17 = vld [vmem:[#allocation8 + $0x28] ss:$16 sps:$4 sm:$0xff]  }
 0x682   :  { %v1383_v7 = vadd.f32 1.0, %v3789_v16  ;;  %v3791_v12 = vpop.eup %3790  ;;  %v3616_v16 = vld [vmem:[#allocation8 + $0x44] ss:$16 sps:$4 sm:$0xff]  }
 0x683   :  { %3794 = vrcp.f32 %v1377_v18  ;;  %v3793_v10 = vpop.eup %3792  ;;  %v1390_v2 = vadd.f32 1.0, %v3791_v12  ;;  %v3619_v18 = vld [vmem:[#allocation8 + $0x4c] ss:$16 sps:$4 sm:$0xff]   ;;  %v3617_v12 = vld [vmem:[#allocation8 + $0x48] ss:$16 sps:$4 sm:$0xff]  }
 0x684   :  { %3796 = vrcp.f32 %v1383_v7  ;;  %v3614_v7 = vld [vmem:[#allocation8 + $0x40] ss:$16 sps:$4 sm:$0xff]  }
 0x685   :  { %3798 = vrcp.f32 %v1390_v2  ;;  %v3628_v2 = vld [vmem:[#allocation8 + $0x84] ss:$16 sps:$4 sm:$0xff]  }
 0x68d   :  { %v3795_v20 = vpop.eup %3794 }
 0x68e   :  { %v3797_v34 = vpop.eup %3796  ;;  %v1394_v48 = vmul.f32 %v3795_v20, %v3793_v10  ;;  %v3622_v10 = vld [vmem:[#allocation8 + $0x64] ss:$16 sps:$4 sm:$0xff]   ;;  %v3625_v20 = vld [vmem:[#allocation8 + $0x6c] ss:$16 sps:$4 sm:$0xff]  }
 0x68f   :  { %v1393_v49 = vmul.f32 %v3797_v34, %v4740_v19  ;;  %v3799_v50 = vpop.eup %3798  ;;  %v3620_v34 = vld [vmem:[#allocation8 + $0x60] ss:$16 sps:$4 sm:$0xff]  }
 0x691   :  { %v4806_v3 = vadd.f32 %v1394_v48, %v1393_v49  ;;  %v3623_v48 = vld [vmem:[#allocation8 + $0x68] ss:$16 sps:$4 sm:$0xff]   ;;  %v3631_v49 = vld [vmem:[#allocation8 + $0x8c] ss:$16 sps:$4 sm:$0xff]  }
 0x693   :  { %3800 = vtanh.f32 %v4806_v3 }
 0x69d   :  { %v3801_v51 = vpop.eup %3800 }
 0x69e   :  { %v4809_v5 = vmul.f32 %v3801_v51, %v3799_v50  ;;  %v3629_v50 = vld [vmem:[#allocation8 + $0x88] ss:$16 sps:$4 sm:$0xff]   ;;  %v3634_v51 = vld [vmem:[#allocation8 + $0xa4] ss:$16 sps:$4 sm:$0xff]  }
 0x6a0   :  { %v1403_v4 = vpack.c.bf16 %v4809_v5, %v4809_v5 }
 0x6a2   :  { %1437 = vmatmul.mubr.bf16.vlgmr.msra.gmra.mrb[40].mxu0 %v1403_v4  ;;  %1478 = vmatmul.mubr.bf16.vlgmr.msra.gmra.mrb[40].mxu1 %v1403_v4  ;;  %v3637_v4 = vld [vmem:[#allocation8 + $0xac] ss:$16 sps:$4 sm:$0xff]  }
 0x6a3   :  { %1521 = vmatpush1.bf16.msra.mxu0 %v4661_v31  ;;  %1562 = vmatpush1.bf16.msra.mxu1 %v4664_v35  ;;  %v3604_v31 = vld [vmem:[#allocation8 + $0x4] ss:$16 sps:$4 sm:$0xff]   ;;  %v3607_v35 = vld [vmem:[#allocation8 + $0xc] ss:$16 sps:$4 sm:$0xff]  }
 0x6a4   :  { %1522 = vmatprep.subr.bf16.mxu0 %v4667_v53  ;;  %1563 = vmatprep.subr.bf16.mxu1 %v4670_v21 }
 0x6a5   :  { %1552 = vmatprep.mubr.bf16.mxu0 %v5518_v8  ;;  %1593 = vmatprep.mubr.bf16.mxu1 %v5518_v8 }
 0x6a7   :  { %1523 = vmatpush1.bf16.msra.mxu0 %v4675_v28  ;;  %1564 = vmatpush1.bf16.msra.mxu1 %v4678_v32  ;;  %v5532_v28 = vld [vmem:[#allocation28_spill] sm:$0xff] }
 0x6a8   :  { %1524 = vmatprep.subr.bf16.mxu0 %v4681_v24  ;;  %1565 = vmatprep.subr.bf16.mxu1 %v4684_v62  ;;  %v5533_v24 = vld [vmem:[#allocation29_spill] sm:$0xff] }
 0x6ab   :  { %1525 = vmatpush1.bf16.msra.mxu0 %v4687_v30  ;;  %1566 = vmatpush1.bf16.msra.mxu1 %v4690_v0 }
 0x6ac   :  { %1526 = vmatprep.subr.bf16.mxu0 %v4693_v11  ;;  %1567 = vmatprep.subr.bf16.mxu1 %v4696_v26  ;;  %v5534_v11 = vld [vmem:[#allocation30_spill] sm:$0xff] }
 0x6af   :  { %1527 = vmatpush1.bf16.msra.mxu0 %v4699_v44  ;;  %1568 = vmatpush1.bf16.msra.mxu1 %v4702_v38  ;;  %v5535_v44 = vld [vmem:[#allocation31_spill] sm:$0xff] }
 0x6b0   :  { %1528 = vmatprep.subr.bf16.mxu0 %v4705_v39  ;;  %1569 = vmatprep.subr.bf16.mxu1 %v4708_v40 }
 0x6b3   :  { %1529 = vmatpush1.bf16.msra.mxu0 %v4711_v41  ;;  %1570 = vmatpush1.bf16.msra.mxu1 %v4714_v42 }
 0x6b4   :  { %1530 = vmatprep.subr.bf16.mxu0 %v4717_v43  ;;  %1571 = vmatprep.subr.bf16.mxu1 %v4720_v45 }
 0x6b7   :  { %1531 = vmatpush1.bf16.msra.mxu0 %v4769_v23  ;;  %1572 = vmatpush1.bf16.msra.mxu1 %v4772_v27 }
 0x6b8   :  { %1532 = vmatprep.subr.bf16.mxu0 %v4775_v58  ;;  %1573 = vmatprep.subr.bf16.mxu1 %v4778_v59 }
 0x6bb   :  { %1533 = vmatpush1.bf16.msra.mxu0 %v4781_v60  ;;  %1574 = vmatpush1.bf16.msra.mxu1 %v4784_v61 }
 0x6bc   :  { %1534 = vmatprep.subr.bf16.mxu0 %v4787_v46  ;;  %1575 = vmatprep.subr.bf16.mxu1 %v4790_v63 }
 0x6bf   :  { %1535 = vmatpush1.bf16.msra.mxu0 %v4793_v47  ;;  %1576 = vmatpush1.bf16.msra.mxu1 %v4796_v1 }
 0x6c0   :  { %1857 = vmatprep.subr.bf16.mxu0 %v3604_v31  ;;  %1930 = vmatprep.subr.bf16.mxu1 %v3607_v35  ;;  %v3632_v31 = vld [vmem:[#allocation8 + $0xa0] ss:$16 sps:$4 sm:$0xff]   ;;  %v3635_v35 = vld [vmem:[#allocation8 + $0xa8] ss:$16 sps:$4 sm:$0xff]  }
 0x775   :  { %v1438_v53 = vpop.f32.mrb[40].mxu0  ;;  %v1479_v21 = vpop.f32.mrb[40].mxu1 }
 0x776   :  { %v1486_v32 = vadd.f32 %v1438_v53, %v5532_v28  ;;  %v1488_v62 = vadd.f32 %v1479_v21, %v5533_v24  ;;  %v1440_v30 = vpop.f32.mrb[41].mxu0  ;;  %v1481_v0 = vpop.f32.mrb[41].mxu1  ;;  %v3640_v53 = vld [vmem:[#allocation8 + $0xc4] ss:$16 sps:$4 sm:$0xff]   ;;  %v3643_v21 = vld [vmem:[#allocation8 + $0xcc] ss:$16 sps:$4 sm:$0xff]  }
 0x777   :  { %v1487_v26 = vadd.f32 %v1440_v30, %v5534_v11  ;;  %v1489_v38 = vadd.f32 %v1481_v0, %v5535_v44  ;;  %v1442_v39 = vpop.f32.mrb[42].mxu0  ;;  %v1483_v40 = vpop.f32.mrb[42].mxu1  ;;  %v3638_v28 = vld [vmem:[#allocation8 + $0xc0] ss:$16 sps:$4 sm:$0xff]   ;;  %v3646_v24 = vld [vmem:[#allocation8 + $0xe4] ss:$16 sps:$4 sm:$0xff]   ;;  %v1639_v11 = vpack.c.bf16 %v4561_v9, %v4515_v22  ;;  %v1641_v44 = vpack.c.bf16 %v4809_v5, %v4743_v33 }
 0x778   :  { %v3361_v41 = vmul.f32 -1.442695, %v1486_v32  ;;  %v1443_v42 = vpop.f32.mrb[43].mxu0  ;;  %v1484_v43 = vpop.f32.mrb[43].mxu1  ;;  %v3641_v32 = vld [vmem:[#allocation8 + $0xc8] ss:$16 sps:$4 sm:$0xff]  }
 0x779   :  { %v3362_v45 = vmul.f32 -1.442695, %v1487_v26  ;;  %v3363_v19 = vmul.f32 -1.442695, %v1489_v38  ;;  %v3644_v30 = vld [vmem:[#allocation8 + $0xe0] ss:$16 sps:$4 sm:$0xff]   ;;  %v1640_v26 = vpack.c.bf16 %v4657_v25, %v4607_v6 }
 0x77a   :  { %3802 = vpow2.f32 %v3361_v41  ;;  %v3647_v0 = vld [vmem:[#allocation8 + $0xe8] ss:$16 sps:$4 sm:$0xff]   ;;  %v4871_v22 = vld [vmem:[#allocation9 + $0x4] ss:$16 sps:$4 sm:$0xff]   ;;  %v4873_v9 = vld [vmem:[#allocation9 + $0xc] ss:$16 sps:$4 sm:$0xff]  }
 0x77b   :  { %3804 = vpow2.f32 %v3362_v45  ;;  %v4875_v6 = vld [vmem:[#allocation9] ss:$16 sps:$4 sm:$0xff]   ;;  %v4877_v25 = vld [vmem:[#allocation9 + $0x8] ss:$16 sps:$4 sm:$0xff]   ;;  %v4883_v33 = vld [vmem:[#allocation9 + $0x24] ss:$16 sps:$4 sm:$0xff]  }
 0x77c   :  { %3806 = vpow2.f32 %v3363_v19  ;;  %v4885_v5 = vld [vmem:[#allocation9 + $0x2c] ss:$16 sps:$4 sm:$0xff]   ;;  %v4887_v38 = vld [vmem:[#allocation9 + $0x20] ss:$16 sps:$4 sm:$0xff]   ;;  %v4889_v39 = vld [vmem:[#allocation9 + $0x28] ss:$16 sps:$4 sm:$0xff]  }
 0x77d   :  { %3808 = vtanh.f32 %v1488_v62  ;;  %v3649_v62 = vld [vmem:[#allocation8 + $0xec] ss:$16 sps:$4 sm:$0xff]   ;;  %v4895_v40 = vld [vmem:[#allocation9 + $0x44] ss:$16 sps:$4 sm:$0xff]   ;;  %v4899_v42 = vld [vmem:[#allocation9 + $0x40] ss:$16 sps:$4 sm:$0xff]  }
 0x77e   :  { %v4897_v41 = vld [vmem:[#allocation9 + $0x4c] ss:$16 sps:$4 sm:$0xff]   ;;  %v4901_v43 = vld [vmem:[#allocation9 + $0x48] ss:$16 sps:$4 sm:$0xff]   ;;  %v4907_v45 = vld [vmem:[#allocation9 + $0x64] ss:$16 sps:$4 sm:$0xff]  }
 0x77f   :  { %v4909_v19 = vld [vmem:[#allocation9 + $0x6c] ss:$16 sps:$4 sm:$0xff]  }
 0x784   :  { %v3803_v23 = vpop.eup %3802 }
 0x785   :  { %v3805_v27 = vpop.eup %3804  ;;  %v1493_v58 = vadd.f32 1.0, %v3803_v23  ;;  %v4911_v23 = vld [vmem:[#allocation9 + $0x60] ss:$16 sps:$4 sm:$0xff]  }
 0x786   :  { %v1499_v59 = vadd.f32 1.0, %v3805_v27  ;;  %v3807_v60 = vpop.eup %3806  ;;  %v4913_v27 = vld [vmem:[#allocation9 + $0x68] ss:$16 sps:$4 sm:$0xff]  }
 0x787   :  { %3810 = vrcp.f32 %v1493_v58  ;;  %v3809_v61 = vpop.eup %3808  ;;  %v1506_v1 = vadd.f32 1.0, %v3807_v60  ;;  %v4919_v58 = vld [vmem:[#allocation9 + $0x84] ss:$16 sps:$4 sm:$0xff]   ;;  %v4923_v60 = vld [vmem:[#allocation9 + $0x80] ss:$16 sps:$4 sm:$0xff]  }
 0x788   :  { %3812 = vrcp.f32 %v1499_v59  ;;  %v4921_v59 = vld [vmem:[#allocation9 + $0x8c] ss:$16 sps:$4 sm:$0xff]  }
 0x789   :  { %3814 = vrcp.f32 %v1506_v1  ;;  %v4937_v1 = vld [vmem:[#allocation9 + $0xa8] ss:$16 sps:$4 sm:$0xff]  }
 0x791   :  { %v3811_v46 = vpop.eup %3810 }
 0x792   :  { %v3813_v63 = vpop.eup %3812  ;;  %v1510_v47 = vmul.f32 %v3811_v46, %v3809_v61  ;;  %v4925_v61 = vld [vmem:[#allocation9 + $0x88] ss:$16 sps:$4 sm:$0xff]   ;;  %v4931_v46 = vld [vmem:[#allocation9 + $0xa4] ss:$16 sps:$4 sm:$0xff]  }
 0x793   :  { %v1509_v52 = vmul.f32 %v3813_v63, %v4806_v3  ;;  %v3815_v55 = vpop.eup %3814  ;;  %v3626_v3 = vld [vmem:[#allocation8 + $0x80] ss:$16 sps:$4 sm:$0xff]   ;;  %v4933_v63 = vld [vmem:[#allocation9 + $0xac] ss:$16 sps:$4 sm:$0xff]  }
 0x795   :  { %v4850_v54 = vadd.f32 %v1510_v47, %v1509_v52  ;;  %v4935_v47 = vld [vmem:[#allocation9 + $0xa0] ss:$16 sps:$4 sm:$0xff]   ;;  %v4943_v52 = vld [vmem:[#allocation9 + $0xc4] ss:$16 sps:$4 sm:$0xff]  }
 0x797   :  { %3816 = vtanh.f32 %v4850_v54 }
 0x7a1   :  { %v3817_v56 = vpop.eup %3816 }
 0x7a2   :  { %v4853_v57 = vmul.f32 %v3817_v56, %v3815_v55  ;;  %v4945_v55 = vld [vmem:[#allocation9 + $0xcc] ss:$16 sps:$4 sm:$0xff]   ;;  %v4947_v56 = vld [vmem:[#allocation9 + $0xc0] ss:$16 sps:$4 sm:$0xff]  }
 0x7a4   :  { %v1519_v13 = vpack.c.bf16 %v4853_v57, %v4853_v57 }
 0x7a6   :  { %1553 = vmatmul.mubr.bf16.vlgmr.msra.gmra.mrb[44].mxu0 %v1519_v13  ;;  %1594 = vmatmul.mubr.bf16.vlgmr.msra.gmra.mrb[44].mxu1 %v1519_v13  ;;  %v4957_v13 = vld [vmem:[#allocation9 + $0xec] ss:$16 sps:$4 sm:$0xff]  }
 0x7a7   :  { %1858 = vmatpush1.bf16.msra.mxu0 %v3602_v29  ;;  %1931 = vmatpush1.bf16.msra.mxu1 %v3605_v14  ;;  %v4949_v29 = vld [vmem:[#allocation9 + $0xc8] ss:$16 sps:$4 sm:$0xff]   ;;  %v4955_v14 = vld [vmem:[#allocation9 + $0xe4] ss:$16 sps:$4 sm:$0xff]  }
 0x7a8   :  { %1859 = vmatprep.subr.bf16.mxu0 %v3610_v15  ;;  %1932 = vmatprep.subr.bf16.mxu1 %v3613_v36  ;;  %v4959_v15 = vld [vmem:[#allocation9 + $0xe0] ss:$16 sps:$4 sm:$0xff]   ;;  %v4961_v36 = vld [vmem:[#allocation9 + $0xe8] ss:$16 sps:$4 sm:$0xff]  }
 0x7a9   :  { %1889 = vmatprep.mubr.bf16.mxu0 %v5518_v8  ;;  %1962 = vmatprep.mubr.bf16.mxu1 %v5518_v8 }
 0x7ab   :  { %1860 = vmatpush1.bf16.msra.mxu0 %v3608_v37  ;;  %1933 = vmatpush1.bf16.msra.mxu1 %v3611_v17 }
 0x7ac   :  { %1861 = vmatprep.subr.bf16.mxu0 %v3616_v16  ;;  %1934 = vmatprep.subr.bf16.mxu1 %v3619_v18  ;;  %v5536_v16 = vld [vmem:[#allocation32_spill] sm:$0xff] }
 0x7af   :  { %1862 = vmatpush1.bf16.msra.mxu0 %v3614_v7  ;;  %1935 = vmatpush1.bf16.msra.mxu1 %v3617_v12  ;;  %v5537_v7 = vld [vmem:[#allocation33_spill] sm:$0xff] }
 0x7b0   :  { %1863 = vmatprep.subr.bf16.mxu0 %v3622_v10  ;;  %1936 = vmatprep.subr.bf16.mxu1 %v3625_v20 }
 0x7b3   :  { %1864 = vmatpush1.bf16.msra.mxu0 %v3620_v34  ;;  %1937 = vmatpush1.bf16.msra.mxu1 %v3623_v48  ;;  %v5538_v34 = vld [vmem:[#allocation34_spill] sm:$0xff] }
 0x7b4   :  { %1865 = vmatprep.subr.bf16.mxu0 %v3628_v2  ;;  %1938 = vmatprep.subr.bf16.mxu1 %v3631_v49  ;;  %v5539_v2 = vld [vmem:[#allocation35_spill] sm:$0xff] }
 0x7b7   :  { %1866 = vmatpush1.bf16.msra.mxu0 %v3626_v3  ;;  %1939 = vmatpush1.bf16.msra.mxu1 %v3629_v50 }
 0x7b8   :  { %1867 = vmatprep.subr.bf16.mxu0 %v3634_v51  ;;  %1940 = vmatprep.subr.bf16.mxu1 %v3637_v4 }
 0x7bb   :  { %1868 = vmatpush1.bf16.msra.mxu0 %v3632_v31  ;;  %1941 = vmatpush1.bf16.msra.mxu1 %v3635_v35 }
 0x7bc   :  { %1869 = vmatprep.subr.bf16.mxu0 %v3640_v53  ;;  %1942 = vmatprep.subr.bf16.mxu1 %v3643_v21 }
 0x7bf   :  { %1870 = vmatpush1.bf16.msra.mxu0 %v3638_v28  ;;  %1943 = vmatpush1.bf16.msra.mxu1 %v3641_v32 }
 0x7c0   :  { %1871 = vmatprep.subr.bf16.mxu0 %v3646_v24  ;;  %1944 = vmatprep.subr.bf16.mxu1 %v3649_v62 }
 0x7c3   :  { %1872 = vmatpush1.bf16.msra.mxu0 %v3644_v30  ;;  %1945 = vmatpush1.bf16.msra.mxu1 %v3647_v0 }
 0x7c4   :  { %2231 = vmatprep.subr.bf16.mxu0 %v4871_v22  ;;  %2272 = vmatprep.subr.bf16.mxu1 %v4873_v9 }
 0x7c6   :  { %1890 = vmatmul.mubr.bf16.vlgmr.msra.gmra.mrb[48].mxu0 %v1639_v11  ;;  %1963 = vmatmul.mubr.bf16.vlgmr.msra.gmra.mrb[48].mxu1 %v1639_v11 }
 0x7c7   :  { %1899 = vmatprep.mubr.bf16.mxu0 %v5518_v8  ;;  %1972 = vmatprep.mubr.bf16.mxu1 %v5518_v8 }
 0x7c8   :  { %2232 = vmatpush1.bf16.msra.mxu0 %v4875_v6  ;;  %2273 = vmatpush1.bf16.msra.mxu1 %v4877_v25 }
 0x7c9   :  { %2233 = vmatprep.subr.bf16.mxu0 %v4883_v33  ;;  %2274 = vmatprep.subr.bf16.mxu1 %v4885_v5 }
 0x7cc   :  { %2234 = vmatpush1.bf16.msra.mxu0 %v4887_v38  ;;  %2275 = vmatpush1.bf16.msra.mxu1 %v4889_v39 }
 0x7cd   :  { %2235 = vmatprep.subr.bf16.mxu0 %v4895_v40  ;;  %2276 = vmatprep.subr.bf16.mxu1 %v4897_v41 }
 0x7ce   :  { %1900 = vmatmul.mubr.bf16.gmra.mrb[52].mxu0 %v1640_v26  ;;  %1973 = vmatmul.mubr.bf16.gmra.mrb[52].mxu1 %v1640_v26 }
 0x7cf   :  { %1909 = vmatprep.mubr.bf16.mxu0 %v5518_v8  ;;  %1982 = vmatprep.mubr.bf16.mxu1 %v5518_v8 }
 0x7d0   :  { %2236 = vmatpush1.bf16.msra.mxu0 %v4899_v42  ;;  %2277 = vmatpush1.bf16.msra.mxu1 %v4901_v43 }
 0x7d1   :  { %2237 = vmatprep.subr.bf16.mxu0 %v4907_v45  ;;  %2278 = vmatprep.subr.bf16.mxu1 %v4909_v19 }
 0x7d4   :  { %2238 = vmatpush1.bf16.msra.mxu0 %v4911_v23  ;;  %2279 = vmatpush1.bf16.msra.mxu1 %v4913_v27 }
 0x7d5   :  { %2239 = vmatprep.subr.bf16.mxu0 %v4919_v58  ;;  %2280 = vmatprep.subr.bf16.mxu1 %v4921_v59 }
 0x7d6   :  { %1910 = vmatmul.mubr.bf16.gmra.mrb[56].mxu0 %v1641_v44  ;;  %1983 = vmatmul.mubr.bf16.gmra.mrb[56].mxu1 %v1641_v44 }
 0x7d7   :  { %1919 = vmatprep.mubr.bf16.mxu0 %v5518_v8  ;;  %1992 = vmatprep.mubr.bf16.mxu1 %v5518_v8 }
 0x7d8   :  { %2240 = vmatpush1.bf16.msra.mxu0 %v4923_v60  ;;  %2281 = vmatpush1.bf16.msra.mxu1 %v4925_v61 }
 0x7d9   :  { %2241 = vmatprep.subr.bf16.mxu0 %v4931_v46  ;;  %2282 = vmatprep.subr.bf16.mxu1 %v4933_v63 }
 0x7dc   :  { %2242 = vmatpush1.bf16.msra.mxu0 %v4935_v47  ;;  %2283 = vmatpush1.bf16.msra.mxu1 %v4937_v1 }
 0x7dd   :  { %2243 = vmatprep.subr.bf16.mxu0 %v4943_v52  ;;  %2284 = vmatprep.subr.bf16.mxu1 %v4945_v55 }
 0x7e0   :  { %2244 = vmatpush1.bf16.msra.mxu0 %v4947_v56  ;;  %2285 = vmatpush1.bf16.msra.mxu1 %v4949_v29 }
 0x7e1   :  { %2245 = vmatprep.subr.bf16.mxu0 %v4955_v14  ;;  %2286 = vmatprep.subr.bf16.mxu1 %v4957_v13 }
 0x7e4   :  { %2246 = vmatpush1.bf16.msra.mxu0 %v4959_v15  ;;  %2287 = vmatpush1.bf16.msra.mxu1 %v4961_v36 }
 0x7e5   :  { %2346 = vmatprep.subr.bf16.mxu0 %v4871_v22  ;;  %2387 = vmatprep.subr.bf16.mxu1 %v4873_v9 }
 0x879   :  { %v1554_v37 = vpop.f32.mrb[44].mxu0  ;;  %v1595_v17 = vpop.f32.mrb[44].mxu1 }
 0x87a   :  { %v1602_v18 = vadd.f32 %v1554_v37, %v5536_v16  ;;  %v1604_v12 = vadd.f32 %v1595_v17, %v5537_v7  ;;  %v1556_v10 = vpop.f32.mrb[45].mxu0  ;;  %v1597_v20 = vpop.f32.mrb[45].mxu1 }
 0x87b   :  { %v1603_v48 = vadd.f32 %v1556_v10, %v5538_v34  ;;  %v1605_v49 = vadd.f32 %v1597_v20, %v5539_v2  ;;  %v1558_v3 = vpop.f32.mrb[46].mxu0  ;;  %v1599_v50 = vpop.f32.mrb[46].mxu1 }
 0x87c   :  { %v3364_v51 = vmul.f32 -1.442695, %v1602_v18  ;;  %v1559_v4 = vpop.f32.mrb[47].mxu0  ;;  %v1600_v31 = vpop.f32.mrb[47].mxu1 }
 0x87d   :  { %v3365_v35 = vmul.f32 -1.442695, %v1603_v48  ;;  %v3366_v53 = vmul.f32 -1.442695, %v1605_v49 }
 0x87e   :  { %3818 = vpow2.f32 %v3364_v51 }
 0x87f   :  { %3820 = vpow2.f32 %v3365_v35 }
 0x880   :  { %3822 = vpow2.f32 %v3366_v53 }
 0x881   :  { %3824 = vtanh.f32 %v1604_v12 }
 0x888   :  { %v3819_v21 = vpop.eup %3818 }
 0x889   :  { %v3821_v28 = vpop.eup %3820  ;;  %v1609_v32 = vadd.f32 1.0, %v3819_v21 }
 0x88a   :  { %v1615_v24 = vadd.f32 1.0, %v3821_v28  ;;  %v3823_v62 = vpop.eup %3822 }
 0x88b   :  { %3826 = vrcp.f32 %v1609_v32  ;;  %v3825_v30 = vpop.eup %3824  ;;  %v1622_v44 = vadd.f32 1.0, %v3823_v62 }
 0x88c   :  { %3828 = vrcp.f32 %v1615_v24 }
 0x88d   :  { %3830 = vrcp.f32 %v1622_v44  ;;  %v1675_v44 = vld [vmem:[%s5484_s6] sm:$0xf] }
 0x895   :  { %v3827_v0 = vpop.eup %3826 }
 0x896   :  { %v3829_v11 = vpop.eup %3828  ;;  %v1626_v26 = vmul.f32 %v3827_v0, %v3825_v30 }
 0x897   :  { %v1625_v37 = vmul.f32 %v3829_v11, %v4850_v54  ;;  %v3831_v4 = vpop.eup %3830 }
 0x899   :  { %v4974_v17 = vpop.f32.mrb[48].mxu0  ;;  %v4976_v16 = vpop.f32.mrb[48].mxu1  ;;  %v1627_v18 = vadd.f32 %v1626_v26, %v1625_v37 }
 0x89a   :  { %v4978_v7 = vpop.f32.mrb[49].mxu0  ;;  %v4980_v12 = vpop.f32.mrb[49].mxu1 }
 0x89b   :  { %v4982_v10 = vpop.f32.mrb[50].mxu0  ;;  %v4984_v20 = vpop.f32.mrb[50].mxu1  ;;  %3832 = vtanh.f32 %v1627_v18 }
 0x89c   :  { %v4986_v34 = vpop.f32.mrb[51].mxu0  ;;  %v4988_v48 = vpop.f32.mrb[51].mxu1 }
 0x8a1   :  { %v4990_v54 = vpop.f32.mrb[52].mxu0  ;;  %v4992_v2 = vpop.f32.mrb[52].mxu1 }
 0x8a2   :  { %5540 = vst [vmem:[#allocation15_spill] sm:$0xff] %v4992_v2  ;;  %v4994_v49 = vpop.f32.mrb[53].mxu0  ;;  %v4996_v3 = vpop.f32.mrb[53].mxu1 }
 0x8a3   :  { %5541 = vst [vmem:[#allocation16_spill] sm:$0xff] %v4994_v49  ;;  %5542 = vst [vmem:[#allocation17_spill] sm:$0xff] %v4996_v3  ;;  %v4998_v50 = vpop.f32.mrb[54].mxu0  ;;  %v5000_v51 = vpop.f32.mrb[54].mxu1 }
 0x8a4   :  { %5543 = vst [vmem:[#allocation18_spill] sm:$0xff] %v4998_v50  ;;  %5544 = vst [vmem:[#allocation19_spill] sm:$0xff] %v5000_v51  ;;  %v5002_v31 = vpop.f32.mrb[55].mxu0  ;;  %v5004_v35 = vpop.f32.mrb[55].mxu1 }
 0x8a5   :  { %5545 = vst [vmem:[#allocation20_spill] sm:$0xff] %v5002_v31  ;;  %5546 = vst [vmem:[#allocation21_spill] sm:$0xff] %v5004_v35  ;;  %v3833_v53 = vpop.eup %3832 }
 0x8a6   :  { %v1629_v21 = vmul.f32 %v3833_v53, %v3831_v4 }
 0x8a8   :  { %v1642_v28 = vpack.c.bf16 %v1629_v21, %v4853_v57 }
 0x8a9   :  { %v5007_v32 = vpop.f32.mrb[56].mxu0  ;;  %v5009_v24 = vpop.f32.mrb[56].mxu1 }
 0x8aa   :  { %5547 = vst [vmem:[#allocation22_spill] sm:$0xff] %v5007_v32  ;;  %5548 = vst [vmem:[#allocation23_spill] sm:$0xff] %v5009_v24  ;;  %v5011_v62 = vpop.f32.mrb[57].mxu0  ;;  %v5013_v30 = vpop.f32.mrb[57].mxu1  ;;  %1920 = vmatmul.mubr.bf16.gmra.mrb[60].mxu0 %v1642_v28  ;;  %1993 = vmatmul.mubr.bf16.gmra.mrb[60].mxu1 %v1642_v28 }
 0x8ab   :  { %5549 = vst [vmem:[#allocation24_spill] sm:$0xff] %v5011_v62  ;;  %5550 = vst [vmem:[#allocation25_spill] sm:$0xff] %v5013_v30  ;;  %v5015_v0 = vpop.f32.mrb[58].mxu0  ;;  %v5017_v11 = vpop.f32.mrb[58].mxu1  ;;  %2263 = vmatprep.mubr.bf16.mxu0 %v5518_v8  ;;  %2304 = vmatprep.mubr.bf16.mxu1 %v5518_v8 }
 0x8ac   :  { %5551 = vst [vmem:[#allocation26_spill] sm:$0xff] %v5015_v0  ;;  %5552 = vst [vmem:[#allocation27_spill] sm:$0xff] %v5017_v11  ;;  %v5021_v26 = vpop.f32.mrb[59].mxu0  ;;  %v5023_v57 = vpop.f32.mrb[59].mxu1 }
 0x8ad   :  { %5553 = vst [vmem:[#allocation28_spill] sm:$0xff] %v5021_v26  ;;  %5554 = vst [vmem:[#allocation29_spill] sm:$0xff] %v5023_v57  ;;  %v5561_v57 = vld [vmem:[#allocation14_spill] sm:$0xff] }
 0x8ae   :  { %v5562_v26 = vsub.s32 0, %v5561_v57  ;;  %v5563_v0 = vsub.s32 2, %v5561_v57 }
 0x8b0   :  { %v5078_v11 = vrot.slane %v1675_v44, %v5562_v26  ;;  %v5082_v30 = vrot.slane %v1675_v44, %v5563_v0 }
 0x8b2   :  { %2264 = vmatmul.mubr.bf16.vlgmr.msra.gmra.mrb[64].mxu0 %v5518_v8  ;;  %2305 = vmatmul.mubr.bf16.vlgmr.msra.gmra.mrb[64].mxu1 %v5518_v8  ;;  %v1892_v26 = vadd.f32 %v4974_v17, %v5078_v11 }
 0x8b3   :  { %2347 = vmatpush1.bf16.msra.mxu0 %v4875_v6  ;;  %2388 = vmatpush1.bf16.msra.mxu1 %v4877_v25 }
 0x8b4   :  { %2348 = vmatprep.subr.bf16.mxu0 %v4883_v33  ;;  %2389 = vmatprep.subr.bf16.mxu1 %v4885_v5 }
 0x8b5   :  { %2378 = vmatprep.mubr.bf16.mxu0 %v5518_v8  ;;  %2419 = vmatprep.mubr.bf16.mxu1 %v5518_v8 }
 0x8b7   :  { %2349 = vmatpush1.bf16.msra.mxu0 %v4887_v38  ;;  %2390 = vmatpush1.bf16.msra.mxu1 %v4889_v39 }
 0x8b8   :  { %2350 = vmatprep.subr.bf16.mxu0 %v4895_v40  ;;  %2391 = vmatprep.subr.bf16.mxu1 %v4897_v41 }
 0x8bb   :  { %2351 = vmatpush1.bf16.msra.mxu0 %v4899_v42  ;;  %2392 = vmatpush1.bf16.msra.mxu1 %v4901_v43 }
 0x8bc   :  { %2352 = vmatprep.subr.bf16.mxu0 %v4907_v45  ;;  %2393 = vmatprep.subr.bf16.mxu1 %v4909_v19 }
 0x8bf   :  { %2353 = vmatpush1.bf16.msra.mxu0 %v4911_v23  ;;  %2394 = vmatpush1.bf16.msra.mxu1 %v4913_v27 }
 0x8c0   :  { %2354 = vmatprep.subr.bf16.mxu0 %v4919_v58  ;;  %2395 = vmatprep.subr.bf16.mxu1 %v4921_v59 }
 0x8c3   :  { %2355 = vmatpush1.bf16.msra.mxu0 %v4923_v60  ;;  %2396 = vmatpush1.bf16.msra.mxu1 %v4925_v61 }
 0x8c4   :  { %2356 = vmatprep.subr.bf16.mxu0 %v4931_v46  ;;  %2397 = vmatprep.subr.bf16.mxu1 %v4933_v63 }
 0x8c7   :  { %2357 = vmatpush1.bf16.msra.mxu0 %v4935_v47  ;;  %2398 = vmatpush1.bf16.msra.mxu1 %v4937_v1 }
 0x8c8   :  { %2358 = vmatprep.subr.bf16.mxu0 %v4943_v52  ;;  %2399 = vmatprep.subr.bf16.mxu1 %v4945_v55 }
 0x8cb   :  { %2359 = vmatpush1.bf16.msra.mxu0 %v4947_v56  ;;  %2400 = vmatpush1.bf16.msra.mxu1 %v4949_v29 }
 0x8cc   :  { %2360 = vmatprep.subr.bf16.mxu0 %v4955_v14  ;;  %2401 = vmatprep.subr.bf16.mxu1 %v4957_v13 }
 0x8cf   :  { %2361 = vmatpush1.bf16.msra.mxu0 %v4959_v15  ;;  %2402 = vmatpush1.bf16.msra.mxu1 %v4961_v36 }
 0x8d0   :  { %2461 = vmatprep.subr.bf16.mxu0 %v4871_v22  ;;  %2502 = vmatprep.subr.bf16.mxu1 %v4873_v9 }
 0x97d   :  { %v5064_v37 = vpop.f32.mrb[60].mxu0  ;;  %v5066_v18 = vpop.f32.mrb[60].mxu1 }
 0x97e   :  { %5555 = vst [vmem:[#allocation30_spill] sm:$0xff] %v5064_v37  ;;  %5556 = vst [vmem:[#allocation31_spill] sm:$0xff] %v5066_v18  ;;  %v5068_v4 = vpop.f32.mrb[61].mxu0  ;;  %v5070_v53 = vpop.f32.mrb[61].mxu1 }
 0x97f   :  { %5557 = vst [vmem:[#allocation32_spill] sm:$0xff] %v5068_v4  ;;  %5558 = vst [vmem:[#allocation33_spill] sm:$0xff] %v5070_v53  ;;  %v5072_v21 = vpop.f32.mrb[62].mxu0  ;;  %v5074_v28 = vpop.f32.mrb[62].mxu1  ;;  %v5566_v4 = vsub.s32 1, %v5561_v57 }
 0x980   :  { %5559 = vst [vmem:[#allocation34_spill] sm:$0xff] %v5072_v21  ;;  %5560 = vst [vmem:[#allocation35_spill] sm:$0xff] %v5074_v28  ;;  %v5084_v62 = vpop.f32.mrb[63].mxu0  ;;  %v5086_v37 = vpop.f32.mrb[63].mxu1  ;;  %v5567_v21 = vsub.s32 3, %v5561_v57  ;;  %v1965_v28 = vadd.f32 %v4976_v16, %v5082_v30 }
 0x981   :  { %5564 = vst [vmem:[#allocation14_spill] sm:$0xff] %v5084_v62  ;;  %5565 = vst [vmem:[#allocation36_spill] sm:$0xff] %v5086_v37  ;;  %v5090_v18 = vrot.slane %v1675_v44, %v5566_v4 }
 0x982   :  { %v5094_v53 = vrot.slane %v1675_v44, %v5567_v21 }
 0x983   :  { %v1894_v0 = vadd.f32 %v4978_v7, %v5090_v18 }
 0x984   :  { %v1967_v37 = vadd.f32 %v4980_v12, %v5094_v53 }
 0x985   :  { %v2265_v62 = vpop.f32.mrb[64].mxu0  ;;  %v2306_v24 = vpop.f32.mrb[64].mxu1 }
 0x986   :  { %v2313_v4 = vadd.f32 %v2265_v62, %v1892_v26  ;;  %v2315_v32 = vadd.f32 %v2306_v24, %v1965_v28  ;;  %v2267_v35 = vpop.f32.mrb[65].mxu0  ;;  %v2308_v57 = vpop.f32.mrb[65].mxu1 }
 0x987   :  { %v2314_v44 = vadd.f32 %v2267_v35, %v1894_v0  ;;  %v2316_v21 = vadd.f32 %v2308_v57, %v1967_v37  ;;  %v2269_v31 = vpop.f32.mrb[66].mxu0  ;;  %v2310_v51 = vpop.f32.mrb[66].mxu1  ;;  %v1898_v57 = vadd.f32 %v4986_v34, %v5090_v18 }
 0x988   :  { %v3431_v17 = vmul.f32 -1.442695, %v2313_v4  ;;  %v2270_v50 = vpop.f32.mrb[67].mxu0  ;;  %v2311_v3 = vpop.f32.mrb[67].mxu1 }
 0x989   :  { %v3432_v16 = vmul.f32 -1.442695, %v2314_v44  ;;  %v3433_v7 = vmul.f32 -1.442695, %v2316_v21  ;;  %v1971_v44 = vadd.f32 %v4988_v48, %v5094_v53 }
 0x98a   :  { %3834 = vpow2.f32 %v3431_v17 }
 0x98b   :  { %3836 = vpow2.f32 %v3432_v16 }
 0x98c   :  { %3838 = vpow2.f32 %v3433_v7 }
 0x98d   :  { %3840 = vtanh.f32 %v2315_v32  ;;  %v1969_v32 = vadd.f32 %v4984_v20, %v5082_v30 }
 0x994   :  { %v3835_v49 = vpop.eup %3834 }
 0x995   :  { %v3837_v2 = vpop.eup %3836  ;;  %v2320_v12 = vadd.f32 1.0, %v3835_v49 }
 0x996   :  { %v2326_v62 = vadd.f32 1.0, %v3837_v2  ;;  %v3839_v24 = vpop.eup %3838  ;;  %v1896_v2 = vadd.f32 %v4982_v10, %v5078_v11 }
 0x997   :  { %3842 = vrcp.f32 %v2320_v12  ;;  %v3841_v35 = vpop.eup %3840  ;;  %v2333_v28 = vadd.f32 1.0, %v3839_v24 }
 0x998   :  { %3844 = vrcp.f32 %v2326_v62 }
 0x999   :  { %3846 = vrcp.f32 %v2333_v28 }
 0x9a1   :  { %v3843_v37 = vpop.eup %3842 }
 0x9a2   :  { %v3845_v31 = vpop.eup %3844  ;;  %v2337_v51 = vmul.f32 %v3843_v37, %v3841_v35 }
 0x9a3   :  { %v2336_v50 = vmul.f32 0.0, %v3845_v31  ;;  %v3847_v26 = vpop.eup %3846 }
 0x9a5   :  { %v5104_v3 = vadd.f32 %v2337_v51, %v2336_v50 }
 0x9a7   :  { %3848 = vtanh.f32 %v5104_v3 }
 0x9b1   :  { %v3849_v0 = vpop.eup %3848 }
 0x9b2   :  { %v2340_v49 = vmul.f32 %v3849_v0, %v3847_v26 }
 0x9b4   :  { %v2345_v4 = vpack.c.bf16 %v2340_v49, %v2340_v49 }
 0x9b6   :  { %2379 = vmatmul.mubr.bf16.vlgmr.msra.gmra.mrb[68].mxu0 %v2345_v4  ;;  %2420 = vmatmul.mubr.bf16.vlgmr.msra.gmra.mrb[68].mxu1 %v2345_v4 }
 0x9b7   :  { %2462 = vmatpush1.bf16.msra.mxu0 %v4875_v6  ;;  %2503 = vmatpush1.bf16.msra.mxu1 %v4877_v25 }
 0x9b8   :  { %2463 = vmatprep.subr.bf16.mxu0 %v4883_v33  ;;  %2504 = vmatprep.subr.bf16.mxu1 %v4885_v5 }
 0x9b9   :  { %2493 = vmatprep.mubr.bf16.mxu0 %v5518_v8  ;;  %2534 = vmatprep.mubr.bf16.mxu1 %v5518_v8 }
 0x9bb   :  { %2464 = vmatpush1.bf16.msra.mxu0 %v4887_v38  ;;  %2505 = vmatpush1.bf16.msra.mxu1 %v4889_v39 }
 0x9bc   :  { %2465 = vmatprep.subr.bf16.mxu0 %v4895_v40  ;;  %2506 = vmatprep.subr.bf16.mxu1 %v4897_v41 }
 0x9bf   :  { %2466 = vmatpush1.bf16.msra.mxu0 %v4899_v42  ;;  %2507 = vmatpush1.bf16.msra.mxu1 %v4901_v43 }
 0x9c0   :  { %2467 = vmatprep.subr.bf16.mxu0 %v4907_v45  ;;  %2508 = vmatprep.subr.bf16.mxu1 %v4909_v19 }
 0x9c3   :  { %2468 = vmatpush1.bf16.msra.mxu0 %v4911_v23  ;;  %2509 = vmatpush1.bf16.msra.mxu1 %v4913_v27 }
 0x9c4   :  { %2469 = vmatprep.subr.bf16.mxu0 %v4919_v58  ;;  %2510 = vmatprep.subr.bf16.mxu1 %v4921_v59 }
 0x9c7   :  { %2470 = vmatpush1.bf16.msra.mxu0 %v4923_v60  ;;  %2511 = vmatpush1.bf16.msra.mxu1 %v4925_v61 }
 0x9c8   :  { %2471 = vmatprep.subr.bf16.mxu0 %v4931_v46  ;;  %2512 = vmatprep.subr.bf16.mxu1 %v4933_v63 }
 0x9cb   :  { %2472 = vmatpush1.bf16.msra.mxu0 %v4935_v47  ;;  %2513 = vmatpush1.bf16.msra.mxu1 %v4937_v1 }
 0x9cc   :  { %2473 = vmatprep.subr.bf16.mxu0 %v4943_v52  ;;  %2514 = vmatprep.subr.bf16.mxu1 %v4945_v55 }
 0x9cf   :  { %2474 = vmatpush1.bf16.msra.mxu0 %v4947_v56  ;;  %2515 = vmatpush1.bf16.msra.mxu1 %v4949_v29 }
 0x9d0   :  { %2475 = vmatprep.subr.bf16.mxu0 %v4955_v14  ;;  %2516 = vmatprep.subr.bf16.mxu1 %v4957_v13 }
 0x9d3   :  { %2476 = vmatpush1.bf16.msra.mxu0 %v4959_v15  ;;  %2517 = vmatpush1.bf16.msra.mxu1 %v4961_v36 }
 0x9d4   :  { %2576 = vmatprep.subr.bf16.mxu0 %v4871_v22  ;;  %2617 = vmatprep.subr.bf16.mxu1 %v4873_v9 }
 0xa89   :  { %v2380_v21 = vpop.f32.mrb[68].mxu0  ;;  %v2421_v17 = vpop.f32.mrb[68].mxu1 }
 0xa8a   :  { %v2428_v16 = vadd.f32 %v2380_v21, %v1896_v2  ;;  %v2430_v7 = vadd.f32 %v2421_v17, %v1969_v32  ;;  %v2382_v12 = vpop.f32.mrb[69].mxu0  ;;  %v2423_v62 = vpop.f32.mrb[69].mxu1 }
 0xa8b   :  { %v2429_v24 = vadd.f32 %v2382_v12, %v1898_v57  ;;  %v2431_v35 = vadd.f32 %v2423_v62, %v1971_v44  ;;  %v2384_v37 = vpop.f32.mrb[70].mxu0  ;;  %v2425_v31 = vpop.f32.mrb[70].mxu1 }
 0xa8c   :  { %v3434_v10 = vmul.f32 -1.442695, %v2428_v16  ;;  %v2385_v51 = vpop.f32.mrb[71].mxu0  ;;  %v2426_v28 = vpop.f32.mrb[71].mxu1  ;;  %v5569_v37 = vld [vmem:[#allocation16_spill] sm:$0xff] }
 0xa8d   :  { %v3435_v20 = vmul.f32 -1.442695, %v2429_v24  ;;  %v3436_v34 = vmul.f32 -1.442695, %v2431_v35  ;;  %v5568_v24 = vld [vmem:[#allocation15_spill] sm:$0xff]  ;;  %v1904_v31 = vadd.f32 %v5569_v37, %v5090_v18 }
 0xa8e   :  { %3850 = vpow2.f32 %v3434_v10  ;;  %v1975_v35 = vadd.f32 %v5568_v24, %v5082_v30  ;;  %v5570_v10 = vld [vmem:[#allocation17_spill] sm:$0xff] }
 0xa8f   :  { %3852 = vpow2.f32 %v3435_v20  ;;  %v1977_v51 = vadd.f32 %v5570_v10, %v5094_v53 }
 0xa90   :  { %3854 = vpow2.f32 %v3436_v34 }
 0xa91   :  { %3856 = vtanh.f32 %v2430_v7 }
 0xa98   :  { %v3851_v50 = vpop.eup %3850 }
 0xa99   :  { %v3853_v26 = vpop.eup %3852  ;;  %v2435_v48 = vadd.f32 1.0, %v3851_v50 }
 0xa9a   :  { %v2441_v0 = vadd.f32 1.0, %v3853_v26  ;;  %v3855_v49 = vpop.eup %3854 }
 0xa9b   :  { %3858 = vrcp.f32 %v2435_v48  ;;  %v3857_v4 = vpop.eup %3856  ;;  %v2448_v44 = vadd.f32 1.0, %v3855_v49 }
 0xa9c   :  { %3860 = vrcp.f32 %v2441_v0 }
 0xa9d   :  { %3862 = vrcp.f32 %v2448_v44 }
 0xaa5   :  { %v3859_v2 = vpop.eup %3858 }
 0xaa6   :  { %v3861_v32 = vpop.eup %3860  ;;  %v2452_v57 = vmul.f32 %v3859_v2, %v3857_v4 }
 0xaa7   :  { %v2451_v21 = vmul.f32 %v3861_v32, %v5104_v3  ;;  %v3863_v16 = vpop.eup %3862  ;;  %v1902_v3 = vadd.f32 %v4990_v54, %v5078_v11 }
 0xaa9   :  { %v5150_v17 = vadd.f32 %v2452_v57, %v2451_v21 }
 0xaab   :  { %3864 = vtanh.f32 %v5150_v17 }
 0xab5   :  { %v3865_v12 = vpop.eup %3864 }
 0xab6   :  { %v2455_v62 = vmul.f32 %v3865_v12, %v3863_v16 }
 0xab8   :  { %v2460_v7 = vpack.c.bf16 %v2455_v62, %v2455_v62 }
 0xaba   :  { %2494 = vmatmul.mubr.bf16.vlgmr.msra.gmra.mrb[72].mxu0 %v2460_v7  ;;  %2535 = vmatmul.mubr.bf16.vlgmr.msra.gmra.mrb[72].mxu1 %v2460_v7 }
 0xabb   :  { %2577 = vmatpush1.bf16.msra.mxu0 %v4875_v6  ;;  %2618 = vmatpush1.bf16.msra.mxu1 %v4877_v25 }
 0xabc   :  { %2578 = vmatprep.subr.bf16.mxu0 %v4883_v33  ;;  %2619 = vmatprep.subr.bf16.mxu1 %v4885_v5 }
 0xabd   :  { %2608 = vmatprep.mubr.bf16.mxu0 %v5518_v8  ;;  %2649 = vmatprep.mubr.bf16.mxu1 %v5518_v8 }
 0xabf   :  { %2579 = vmatpush1.bf16.msra.mxu0 %v4887_v38  ;;  %2620 = vmatpush1.bf16.msra.mxu1 %v4889_v39 }
 0xac0   :  { %2580 = vmatprep.subr.bf16.mxu0 %v4895_v40  ;;  %2621 = vmatprep.subr.bf16.mxu1 %v4897_v41 }
 0xac3   :  { %2581 = vmatpush1.bf16.msra.mxu0 %v4899_v42  ;;  %2622 = vmatpush1.bf16.msra.mxu1 %v4901_v43 }
 0xac4   :  { %2582 = vmatprep.subr.bf16.mxu0 %v4907_v45  ;;  %2623 = vmatprep.subr.bf16.mxu1 %v4909_v19 }
 0xac7   :  { %2583 = vmatpush1.bf16.msra.mxu0 %v4911_v23  ;;  %2624 = vmatpush1.bf16.msra.mxu1 %v4913_v27 }
 0xac8   :  { %2584 = vmatprep.subr.bf16.mxu0 %v4919_v58  ;;  %2625 = vmatprep.subr.bf16.mxu1 %v4921_v59 }
 0xacb   :  { %2585 = vmatpush1.bf16.msra.mxu0 %v4923_v60  ;;  %2626 = vmatpush1.bf16.msra.mxu1 %v4925_v61 }
 0xacc   :  { %2586 = vmatprep.subr.bf16.mxu0 %v4931_v46  ;;  %2627 = vmatprep.subr.bf16.mxu1 %v4933_v63 }
 0xacf   :  { %2587 = vmatpush1.bf16.msra.mxu0 %v4935_v47  ;;  %2628 = vmatpush1.bf16.msra.mxu1 %v4937_v1 }
 0xad0   :  { %2588 = vmatprep.subr.bf16.mxu0 %v4943_v52  ;;  %2629 = vmatprep.subr.bf16.mxu1 %v4945_v55 }
 0xad3   :  { %2589 = vmatpush1.bf16.msra.mxu0 %v4947_v56  ;;  %2630 = vmatpush1.bf16.msra.mxu1 %v4949_v29 }
 0xad4   :  { %2590 = vmatprep.subr.bf16.mxu0 %v4955_v14  ;;  %2631 = vmatprep.subr.bf16.mxu1 %v4957_v13 }
 0xad7   :  { %2591 = vmatpush1.bf16.msra.mxu0 %v4959_v15  ;;  %2632 = vmatpush1.bf16.msra.mxu1 %v4961_v36 }
 0xad8   :  { %2691 = vmatprep.subr.bf16.mxu0 %v4871_v22  ;;  %2732 = vmatprep.subr.bf16.mxu1 %v4873_v9 }
 0xb8d   :  { %v2495_v28 = vpop.f32.mrb[72].mxu0  ;;  %v2536_v20 = vpop.f32.mrb[72].mxu1 }
 0xb8e   :  { %v2543_v34 = vadd.f32 %v2495_v28, %v1902_v3  ;;  %v2545_v50 = vadd.f32 %v2536_v20, %v1975_v35  ;;  %v2497_v26 = vpop.f32.mrb[73].mxu0  ;;  %v2538_v48 = vpop.f32.mrb[73].mxu1 }
 0xb8f   :  { %v2544_v0 = vadd.f32 %v2497_v26, %v1904_v31  ;;  %v2546_v49 = vadd.f32 %v2538_v48, %v1977_v51  ;;  %v2499_v4 = vpop.f32.mrb[74].mxu0  ;;  %v2540_v2 = vpop.f32.mrb[74].mxu1 }
 0xb90   :  { %v3437_v54 = vmul.f32 -1.442695, %v2543_v34  ;;  %v2500_v32 = vpop.f32.mrb[75].mxu0  ;;  %v2541_v57 = vpop.f32.mrb[75].mxu1  ;;  %v5573_v4 = vld [vmem:[#allocation20_spill] sm:$0xff] }
 0xb91   :  { %v3438_v44 = vmul.f32 -1.442695, %v2544_v0  ;;  %v3439_v21 = vmul.f32 -1.442695, %v2546_v49  ;;  %v5572_v0 = vld [vmem:[#allocation19_spill] sm:$0xff]  ;;  %v1908_v2 = vadd.f32 %v5573_v4, %v5090_v18 }
 0xb92   :  { %3866 = vpow2.f32 %v3437_v54  ;;  %v1979_v49 = vadd.f32 %v5572_v0, %v5082_v30  ;;  %v5574_v54 = vld [vmem:[#allocation21_spill] sm:$0xff] }
 0xb93   :  { %3868 = vpow2.f32 %v3438_v44  ;;  %v1981_v32 = vadd.f32 %v5574_v54, %v5094_v53 }
 0xb94   :  { %3870 = vpow2.f32 %v3439_v21 }
 0xb95   :  { %3872 = vtanh.f32 %v2545_v50 }
 0xb9c   :  { %v3867_v16 = vpop.eup %3866 }
 0xb9d   :  { %v3869_v12 = vpop.eup %3868  ;;  %v2550_v62 = vadd.f32 1.0, %v3867_v16 }
 0xb9e   :  { %v2556_v7 = vadd.f32 1.0, %v3869_v12  ;;  %v3871_v3 = vpop.eup %3870 }
 0xb9f   :  { %3874 = vrcp.f32 %v2550_v62  ;;  %v3873_v24 = vpop.eup %3872  ;;  %v2563_v10 = vadd.f32 1.0, %v3871_v3 }
 0xba0   :  { %3876 = vrcp.f32 %v2556_v7 }
 0xba1   :  { %3878 = vrcp.f32 %v2563_v10 }
 0xba9   :  { %v3875_v35 = vpop.eup %3874 }
 0xbaa   :  { %v3877_v37 = vpop.eup %3876  ;;  %v2567_v31 = vmul.f32 %v3875_v35, %v3873_v24 }
 0xbab   :  { %v2566_v51 = vmul.f32 %v3877_v37, %v5150_v17  ;;  %v3879_v20 = vpop.eup %3878  ;;  %v5571_v17 = vld [vmem:[#allocation18_spill] sm:$0xff] }
 0xbac   :  { %v1906_v48 = vadd.f32 %v5571_v17, %v5078_v11 }
 0xbad   :  { %v5196_v28 = vadd.f32 %v2567_v31, %v2566_v51 }
 0xbaf   :  { %3880 = vtanh.f32 %v5196_v28 }
 0xbb9   :  { %v3881_v34 = vpop.eup %3880 }
 0xbba   :  { %v2570_v26 = vmul.f32 %v3881_v34, %v3879_v20 }
 0xbbc   :  { %v2575_v50 = vpack.c.bf16 %v2570_v26, %v2570_v26 }
 0xbbe   :  { %2609 = vmatmul.mubr.bf16.vlgmr.msra.gmra.mrb[76].mxu0 %v2575_v50  ;;  %2650 = vmatmul.mubr.bf16.vlgmr.msra.gmra.mrb[76].mxu1 %v2575_v50 }
 0xbbf   :  { %2692 = vmatpush1.bf16.msra.mxu0 %v4875_v6  ;;  %2733 = vmatpush1.bf16.msra.mxu1 %v4877_v25 }
 0xbc0   :  { %2693 = vmatprep.subr.bf16.mxu0 %v4883_v33  ;;  %2734 = vmatprep.subr.bf16.mxu1 %v4885_v5 }
 0xbc1   :  { %2723 = vmatprep.mubr.bf16.mxu0 %v5518_v8  ;;  %2764 = vmatprep.mubr.bf16.mxu1 %v5518_v8 }
 0xbc3   :  { %2694 = vmatpush1.bf16.msra.mxu0 %v4887_v38  ;;  %2735 = vmatpush1.bf16.msra.mxu1 %v4889_v39 }
 0xbc4   :  { %2695 = vmatprep.subr.bf16.mxu0 %v4895_v40  ;;  %2736 = vmatprep.subr.bf16.mxu1 %v4897_v41 }
 0xbc7   :  { %2696 = vmatpush1.bf16.msra.mxu0 %v4899_v42  ;;  %2737 = vmatpush1.bf16.msra.mxu1 %v4901_v43 }
 0xbc8   :  { %2697 = vmatprep.subr.bf16.mxu0 %v4907_v45  ;;  %2738 = vmatprep.subr.bf16.mxu1 %v4909_v19 }
 0xbcb   :  { %2698 = vmatpush1.bf16.msra.mxu0 %v4911_v23  ;;  %2739 = vmatpush1.bf16.msra.mxu1 %v4913_v27 }
 0xbcc   :  { %2699 = vmatprep.subr.bf16.mxu0 %v4919_v58  ;;  %2740 = vmatprep.subr.bf16.mxu1 %v4921_v59 }
 0xbcf   :  { %2700 = vmatpush1.bf16.msra.mxu0 %v4923_v60  ;;  %2741 = vmatpush1.bf16.msra.mxu1 %v4925_v61 }
 0xbd0   :  { %2701 = vmatprep.subr.bf16.mxu0 %v4931_v46  ;;  %2742 = vmatprep.subr.bf16.mxu1 %v4933_v63 }
 0xbd3   :  { %2702 = vmatpush1.bf16.msra.mxu0 %v4935_v47  ;;  %2743 = vmatpush1.bf16.msra.mxu1 %v4937_v1 }
 0xbd4   :  { %2703 = vmatprep.subr.bf16.mxu0 %v4943_v52  ;;  %2744 = vmatprep.subr.bf16.mxu1 %v4945_v55 }
 0xbd7   :  { %2704 = vmatpush1.bf16.msra.mxu0 %v4947_v56  ;;  %2745 = vmatpush1.bf16.msra.mxu1 %v4949_v29 }
 0xbd8   :  { %2705 = vmatprep.subr.bf16.mxu0 %v4955_v14  ;;  %2746 = vmatprep.subr.bf16.mxu1 %v4957_v13 }
 0xbdb   :  { %2706 = vmatpush1.bf16.msra.mxu0 %v4959_v15  ;;  %2747 = vmatpush1.bf16.msra.mxu1 %v4961_v36 }
 0xbdc   :  { %2806 = vmatprep.subr.bf16.mxu0 %v4871_v22  ;;  %2847 = vmatprep.subr.bf16.mxu1 %v4873_v9 }
 0xc91   :  { %v2610_v57 = vpop.f32.mrb[76].mxu0  ;;  %v2651_v44 = vpop.f32.mrb[76].mxu1 }
 0xc92   :  { %v2658_v21 = vadd.f32 %v2610_v57, %v1906_v48  ;;  %v2660_v16 = vadd.f32 %v2651_v44, %v1979_v49  ;;  %v2612_v12 = vpop.f32.mrb[77].mxu0  ;;  %v2653_v62 = vpop.f32.mrb[77].mxu1 }
 0xc93   :  { %v2659_v7 = vadd.f32 %v2612_v12, %v1908_v2  ;;  %v2661_v3 = vadd.f32 %v2653_v62, %v1981_v32  ;;  %v2614_v24 = vpop.f32.mrb[78].mxu0  ;;  %v2655_v35 = vpop.f32.mrb[78].mxu1 }
 0xc94   :  { %v3440_v37 = vmul.f32 -1.442695, %v2658_v21  ;;  %v2615_v31 = vpop.f32.mrb[79].mxu0  ;;  %v2656_v10 = vpop.f32.mrb[79].mxu1 }
 0xc95   :  { %v3441_v51 = vmul.f32 -1.442695, %v2659_v7  ;;  %v3442_v20 = vmul.f32 -1.442695, %v2661_v3  ;;  %v5291_v31 = vld [vmem:[#allocation9] ss:$16 sps:$4 sm:$0xff]  }
 0xc96   :  { %3882 = vpow2.f32 %v3440_v37  ;;  %v5294_v10 = vld [vmem:[#allocation9 + $0x8] ss:$16 sps:$4 sm:$0xff]  }
 0xc97   :  { %3884 = vpow2.f32 %v3441_v51  ;;  %v5297_v51 = vld [vmem:[#allocation9 + $0x24] ss:$16 sps:$4 sm:$0xff]  }
 0xc98   :  { %3886 = vpow2.f32 %v3442_v20  ;;  %v5300_v20 = vld [vmem:[#allocation9 + $0x2c] ss:$16 sps:$4 sm:$0xff]  }
 0xc99   :  { %3888 = vtanh.f32 %v2660_v16 }
 0xca0   :  { %v3883_v34 = vpop.eup %3882 }
 0xca1   :  { %v3885_v26 = vpop.eup %3884  ;;  %v2665_v50 = vadd.f32 1.0, %v3883_v34  ;;  %v5305_v34 = vld [vmem:[#allocation9 + $0x20] ss:$16 sps:$4 sm:$0xff]  }
 0xca2   :  { %v2671_v17 = vadd.f32 1.0, %v3885_v26  ;;  %v3887_v48 = vpop.eup %3886  ;;  %v5308_v26 = vld [vmem:[#allocation9 + $0x28] ss:$16 sps:$4 sm:$0xff]  }
 0xca3   :  { %3890 = vrcp.f32 %v2665_v50  ;;  %v3889_v0 = vpop.eup %3888  ;;  %v2678_v54 = vadd.f32 1.0, %v3887_v48  ;;  %v5311_v50 = vld [vmem:[#allocation9 + $0x44] ss:$16 sps:$4 sm:$0xff]   ;;  %v5317_v48 = vld [vmem:[#allocation9 + $0x40] ss:$16 sps:$4 sm:$0xff]  }
 0xca4   :  { %3892 = vrcp.f32 %v2671_v17  ;;  %v5314_v17 = vld [vmem:[#allocation9 + $0x4c] ss:$16 sps:$4 sm:$0xff]  }
 0xca5   :  { %3894 = vrcp.f32 %v2678_v54  ;;  %v5332_v54 = vld [vmem:[#allocation9 + $0x68] ss:$16 sps:$4 sm:$0xff]  }
 0xcad   :  { %v3891_v49 = vpop.eup %3890 }
 0xcae   :  { %v3893_v4 = vpop.eup %3892  ;;  %v2682_v2 = vmul.f32 %v3891_v49, %v3889_v0  ;;  %v5320_v0 = vld [vmem:[#allocation9 + $0x48] ss:$16 sps:$4 sm:$0xff]   ;;  %v5323_v49 = vld [vmem:[#allocation9 + $0x64] ss:$16 sps:$4 sm:$0xff]  }
 0xcaf   :  { %v2681_v32 = vmul.f32 %v3893_v4, %v5196_v28  ;;  %v3895_v44 = vpop.eup %3894  ;;  %v5326_v4 = vld [vmem:[#allocation9 + $0x6c] ss:$16 sps:$4 sm:$0xff]  }
 0xcb1   :  { %v5242_v57 = vadd.f32 %v2682_v2, %v2681_v32  ;;  %v5329_v2 = vld [vmem:[#allocation9 + $0x60] ss:$16 sps:$4 sm:$0xff]   ;;  %v5335_v32 = vld [vmem:[#allocation9 + $0x84] ss:$16 sps:$4 sm:$0xff]  }
 0xcb3   :  { %3896 = vtanh.f32 %v5242_v57 }
 0xcbd   :  { %v3897_v21 = vpop.eup %3896 }
 0xcbe   :  { %v2685_v12 = vmul.f32 %v3897_v21, %v3895_v44  ;;  %v5341_v44 = vld [vmem:[#allocation9 + $0x80] ss:$16 sps:$4 sm:$0xff]   ;;  %v5344_v21 = vld [vmem:[#allocation9 + $0x88] ss:$16 sps:$4 sm:$0xff]  }
 0xcc0   :  { %v2690_v16 = vpack.c.bf16 %v2685_v12, %v2685_v12  ;;  %v5347_v12 = vld [vmem:[#allocation9 + $0xa4] ss:$16 sps:$4 sm:$0xff]  }
 0xcc2   :  { %2724 = vmatmul.mubr.bf16.vlgmr.msra.gmra.mrb[80].mxu0 %v2690_v16  ;;  %2765 = vmatmul.mubr.bf16.vlgmr.msra.gmra.mrb[80].mxu1 %v2690_v16  ;;  %v5350_v16 = vld [vmem:[#allocation9 + $0xac] ss:$16 sps:$4 sm:$0xff]  }
 0xcc3   :  { %2807 = vmatpush1.bf16.msra.mxu0 %v4875_v6  ;;  %2848 = vmatpush1.bf16.msra.mxu1 %v4877_v25  ;;  %v5575_v6 = vld [vmem:[#allocation22_spill] sm:$0xff] }
 0xcc4   :  { %2808 = vmatprep.subr.bf16.mxu0 %v4883_v33  ;;  %2849 = vmatprep.subr.bf16.mxu1 %v4885_v5  ;;  %v1912_v25 = vadd.f32 %v5575_v6, %v5078_v11  ;;  %v5576_v33 = vld [vmem:[#allocation23_spill] sm:$0xff]  ;;  %v5353_v6 = vld [vmem:[#allocation9 + $0xa0] ss:$16 sps:$4 sm:$0xff]  }
 0xcc5   :  { %2838 = vmatprep.mubr.bf16.mxu0 %v5518_v8  ;;  %2879 = vmatprep.mubr.bf16.mxu1 %v5518_v8  ;;  %v1985_v5 = vadd.f32 %v5576_v33, %v5082_v30  ;;  %v5359_v33 = vld [vmem:[#allocation9 + $0xc4] ss:$16 sps:$4 sm:$0xff]  }
 0xcc7   :  { %2809 = vmatpush1.bf16.msra.mxu0 %v4887_v38  ;;  %2850 = vmatpush1.bf16.msra.mxu1 %v4889_v39  ;;  %v5577_v38 = vld [vmem:[#allocation24_spill] sm:$0xff] }
 0xcc8   :  { %2810 = vmatprep.subr.bf16.mxu0 %v4895_v40  ;;  %2851 = vmatprep.subr.bf16.mxu1 %v4897_v41  ;;  %v1914_v39 = vadd.f32 %v5577_v38, %v5090_v18  ;;  %v5578_v40 = vld [vmem:[#allocation25_spill] sm:$0xff]  ;;  %v5365_v38 = vld [vmem:[#allocation9 + $0xc0] ss:$16 sps:$4 sm:$0xff]  }
 0xcc9   :  { %v1987_v41 = vadd.f32 %v5578_v40, %v5094_v53  ;;  %v5371_v40 = vld [vmem:[#allocation9 + $0xe4] ss:$16 sps:$4 sm:$0xff]  }
 0xccb   :  { %2811 = vmatpush1.bf16.msra.mxu0 %v4899_v42  ;;  %2852 = vmatpush1.bf16.msra.mxu1 %v4901_v43 }
 0xccc   :  { %2812 = vmatprep.subr.bf16.mxu0 %v4907_v45  ;;  %2853 = vmatprep.subr.bf16.mxu1 %v4909_v19 }
 0xccf   :  { %2813 = vmatpush1.bf16.msra.mxu0 %v4911_v23  ;;  %2854 = vmatpush1.bf16.msra.mxu1 %v4913_v27 }
 0xcd0   :  { %2814 = vmatprep.subr.bf16.mxu0 %v4919_v58  ;;  %2855 = vmatprep.subr.bf16.mxu1 %v4921_v59 }
 0xcd3   :  { %2815 = vmatpush1.bf16.msra.mxu0 %v4923_v60  ;;  %2856 = vmatpush1.bf16.msra.mxu1 %v4925_v61 }
 0xcd4   :  { %2816 = vmatprep.subr.bf16.mxu0 %v4931_v46  ;;  %2857 = vmatprep.subr.bf16.mxu1 %v4933_v63 }
 0xcd7   :  { %2817 = vmatpush1.bf16.msra.mxu0 %v4935_v47  ;;  %2858 = vmatpush1.bf16.msra.mxu1 %v4937_v1 }
 0xcd8   :  { %2818 = vmatprep.subr.bf16.mxu0 %v4943_v52  ;;  %2859 = vmatprep.subr.bf16.mxu1 %v4945_v55 }
 0xcdb   :  { %2819 = vmatpush1.bf16.msra.mxu0 %v4947_v56  ;;  %2860 = vmatpush1.bf16.msra.mxu1 %v4949_v29 }
 0xcdc   :  { %2820 = vmatprep.subr.bf16.mxu0 %v4955_v14  ;;  %2861 = vmatprep.subr.bf16.mxu1 %v4957_v13 }
 0xcdf   :  { %2821 = vmatpush1.bf16.msra.mxu0 %v4959_v15  ;;  %2862 = vmatpush1.bf16.msra.mxu1 %v4961_v36 }
 0xce0   :  { %2921 = vmatprep.subr.bf16.mxu0 %v4871_v22  ;;  %2962 = vmatprep.subr.bf16.mxu1 %v4873_v9 }
 0xd95   :  { %v2725_v42 = vpop.f32.mrb[80].mxu0  ;;  %v2766_v43 = vpop.f32.mrb[80].mxu1 }
 0xd96   :  { %v2773_v45 = vadd.f32 %v2725_v42, %v1912_v25  ;;  %v2775_v19 = vadd.f32 %v2766_v43, %v1985_v5  ;;  %v2727_v23 = vpop.f32.mrb[81].mxu0  ;;  %v2768_v22 = vpop.f32.mrb[81].mxu1  ;;  %v5356_v25 = vld [vmem:[#allocation9 + $0xa8] ss:$16 sps:$4 sm:$0xff]   ;;  %v5362_v5 = vld [vmem:[#allocation9 + $0xcc] ss:$16 sps:$4 sm:$0xff]  }
 0xd97   :  { %v2774_v27 = vadd.f32 %v2727_v23, %v1914_v39  ;;  %v2776_v9 = vadd.f32 %v2768_v22, %v1987_v41  ;;  %v2729_v58 = vpop.f32.mrb[82].mxu0  ;;  %v2770_v59 = vpop.f32.mrb[82].mxu1  ;;  %v5368_v39 = vld [vmem:[#allocation9 + $0xc8] ss:$16 sps:$4 sm:$0xff]   ;;  %v5374_v41 = vld [vmem:[#allocation9 + $0xec] ss:$16 sps:$4 sm:$0xff]  }
 0xd98   :  { %v3443_v60 = vmul.f32 -1.442695, %v2773_v45  ;;  %v2730_v61 = vpop.f32.mrb[83].mxu0  ;;  %v2771_v46 = vpop.f32.mrb[83].mxu1  ;;  %v5377_v42 = vld [vmem:[#allocation9 + $0xe0] ss:$16 sps:$4 sm:$0xff]  }
 0xd99   :  { %v3444_v63 = vmul.f32 -1.442695, %v2774_v27  ;;  %v3445_v47 = vmul.f32 -1.442695, %v2776_v9  ;;  %v5380_v43 = vld [vmem:[#allocation9 + $0xe8] ss:$16 sps:$4 sm:$0xff]  }
 0xd9a   :  { %3898 = vpow2.f32 %v3443_v60  ;;  %v4028_v45 = vld [vmem:[#allocation9 + $0x4] ss:$16 sps:$4 sm:$0xff]   ;;  %v5580_v27 = vld [vmem:[#allocation27_spill] sm:$0xff]  ;;  %v5582_v60 = vld [vmem:[#allocation29_spill] sm:$0xff] }
 0xd9b   :  { %3900 = vpow2.f32 %v3444_v63  ;;  %v5579_v23 = vld [vmem:[#allocation26_spill] sm:$0xff]  ;;  %v1989_v9 = vadd.f32 %v5580_v27, %v5082_v30  ;;  %v5581_v58 = vld [vmem:[#allocation28_spill] sm:$0xff]  ;;  %v1991_v61 = vadd.f32 %v5582_v60, %v5094_v53 }
 0xd9c   :  { %3902 = vpow2.f32 %v3445_v47  ;;  %v1916_v22 = vadd.f32 %v5579_v23, %v5078_v11  ;;  %v1918_v59 = vadd.f32 %v5581_v58, %v5090_v18 }
 0xd9d   :  { %3904 = vtanh.f32 %v2775_v19  ;;  %v4029_v19 = vld [vmem:[#allocation9 + $0xc] ss:$16 sps:$4 sm:$0xff]  }
 0xda4   :  { %v3899_v1 = vpop.eup %3898 }
 0xda5   :  { %v3901_v52 = vpop.eup %3900  ;;  %v2780_v55 = vadd.f32 1.0, %v3899_v1 }
 0xda6   :  { %v2786_v56 = vadd.f32 1.0, %v3901_v52  ;;  %v3903_v29 = vpop.eup %3902 }
 0xda7   :  { %3906 = vrcp.f32 %v2780_v55  ;;  %v3905_v14 = vpop.eup %3904  ;;  %v2793_v28 = vadd.f32 1.0, %v3903_v29 }
 0xda8   :  { %3908 = vrcp.f32 %v2786_v56 }
 0xda9   :  { %3910 = vrcp.f32 %v2793_v28 }
 0xdb1   :  { %v3907_v13 = vpop.eup %3906 }
 0xdb2   :  { %v3909_v15 = vpop.eup %3908  ;;  %v2797_v36 = vmul.f32 %v3907_v13, %v3905_v14 }
 0xdb3   :  { %v2796_v62 = vmul.f32 %v3909_v15, %v5242_v57  ;;  %v3911_v3 = vpop.eup %3910  ;;  %v5338_v57 = vld [vmem:[#allocation9 + $0x8c] ss:$16 sps:$4 sm:$0xff]  }
 0xdb5   :  { %v5288_v7 = vadd.f32 %v2797_v36, %v2796_v62 }
 0xdb7   :  { %3912 = vtanh.f32 %v5288_v7 }
 0xdc1   :  { %v3913_v24 = vpop.eup %3912 }
 0xdc2   :  { %v2800_v35 = vmul.f32 %v3913_v24, %v3911_v3 }
 0xdc4   :  { %v2805_v37 = vpack.c.bf16 %v2800_v35, %v2800_v35 }
 0xdc6   :  { %2839 = vmatmul.mubr.bf16.vlgmr.msra.gmra.mrb[84].mxu0 %v2805_v37  ;;  %2880 = vmatmul.mubr.bf16.vlgmr.msra.gmra.mrb[84].mxu1 %v2805_v37 }
 0xdc7   :  { %2922 = vmatpush1.bf16.msra.mxu0 %v5291_v31  ;;  %2963 = vmatpush1.bf16.msra.mxu1 %v5294_v10 }
 0xdc8   :  { %2923 = vmatprep.subr.bf16.mxu0 %v5297_v51  ;;  %2964 = vmatprep.subr.bf16.mxu1 %v5300_v20 }
 0xdc9   :  { %2953 = vmatprep.mubr.bf16.mxu0 %v5518_v8  ;;  %2994 = vmatprep.mubr.bf16.mxu1 %v5518_v8 }
 0xdcb   :  { %2924 = vmatpush1.bf16.msra.mxu0 %v5305_v34  ;;  %2965 = vmatpush1.bf16.msra.mxu1 %v5308_v26 }
 0xdcc   :  { %2925 = vmatprep.subr.bf16.mxu0 %v5311_v50  ;;  %2966 = vmatprep.subr.bf16.mxu1 %v5314_v17 }
 0xdcf   :  { %2926 = vmatpush1.bf16.msra.mxu0 %v5317_v48  ;;  %2967 = vmatpush1.bf16.msra.mxu1 %v5320_v0 }
 0xdd0   :  { %2927 = vmatprep.subr.bf16.mxu0 %v5323_v49  ;;  %2968 = vmatprep.subr.bf16.mxu1 %v5326_v4 }
 0xdd3   :  { %2928 = vmatpush1.bf16.msra.mxu0 %v5329_v2  ;;  %2969 = vmatpush1.bf16.msra.mxu1 %v5332_v54 }
 0xdd4   :  { %2929 = vmatprep.subr.bf16.mxu0 %v5335_v32  ;;  %2970 = vmatprep.subr.bf16.mxu1 %v5338_v57 }
 0xdd7   :  { %2930 = vmatpush1.bf16.msra.mxu0 %v5341_v44  ;;  %2971 = vmatpush1.bf16.msra.mxu1 %v5344_v21 }
 0xdd8   :  { %2931 = vmatprep.subr.bf16.mxu0 %v5347_v12  ;;  %2972 = vmatprep.subr.bf16.mxu1 %v5350_v16 }
 0xddb   :  { %2932 = vmatpush1.bf16.msra.mxu0 %v5353_v6  ;;  %2973 = vmatpush1.bf16.msra.mxu1 %v5356_v25 }
 0xddc   :  { %2933 = vmatprep.subr.bf16.mxu0 %v5359_v33  ;;  %2974 = vmatprep.subr.bf16.mxu1 %v5362_v5 }
 0xddf   :  { %2934 = vmatpush1.bf16.msra.mxu0 %v5365_v38  ;;  %2975 = vmatpush1.bf16.msra.mxu1 %v5368_v39 }
 0xde0   :  { %2935 = vmatprep.subr.bf16.mxu0 %v5371_v40  ;;  %2976 = vmatprep.subr.bf16.mxu1 %v5374_v41 }
 0xde3   :  { %2936 = vmatpush1.bf16.msra.mxu0 %v5377_v42  ;;  %2977 = vmatpush1.bf16.msra.mxu1 %v5380_v43 }
 0xde4   :  { %3036 = vmatprep.subr.bf16.mxu0 %v4028_v45  ;;  %3077 = vmatprep.subr.bf16.mxu1 %v4029_v19 }
 0xe99   :  { %v2840_v46 = vpop.f32.mrb[84].mxu0  ;;  %v2881_v63 = vpop.f32.mrb[84].mxu1 }
 0xe9a   :  { %v2888_v47 = vadd.f32 %v2840_v46, %v1916_v22  ;;  %v2890_v1 = vadd.f32 %v2881_v63, %v1989_v9  ;;  %v2842_v52 = vpop.f32.mrb[85].mxu0  ;;  %v2883_v55 = vpop.f32.mrb[85].mxu1 }
 0xe9b   :  { %v2889_v56 = vadd.f32 %v2842_v52, %v1918_v59  ;;  %v2891_v29 = vadd.f32 %v2883_v55, %v1991_v61  ;;  %v2844_v14 = vpop.f32.mrb[86].mxu0  ;;  %v2885_v13 = vpop.f32.mrb[86].mxu1 }
 0xe9c   :  { %v3446_v15 = vmul.f32 -1.442695, %v2888_v47  ;;  %v2845_v36 = vpop.f32.mrb[87].mxu0  ;;  %v2886_v28 = vpop.f32.mrb[87].mxu1 }
 0xe9d   :  { %v3447_v62 = vmul.f32 -1.442695, %v2889_v56  ;;  %v3448_v3 = vmul.f32 -1.442695, %v2891_v29  ;;  %v4131_v36 = vmov 0.0   ;;  %v3699_v28 = vld [vmem:[%s5485_s7 + $0x8] sm:$0xff]  }
 0xe9e   :  { %3914 = vpow2.f32 %v3446_v15  ;;  %v3698_v15 = vld [vmem:[%s5485_s7] sm:$0xff]  }
 0xe9f   :  { %3916 = vpow2.f32 %v3447_v62  ;;  %v3700_v62 = vld [vmem:[%s5485_s7 + $0x10] sm:$0xff]  }
 0xea0   :  { %3918 = vpow2.f32 %v3448_v3  ;;  %v3701_v3 = vld [vmem:[%s5485_s7 + $0x18] sm:$0xff]  }
 0xea1   :  { %3920 = vtanh.f32 %v2890_v1 }
 0xea8   :  { %v3915_v24 = vpop.eup %3914 }
 0xea9   :  { %v3917_v35 = vpop.eup %3916  ;;  %v2895_v37 = vadd.f32 1.0, %v3915_v24  ;;  %v3702_v24 = vld [vmem:[%s5485_s7 + $0x20] sm:$0xff]  }
 0xeaa   :  { %v2901_v45 = vadd.f32 1.0, %v3917_v35  ;;  %v3919_v19 = vpop.eup %3918  ;;  %v3703_v35 = vld [vmem:[%s5485_s7 + $0x28] sm:$0xff]  }
 0xeab   :  { %3922 = vrcp.f32 %v2895_v37  ;;  %v3921_v23 = vpop.eup %3920  ;;  %v2908_v58 = vadd.f32 1.0, %v3919_v19  ;;  %v3704_v37 = vld [vmem:[%s5485_s7 + $0x30] sm:$0xff]   ;;  %v5587_v19 = vld [vmem:[#allocation34_spill] sm:$0xff] }
 0xeac   :  { %3924 = vrcp.f32 %v2901_v45  ;;  %v3705_v45 = vld [vmem:[%s5485_s7 + $0x38] sm:$0xff]  }
 0xead   :  { %3926 = vrcp.f32 %v2908_v58 }
 0xeb5   :  { %v3923_v22 = vpop.eup %3922 }
 0xeb6   :  { %v3925_v27 = vpop.eup %3924  ;;  %v2912_v9 = vmul.f32 %v3923_v22, %v3921_v23  ;;  %v1926_v23 = vadd.f32 %v5587_v19, %v5078_v11  ;;  %v5588_v22 = vld [vmem:[#allocation35_spill] sm:$0xff] }
 0xeb7   :  { %v2911_v59 = vmul.f32 %v3925_v27, %v5288_v7  ;;  %v3927_v61 = vpop.eup %3926  ;;  %v1999_v27 = vadd.f32 %v5588_v22, %v5082_v30 }
 0xeb9   :  { %v5392_v60 = vadd.f32 %v2912_v9, %v2911_v59  ;;  %v5589_v9 = vld [vmem:[#allocation14_spill] sm:$0xff]  ;;  %v5590_v59 = vld [vmem:[#allocation36_spill] sm:$0xff] }
 0xeba   :  { %v1928_v58 = vadd.f32 %v5589_v9, %v5090_v18 }
 0xebb   :  { %3928 = vtanh.f32 %v5392_v60 }
 0xec5   :  { %v3929_v46 = vpop.eup %3928 }
 0xec6   :  { %v2915_v63 = vmul.f32 %v3929_v46, %v3927_v61 }
 0xec8   :  { %v2920_v47 = vpack.c.bf16 %v2915_v63, %v2915_v63 }
 0xeca   :  { %2954 = vmatmul.mubr.bf16.vlgmr.msra.gmra.mrb[88].mxu0 %v2920_v47  ;;  %2995 = vmatmul.mubr.bf16.vlgmr.msra.gmra.mrb[88].mxu1 %v2920_v47 }
 0xecb   :  { %3037 = vmatpush1.bf16.msra.mxu0 %v5291_v31  ;;  %3078 = vmatpush1.bf16.msra.mxu1 %v5294_v10  ;;  %v5584_v31 = vld [vmem:[#allocation31_spill] sm:$0xff] }
 0xecc   :  { %3038 = vmatprep.subr.bf16.mxu0 %v5297_v51  ;;  %3079 = vmatprep.subr.bf16.mxu1 %v5300_v20  ;;  %v1995_v10 = vadd.f32 %v5584_v31, %v5082_v30  ;;  %v5585_v51 = vld [vmem:[#allocation32_spill] sm:$0xff] }
 0xecd   :  { %3068 = vmatprep.mubr.bf16.mxu0 %v5518_v8  ;;  %3109 = vmatprep.mubr.bf16.mxu1 %v5518_v8  ;;  %v5583_v8 = vld [vmem:[#allocation30_spill] sm:$0xff]  ;;  %v1924_v20 = vadd.f32 %v5585_v51, %v5090_v18 }
 0xece   :  { %v1922_v7 = vadd.f32 %v5583_v8, %v5078_v11 }
 0xecf   :  { %3039 = vmatpush1.bf16.msra.mxu0 %v5305_v34  ;;  %3080 = vmatpush1.bf16.msra.mxu1 %v5308_v26  ;;  %v5586_v34 = vld [vmem:[#allocation33_spill] sm:$0xff] }
 0xed0   :  { %3040 = vmatprep.subr.bf16.mxu0 %v5311_v50  ;;  %3081 = vmatprep.subr.bf16.mxu1 %v5314_v17  ;;  %v1997_v26 = vadd.f32 %v5586_v34, %v5094_v53 }
 0xed3   :  { %3041 = vmatpush1.bf16.msra.mxu0 %v5317_v48  ;;  %3082 = vmatpush1.bf16.msra.mxu1 %v5320_v0 }
 0xed4   :  { %3042 = vmatprep.subr.bf16.mxu0 %v5323_v49  ;;  %3083 = vmatprep.subr.bf16.mxu1 %v5326_v4 }
 0xed7   :  { %3043 = vmatpush1.bf16.msra.mxu0 %v5329_v2  ;;  %3084 = vmatpush1.bf16.msra.mxu1 %v5332_v54 }
 0xed8   :  { %3044 = vmatprep.subr.bf16.mxu0 %v5335_v32  ;;  %3085 = vmatprep.subr.bf16.mxu1 %v5338_v57 }
 0xedb   :  { %3045 = vmatpush1.bf16.msra.mxu0 %v5341_v44  ;;  %3086 = vmatpush1.bf16.msra.mxu1 %v5344_v21 }
 0xedc   :  { %3046 = vmatprep.subr.bf16.mxu0 %v5347_v12  ;;  %3087 = vmatprep.subr.bf16.mxu1 %v5350_v16 }
 0xedf   :  { %3047 = vmatpush1.bf16.msra.mxu0 %v5353_v6  ;;  %3088 = vmatpush1.bf16.msra.mxu1 %v5356_v25 }
 0xee0   :  { %3048 = vmatprep.subr.bf16.mxu0 %v5359_v33  ;;  %3089 = vmatprep.subr.bf16.mxu1 %v5362_v5 }
 0xee3   :  { %3049 = vmatpush1.bf16.msra.mxu0 %v5365_v38  ;;  %3090 = vmatpush1.bf16.msra.mxu1 %v5368_v39 }
 0xee4   :  { %3050 = vmatprep.subr.bf16.mxu0 %v5371_v40  ;;  %3091 = vmatprep.subr.bf16.mxu1 %v5374_v41 }
 0xee7   :  { %3051 = vmatpush1.bf16.msra.mxu0 %v5377_v42  ;;  %3092 = vmatpush1.bf16.msra.mxu1 %v5380_v43 }
 0xee8   :  { %3473 = vmatprep.subr.bf16.mxu0 %v4131_v36 }
 0xf9d   :  { %v2955_v50 = vpop.f32.mrb[88].mxu0  ;;  %v2996_v17 = vpop.f32.mrb[88].mxu1 }
 0xf9e   :  { %v3003_v48 = vadd.f32 %v2955_v50, %v1922_v7  ;;  %v3005_v0 = vadd.f32 %v2996_v17, %v1995_v10  ;;  %v2957_v49 = vpop.f32.mrb[89].mxu0  ;;  %v2998_v4 = vpop.f32.mrb[89].mxu1 }
 0xf9f   :  { %v3004_v2 = vadd.f32 %v2957_v49, %v1924_v20  ;;  %v3006_v54 = vadd.f32 %v2998_v4, %v1997_v26  ;;  %v2959_v32 = vpop.f32.mrb[90].mxu0  ;;  %v3000_v57 = vpop.f32.mrb[90].mxu1 }
 0xfa0   :  { %v3449_v44 = vmul.f32 -1.442695, %v3003_v48  ;;  %v2960_v21 = vpop.f32.mrb[91].mxu0  ;;  %v3001_v12 = vpop.f32.mrb[91].mxu1 }
 0xfa1   :  { %v3450_v16 = vmul.f32 -1.442695, %v3004_v2  ;;  %v3451_v6 = vmul.f32 -1.442695, %v3006_v54 }
 0xfa2   :  { %3930 = vpow2.f32 %v3449_v44 }
 0xfa3   :  { %3932 = vpow2.f32 %v3450_v16 }
 0xfa4   :  { %3934 = vpow2.f32 %v3451_v6 }
 0xfa5   :  { %3936 = vtanh.f32 %v3005_v0 }
 0xfac   :  { %v3931_v25 = vpop.eup %3930 }
 0xfad   :  { %v3933_v33 = vpop.eup %3932  ;;  %v3010_v5 = vadd.f32 1.0, %v3931_v25  ;;  %v3455_v25 = vld [vmem:[%s5486_s8] ss:$0 sm:$0xff] }
 0xfae   :  { %v3016_v38 = vadd.f32 1.0, %v3933_v33  ;;  %v3935_v39 = vpop.eup %3934 }
 0xfaf   :  { %3938 = vrcp.f32 %v3010_v5  ;;  %v3937_v40 = vpop.eup %3936  ;;  %v3023_v1 = vadd.f32 1.0, %v3935_v39 }
 0xfb0   :  { %3940 = vrcp.f32 %v3016_v38 }
 0xfb1   :  { %3942 = vrcp.f32 %v3023_v1 }
 0xfb9   :  { %v3939_v41 = vpop.eup %3938 }
 0xfba   :  { %v3941_v42 = vpop.eup %3940  ;;  %v3027_v43 = vmul.f32 %v3939_v41, %v3937_v40 }
 0xfbb   :  { %v3026_v52 = vmul.f32 %v3941_v42, %v5392_v60  ;;  %v3943_v56 = vpop.eup %3942  ;;  %v2001_v60 = vadd.f32 %v5590_v59, %v5094_v53 }
 0xfbd   :  { %v5436_v55 = vadd.f32 %v3027_v43, %v3026_v52 }
 0xfbf   :  { %3944 = vtanh.f32 %v5436_v55 }
 0xfc9   :  { %v3945_v29 = vpop.eup %3944 }
 0xfca   :  { %v3030_v14 = vmul.f32 %v3945_v29, %v3943_v56 }
 0xfcc   :  { %v3035_v13 = vpack.c.bf16 %v3030_v14, %v3030_v14 }
 0xfce   :  { %3069 = vmatmul.mubr.bf16.vlgmr.msra.gmra.mrb[92].mxu0 %v3035_v13  ;;  %3110 = vmatmul.mubr.bf16.vlgmr.msra.gmra.mrb[92].mxu1 %v3035_v13 }
 0xfcf   :  { %3474 = vmatpush3.bf16.msra.mxu0 %v3698_v15  ;;  %3489 = vmatprep.mubr.msk.bf16.mxu0 %vm4132_vm0, %v4131_v36 }
 0xfd0   :  { %3475 = vmatprep.subr.bf16.mxu0 %v4131_v36 }
 0xfd3   :  { %3476 = vmatpush3.bf16.msra.mxu0 %v3699_v28 }
 0xfd4   :  { %3477 = vmatprep.subr.bf16.mxu0 %v4131_v36 }
 0xfd7   :  { %3478 = vmatpush3.bf16.msra.mxu0 %v3700_v62 }
 0xfd8   :  { %3479 = vmatprep.subr.bf16.mxu0 %v4131_v36 }
 0xfdb   :  { %3480 = vmatpush3.bf16.msra.mxu0 %v3701_v3 }
 0xfdc   :  { %3481 = vmatprep.subr.bf16.mxu0 %v4131_v36 }
 0xfdf   :  { %3482 = vmatpush3.bf16.msra.mxu0 %v3702_v24 }
 0xfe0   :  { %3483 = vmatprep.subr.bf16.mxu0 %v4131_v36 }
 0xfe3   :  { %3484 = vmatpush3.bf16.msra.mxu0 %v3703_v35 }
 0xfe4   :  { %3485 = vmatprep.subr.bf16.mxu0 %v4131_v36 }
 0xfe7   :  { %3486 = vmatpush3.bf16.msra.mxu0 %v3704_v37 }
 0xfe8   :  { %3487 = vmatprep.subr.bf16.mxu0 %v4131_v36 }
 0xfeb   :  { %3488 = vmatpush3.bf16.msra.mxu0 %v3705_v45 }
0x10a1   :  { %v3070_v61 = vpop.f32.mrb[92].mxu0  ;;  %v3111_v46 = vpop.f32.mrb[92].mxu1 }
0x10a2   :  { %v3118_v63 = vadd.f32 %v3070_v61, %v1926_v23  ;;  %v3120_v47 = vadd.f32 %v3111_v46, %v1999_v27  ;;  %v3072_v8 = vpop.f32.mrb[93].mxu0  ;;  %v3113_v7 = vpop.f32.mrb[93].mxu1 }
0x10a3   :  { %v3119_v31 = vadd.f32 %v3072_v8, %v1928_v58  ;;  %v3121_v10 = vadd.f32 %v3113_v7, %v2001_v60  ;;  %v3074_v51 = vpop.f32.mrb[94].mxu0  ;;  %v3115_v20 = vpop.f32.mrb[94].mxu1 }
0x10a4   :  { %v3452_v11 = vmul.f32 -1.442695, %v3118_v63  ;;  %v3075_v34 = vpop.f32.mrb[95].mxu0  ;;  %v3116_v26 = vpop.f32.mrb[95].mxu1 }
0x10a5   :  { %v3453_v30 = vmul.f32 -1.442695, %v3119_v31  ;;  %v3454_v18 = vmul.f32 -1.442695, %v3121_v10 }
0x10a6   :  { %3946 = vpow2.f32 %v3452_v11 }
0x10a7   :  { %3948 = vpow2.f32 %v3453_v30 }
0x10a8   :  { %3950 = vpow2.f32 %v3454_v18 }
0x10a9   :  { %3952 = vtanh.f32 %v3120_v47 }
0x10b0   :  { %v3947_v50 = vpop.eup %3946 }
0x10b1   :  { %v3949_v17 = vpop.eup %3948  ;;  %v3125_v53 = vadd.f32 1.0, %v3947_v50 }
0x10b2   :  { %v3131_v48 = vadd.f32 1.0, %v3949_v17  ;;  %v3951_v0 = vpop.eup %3950 }
0x10b3   :  { %3954 = vrcp.f32 %v3125_v53  ;;  %v3953_v49 = vpop.eup %3952  ;;  %v3138_v32 = vadd.f32 1.0, %v3951_v0 }
0x10b4   :  { %3956 = vrcp.f32 %v3131_v48 }
0x10b5   :  { %3958 = vrcp.f32 %v3138_v32 }
0x10bd   :  { %v3955_v4 = vpop.eup %3954 }
0x10be   :  { %v3957_v2 = vpop.eup %3956  ;;  %v3142_v54 = vmul.f32 %v3955_v4, %v3953_v49 }
0x10bf   :  { %v3141_v57 = vmul.f32 %v3957_v2, %v5436_v55  ;;  %v3959_v21 = vpop.eup %3958 }
0x10c1   :  { %v3143_v44 = vadd.f32 %v3142_v54, %v3141_v57 }
0x10c3   :  { %3960 = vtanh.f32 %v3143_v44 }
0x10cd   :  { %v3961_v12 = vpop.eup %3960 }
0x10ce   :  { %v3145_v16 = vmul.f32 %v3961_v12, %v3959_v21 }
0x10d0   :  { %v3146_v6 = vpack.c.bf16 %v3145_v16, %v3145_v16 }
0x10d2   :  { %3490 = vmatmul.mubr.bf16.vlgmr.msra.gmra.mrb[96].mxu0 %v3146_v6 }
0x11a5   :  { %v3252_v33 = vpop.f32.mrb[96].mxu0 }
0x11a6   :  { %v3253_v5 = vadd.f32 %v3455_v25, %v3252_v33  ;;  %v3491_v38 = vpop.f32.mrb[97].mxu0 }
0x11a7   :  { %v3255_v39 = vpop.f32.mrb[98].mxu0 }
0x11a8   :  { %3258 = vmax.xlane.f32.xlu0 %v3253_v5  ;;  %v3492_v40 = vpop.f32.mrb[99].mxu0 }
0x1235   :  { %v3259_v41 = vpop.xlane.xlu0 %3258 }
0x1236   :  { %v3260_v42 = vsub.f32 %v3253_v5, %v3259_v41 }
0x1238   :  { %v3261_v43 = vmul.f32 1.442695, %v3260_v42 }
0x123a   :  { %3962 = vpow2.f32 %v3261_v43 }
0x1244   :  { %v3963_v1 = vpop.eup %3962 }
0x1245   :  { %3263 = vadd.xlane.f32.xlu0 %v3963_v1 }
0x12d2   :  { %v3264_v52 = vpop.xlane.xlu0 %3263 }
0x12d3   :  { %3964 = vrcp.f32 %v3264_v52 }
0x12dd   :  { %v3965_v55 = vpop.eup %3964 }
0x12de   :  { %v3266_v56 = vmul.f32 %v3965_v55, %v3963_v1 }
0x12e0   :  { %3267 = vst [vmem:[%s5487_s9] sm:$0xff] %v3266_v56 }
0x12e1   :  { %3272 = vsyncpa [#allocation5], 1 }
0x12e2   :  { %3273 = vsyncpa [#allocation7], 1 }
0x12e3   :  { %3274 = vsyncpa [#allocation10], 1 }

</bundles_post_ra>
